<compile_context>
chip_gen: v6e
topology: v6e:2x2x1
jax: 0.10.0
libtpu: 0.0.40
codegen_flags: <defaults>
</compile_context>

<pallas_src>
import jax
import jax.numpy as jnp
import numpy as np
from jax.experimental import pallas as pl
from jax.experimental.pallas import tpu as pltpu

_COMPUTE_DTYPE = jnp.bfloat16   # MXU operand dtype (accumulation is f32)
_NPAD = 128                     # fc2 logits padded to a lane-dense 128 columns


# ----------------------------------------------------------------------------
# Pallas kernel: entire forward pass for ONE image per grid step.
# ----------------------------------------------------------------------------
def _cnn_kernel(x_ref,
                r1_ref, m1_ref, b1_ref,
                r2_ref, m2_ref, b2_ref,
                r3_ref, m3_ref, b3_ref,
                w1_ref, b4_ref,
                w2_ref, b5_ref,
                o_ref):
    f32 = jnp.float32
    cdt = _COMPUTE_DTYPE

    def conv(a, r_ref, m_ref, b_ref):
        # a: (H_in, W_in*IC) -> (H_out, W_out*OC), fused bias + ReLU.
        acc = None
        for kh in range(r_ref.shape[0]):                       # static 3-way unroll
            rows = jnp.dot(r_ref[kh], a, preferred_element_type=f32)      # row gather
            part = jnp.dot(rows.astype(cdt), m_ref[kh],
                           preferred_element_type=f32)                    # col gather + weights
            acc = part if acc is None else acc + part
        acc = acc + b_ref[...]                                 # (1, N) broadcast
        return jnp.maximum(acc, 0.0).astype(cdt)

    a0 = x_ref[0]                                              # (28, 28)   channels-last, C=1
    a1 = conv(a0, r1_ref, m1_ref, b1_ref)                      # (13, 13*32)
    a2 = conv(a1, r2_ref, m2_ref, b2_ref)                      # (6,  6*64)
    a3 = conv(a2, r3_ref, m3_ref, b3_ref)                      # (2,  2*128)

    # Dense head.  Dropout(0.2) is identity in eval/inference mode.
    # flatten (2, 256) -> (1, 512) is realised as two row matmuls (no in-kernel reshape).
    h = (jnp.dot(a3[0:1, :], w1_ref[0], preferred_element_type=f32) +
         jnp.dot(a3[1:2, :], w1_ref[1], preferred_element_type=f32) +
         b4_ref[...])
    h = jnp.maximum(h, 0.0).astype(cdt)                        # (1, 512)

    logits = jnp.dot(h, w2_ref[...], preferred_element_type=f32) + b5_ref[...]
    o_ref[0] = logits.astype(o_ref.dtype)                      # lane-dense (1, 128) store


# ----------------------------------------------------------------------------
# One-time host-side repack of PyTorch-layout params into kernel operands.
# ----------------------------------------------------------------------------
def _conv_pack(w, b, h_in, w_in, dtype):
    """Fold a stride-2 VALID Conv2d into row-select (R) and col-select+weight (M) mats."""
    w = np.asarray(w, np.float32)                      # (OC, IC, KH, KW), PyTorch layout
    b = np.asarray(b, np.float32)
    oc, ic, kh_sz, kw_sz = w.shape
    h_out = (h_in - kh_sz) // 2 + 1
    w_out = (w_in - kw_sz) // 2 + 1

    r = np.zeros((kh_sz, h_out, h_in), np.float32)     # R_kh[i, kh + 2i] = 1
    for kh in range(kh_sz):
        for i in range(h_out):
            r[kh, i, kh + 2 * i] = 1.0

    # M_kh[(kw+2j)*IC + ic, j*OC + oc] = w[oc, ic, kh, kw]
    m = np.zeros((kh_sz, w_in * ic, w_out * oc), np.float32)
    for kh in range(kh_sz):
        for kw in range(kw_sz):
            for j in range(w_out):
                col = kw + 2 * j
                m[kh, col * ic:(col + 1) * ic, j * oc:(j + 1) * oc] = w[:, :, kh, kw].T

    bias = np.tile(b, w_out)[None, :]                  # (1, W_out*OC), index j*OC + oc
    return (jnp.asarray(r, dtype), jnp.asarray(m, dtype),
            jnp.asarray(bias, jnp.float32), h_out, w_out)


def pack_params(params, dtype=_COMPUTE_DTYPE):
    r1, m1, b1, h1, w1sz = _conv_pack(params["conv1_w"], params["conv1_b"], 28, 28, dtype)
    r2, m2, b2, h2, w2sz = _conv_pack(params["conv2_w"], params["conv2_b"], h1, w1sz, dtype)
    r3, m3, b3, h3, w3sz = _conv_pack(params["conv3_w"], params["conv3_b"], h2, w2sz, dtype)

    oc3 = np.asarray(params["conv3_w"]).shape[0]               # 128
    # fc1: PyTorch columns are flattened (c, h, w); our activation row h has columns w*OC+c.
    fw1 = np.asarray(params["fc1_w"], np.float32)              # (512, C*H*W)
    fw1 = fw1.reshape(fw1.shape[0], oc3, h3, w3sz)             # (out, c, h, w)
    w1 = fw1.transpose(2, 3, 1, 0).reshape(h3, w3sz * oc3, fw1.shape[0])   # (h, w*C+c, out)
    b4 = np.asarray(params["fc1_b"], np.float32)[None, :]

    # fc2: (K, 512) -> (512, 128), zero-padded columns so the output store is lane dense.
    fw2 = np.asarray(params["fc2_w"], np.float32)
    k = fw2.shape[0]
    w2 = np.zeros((fw2.shape[1], _NPAD), np.float32)
    w2[:, :k] = fw2.T
    b5 = np.zeros((1, _NPAD), np.float32)
    b5[0, :k] = np.asarray(params["fc2_b"], np.float32)

    return {
        "r1": r1, "m1": m1, "b1": b1,
        "r2": r2, "m2": m2, "b2": b2,
        "r3": r3, "m3": m3, "b3": b3,
        "w1": jnp.asarray(w1, dtype), "b4": jnp.asarray(b4, jnp.float32),
        "w2": jnp.asarray(w2, dtype), "b5": jnp.asarray(b5, jnp.float32),
    }


# ----------------------------------------------------------------------------
# Forward wrapper: single pallas_call over the batch.
# ----------------------------------------------------------------------------
_WEIGHT_ORDER = ("r1", "m1", "b1", "r2", "m2", "b2",
                 "r3", "m3", "b3", "w1", "b4", "w2", "b5")


def _zero_index_map(ndim):
    return lambda b: (0,) * ndim


@jax.jit
def _cnn_forward_padded(packed, x):
    # x: (B, 1, 28, 28) NCHW f32  ->  padded logits (B, 1, 128) f32
    B, _, H, W = x.shape
    xs = x[:, 0, :, :].astype(_COMPUTE_DTYPE)                  # (B, H, W); C=1 channels-last
    ops = [packed[name] for name in _WEIGHT_ORDER]
    in_specs = [pl.BlockSpec((1, H, W), lambda b: (b, 0, 0))]
    in_specs += [pl.BlockSpec(o.shape, _zero_index_map(o.ndim)) for o in ops]
    return pl.pallas_call(
        _cnn_kernel,
        out_shape=jax.ShapeDtypeStruct((B, 1, _NPAD), jnp.float32),
        grid=(B,),
        in_specs=in_specs,
        out_specs=pl.BlockSpec((1, 1, _NPAD), lambda b: (b, 0, 0)),
        compiler_params=pltpu.CompilerParams(
            dimension_semantics=("parallel",)),   # lets v7x's 2 TCs split the batch
    )(xs, *ops)


def cnn_forward(packed, x, num_classes=10):
    return _cnn_forward_padded(packed, x)[:, 0, :num_classes]


# ----------------------------------------------------------------------------
# Parameter init (PyTorch-style layouts) and pure-JAX reference for validation.
# ----------------------------------------------------------------------------
def init_params(key, K):
    ks = jax.random.split(key, 10)

    def u(k, shape, fan_in):
        bound = 1.0 / np.sqrt(fan_in)
        return jax.random.uniform(k, shape, jnp.float32, -bound, bound)

    return {
        "conv1_w": u(ks[0], (32, 1, 3, 3), 1 * 9),
        "conv1_b": u(ks[1], (32,), 1 * 9),
        "conv2_w": u(ks[2], (64, 32, 3, 3), 32 * 9),
        "conv2_b": u(ks[3], (64,), 32 * 9),
        "conv3_w": u(ks[4], (128, 64, 3, 3), 64 * 9),
        "conv3_b": u(ks[5], (128,), 64 * 9),
        "fc1_w": u(ks[6], (512, 512), 512),
        "fc1_b": u(ks[7], (512,), 512),
        "fc2_w": u(ks[8], (K, 512), 512),
        "fc2_b": u(ks[9], (K,), 512),
    }


def cnn_forward_ref(params, x):
    def conv(x, w, b, relu):
        y = jax.lax.conv_general_dilated(
            x, w, window_strides=(2, 2), padding="VALID",
            dimension_numbers=("NCHW", "OIHW", "NCHW"))
        y = y + b[None, :, None, None]
        return jnp.maximum(y, 0.0) if relu else y

    out = conv(x, params["conv1_w"], params["conv1_b"], True)
    out = conv(out, params["conv2_w"], params["conv2_b"], True)
    out = conv(out, params["conv3_w"], params["conv3_b"], True)
    out = out.reshape(out.shape[0], -1)
    out = jnp.maximum(out @ params["fc1_w"].T + params["fc1_b"], 0.0)
    out = out @ params["fc2_w"].T + params["fc2_b"]
    return out


if __name__ == "__main__":
    K = 10                       # number of MNIST classes
    B = 2                        # small batch
    key = jax.random.PRNGKey(0)
    pkey, xkey = jax.random.split(key)

    params = init_params(pkey, K)
    # 28x28 input is required by the 128*2*2 flatten in the model.
    x = jax.random.normal(xkey, (B, 1, 28, 28), jnp.float32)

    packed = pack_params(params)
    logits = jax.block_until_ready(cnn_forward(packed, x, num_classes=K))
    assert logits.shape == (B, K), logits.shape

    ref = jax.block_until_ready(cnn_forward_ref(params, x))
    # bf16 MXU operands (f32 accumulation) -> loosened tolerance vs the f32 reference.
    np.testing.assert_allclose(np.asarray(logits), np.asarray(ref),
                               rtol=2e-2, atol=1e-2)

    print("KERNEL_OK")
</pallas_src>

<mosaic_0001>
module attributes {stable_mosaic.version = 11 : i64} {
  func.func @_cnn_kernel(%arg0: i32, %arg1: memref<1x28x28xbf16, #tpu.memory_space<vmem>>, %arg2: memref<3x13x28xbf16, #tpu.memory_space<vmem>>, %arg3: memref<3x28x416xbf16, #tpu.memory_space<vmem>>, %arg4: memref<1x416xf32, #tpu.memory_space<vmem>>, %arg5: memref<3x6x13xbf16, #tpu.memory_space<vmem>>, %arg6: memref<3x416x384xbf16, #tpu.memory_space<vmem>>, %arg7: memref<1x384xf32, #tpu.memory_space<vmem>>, %arg8: memref<3x2x6xbf16, #tpu.memory_space<vmem>>, %arg9: memref<3x384x256xbf16, #tpu.memory_space<vmem>>, %arg10: memref<1x256xf32, #tpu.memory_space<vmem>>, %arg11: memref<2x256x512xbf16, #tpu.memory_space<vmem>>, %arg12: memref<1x512xf32, #tpu.memory_space<vmem>>, %arg13: memref<512x128xbf16, #tpu.memory_space<vmem>>, %arg14: memref<1x128xf32, #tpu.memory_space<vmem>>, %arg15: memref<1x1x128xf32, #tpu.memory_space<vmem>>) attributes {dimension_semantics = [#tpu.dimension_semantics<parallel>], iteration_bounds = array<i64: 2>, scalar_prefetch = 0 : i64, scratch_operands = 0 : i64, tpu.core_type = #tpu.core_type<tc>, window_params = [{transform_indices = @transform_0, window_bounds = array<i64: 1, 28, 28>}, {pipeline_mode = #tpu.pipeline_mode<synchronous>, transform_indices = @transform_1, window_bounds = array<i64: 3, 13, 28>}, {pipeline_mode = #tpu.pipeline_mode<synchronous>, transform_indices = @transform_2, window_bounds = array<i64: 3, 28, 416>}, {pipeline_mode = #tpu.pipeline_mode<synchronous>, transform_indices = @transform_3, window_bounds = array<i64: 1, 416>}, {pipeline_mode = #tpu.pipeline_mode<synchronous>, transform_indices = @transform_4, window_bounds = array<i64: 3, 6, 13>}, {pipeline_mode = #tpu.pipeline_mode<synchronous>, transform_indices = @transform_5, window_bounds = array<i64: 3, 416, 384>}, {pipeline_mode = #tpu.pipeline_mode<synchronous>, transform_indices = @transform_6, window_bounds = array<i64: 1, 384>}, {pipeline_mode = #tpu.pipeline_mode<synchronous>, transform_indices = @transform_7, window_bounds = array<i64: 3, 2, 6>}, {pipeline_mode = #tpu.pipeline_mode<synchronous>, transform_indices = @transform_8, window_bounds = array<i64: 3, 384, 256>}, {pipeline_mode = #tpu.pipeline_mode<synchronous>, transform_indices = @transform_9, window_bounds = array<i64: 1, 256>}, {pipeline_mode = #tpu.pipeline_mode<synchronous>, transform_indices = @transform_10, window_bounds = array<i64: 2, 256, 512>}, {pipeline_mode = #tpu.pipeline_mode<synchronous>, transform_indices = @transform_11, window_bounds = array<i64: 1, 512>}, {pipeline_mode = #tpu.pipeline_mode<synchronous>, transform_indices = @transform_12, window_bounds = array<i64: 512, 128>}, {pipeline_mode = #tpu.pipeline_mode<synchronous>, transform_indices = @transform_13, window_bounds = array<i64: 1, 128>}, {transform_indices = @transform_14, window_bounds = array<i64: 1, 1, 128>}]} {
    %c0 = arith.constant 0 : index
    %c0_0 = arith.constant 0 : index
    %c0_1 = arith.constant 0 : index
    %0 = vector.load %arg1[%c0, %c0_0, %c0_1] : memref<1x28x28xbf16, #tpu.memory_space<vmem>>, vector<1x28x28xbf16>
    %1 = vector.shape_cast %0 : vector<1x28x28xbf16> to vector<28x28xbf16>
    %c0_2 = arith.constant 0 : index
    %c0_3 = arith.constant 0 : index
    %c0_4 = arith.constant 0 : index
    %2 = vector.load %arg2[%c0_2, %c0_3, %c0_4] : memref<3x13x28xbf16, #tpu.memory_space<vmem>>, vector<1x13x28xbf16>
    %3 = vector.shape_cast %2 : vector<1x13x28xbf16> to vector<13x28xbf16>
    %cst = arith.constant dense<0.000000e+00> : vector<13x28xf32>
    %4 = tpu.matmul %3, %1, %cst {dimension_numbers = #tpu.dot_dimension_numbers<[1], [0], [0], [1], [0, 0, 1, 1], [], []>} : vector<13x28xbf16>, vector<28x28xbf16>, vector<13x28xf32> -> vector<13x28xf32>
    %5 = arith.truncf %4 : vector<13x28xf32> to vector<13x28xbf16>
    %c0_5 = arith.constant 0 : index
    %c0_6 = arith.constant 0 : index
    %c0_7 = arith.constant 0 : index
    %6 = vector.load %arg3[%c0_5, %c0_6, %c0_7] : memref<3x28x416xbf16, #tpu.memory_space<vmem>>, vector<1x28x416xbf16>
    %7 = vector.shape_cast %6 : vector<1x28x416xbf16> to vector<28x416xbf16>
    %cst_8 = arith.constant dense<0.000000e+00> : vector<13x416xf32>
    %8 = tpu.matmul %5, %7, %cst_8 {dimension_numbers = #tpu.dot_dimension_numbers<[1], [0], [0], [1], [0, 0, 1, 1], [], []>} : vector<13x28xbf16>, vector<28x416xbf16>, vector<13x416xf32> -> vector<13x416xf32>
    %c1 = arith.constant 1 : index
    %c0_9 = arith.constant 0 : index
    %c0_10 = arith.constant 0 : index
    %9 = vector.load %arg2[%c1, %c0_9, %c0_10] : memref<3x13x28xbf16, #tpu.memory_space<vmem>>, vector<1x13x28xbf16>
    %10 = vector.shape_cast %9 : vector<1x13x28xbf16> to vector<13x28xbf16>
    %cst_11 = arith.constant dense<0.000000e+00> : vector<13x28xf32>
    %11 = tpu.matmul %10, %1, %cst_11 {dimension_numbers = #tpu.dot_dimension_numbers<[1], [0], [0], [1], [0, 0, 1, 1], [], []>} : vector<13x28xbf16>, vector<28x28xbf16>, vector<13x28xf32> -> vector<13x28xf32>
    %12 = arith.truncf %11 : vector<13x28xf32> to vector<13x28xbf16>
    %c1_12 = arith.constant 1 : index
    %c0_13 = arith.constant 0 : index
    %c0_14 = arith.constant 0 : index
    %13 = vector.load %arg3[%c1_12, %c0_13, %c0_14] : memref<3x28x416xbf16, #tpu.memory_space<vmem>>, vector<1x28x416xbf16>
    %14 = vector.shape_cast %13 : vector<1x28x416xbf16> to vector<28x416xbf16>
    %cst_15 = arith.constant dense<0.000000e+00> : vector<13x416xf32>
    %15 = tpu.matmul %12, %14, %cst_15 {dimension_numbers = #tpu.dot_dimension_numbers<[1], [0], [0], [1], [0, 0, 1, 1], [], []>} : vector<13x28xbf16>, vector<28x416xbf16>, vector<13x416xf32> -> vector<13x416xf32>
    %16 = arith.addf %8, %15 : vector<13x416xf32>
    %c2 = arith.constant 2 : index
    %c0_16 = arith.constant 0 : index
    %c0_17 = arith.constant 0 : index
    %17 = vector.load %arg2[%c2, %c0_16, %c0_17] : memref<3x13x28xbf16, #tpu.memory_space<vmem>>, vector<1x13x28xbf16>
    %18 = vector.shape_cast %17 : vector<1x13x28xbf16> to vector<13x28xbf16>
    %cst_18 = arith.constant dense<0.000000e+00> : vector<13x28xf32>
    %19 = tpu.matmul %18, %1, %cst_18 {dimension_numbers = #tpu.dot_dimension_numbers<[1], [0], [0], [1], [0, 0, 1, 1], [], []>} : vector<13x28xbf16>, vector<28x28xbf16>, vector<13x28xf32> -> vector<13x28xf32>
    %20 = arith.truncf %19 : vector<13x28xf32> to vector<13x28xbf16>
    %c2_19 = arith.constant 2 : index
    %c0_20 = arith.constant 0 : index
    %c0_21 = arith.constant 0 : index
    %21 = vector.load %arg3[%c2_19, %c0_20, %c0_21] : memref<3x28x416xbf16, #tpu.memory_space<vmem>>, vector<1x28x416xbf16>
    %22 = vector.shape_cast %21 : vector<1x28x416xbf16> to vector<28x416xbf16>
    %cst_22 = arith.constant dense<0.000000e+00> : vector<13x416xf32>
    %23 = tpu.matmul %20, %22, %cst_22 {dimension_numbers = #tpu.dot_dimension_numbers<[1], [0], [0], [1], [0, 0, 1, 1], [], []>} : vector<13x28xbf16>, vector<28x416xbf16>, vector<13x416xf32> -> vector<13x416xf32>
    %24 = arith.addf %16, %23 : vector<13x416xf32>
    %c0_23 = arith.constant 0 : index
    %c0_24 = arith.constant 0 : index
    %25 = vector.load %arg4[%c0_23, %c0_24] : memref<1x416xf32, #tpu.memory_space<vmem>>, vector<1x416xf32>
    %26 = vector.broadcast %25 : vector<1x416xf32> to vector<13x416xf32>
    %27 = arith.addf %24, %26 : vector<13x416xf32>
    %cst_25 = arith.constant 0.000000e+00 : f32
    %28 = vector.broadcast %cst_25 : f32 to vector<13x416xf32>
    %29 = arith.maximumf %27, %28 : vector<13x416xf32>
    %30 = arith.truncf %29 : vector<13x416xf32> to vector<13x416xbf16>
    %c0_26 = arith.constant 0 : index
    %c0_27 = arith.constant 0 : index
    %c0_28 = arith.constant 0 : index
    %31 = vector.load %arg5[%c0_26, %c0_27, %c0_28] : memref<3x6x13xbf16, #tpu.memory_space<vmem>>, vector<1x6x13xbf16>
    %32 = vector.shape_cast %31 : vector<1x6x13xbf16> to vector<6x13xbf16>
    %cst_29 = arith.constant dense<0.000000e+00> : vector<6x416xf32>
    %33 = tpu.matmul %32, %30, %cst_29 {dimension_numbers = #tpu.dot_dimension_numbers<[1], [0], [0], [1], [0, 0, 1, 1], [], []>} : vector<6x13xbf16>, vector<13x416xbf16>, vector<6x416xf32> -> vector<6x416xf32>
    %34 = arith.truncf %33 : vector<6x416xf32> to vector<6x416xbf16>
    %c0_30 = arith.constant 0 : index
    %c0_31 = arith.constant 0 : index
    %c0_32 = arith.constant 0 : index
    %35 = vector.load %arg6[%c0_30, %c0_31, %c0_32] : memref<3x416x384xbf16, #tpu.memory_space<vmem>>, vector<1x416x384xbf16>
    %36 = vector.shape_cast %35 : vector<1x416x384xbf16> to vector<416x384xbf16>
    %cst_33 = arith.constant dense<0.000000e+00> : vector<6x384xf32>
    %37 = tpu.matmul %34, %36, %cst_33 {dimension_numbers = #tpu.dot_dimension_numbers<[1], [0], [0], [1], [0, 0, 1, 1], [], []>} : vector<6x416xbf16>, vector<416x384xbf16>, vector<6x384xf32> -> vector<6x384xf32>
    %c1_34 = arith.constant 1 : index
    %c0_35 = arith.constant 0 : index
    %c0_36 = arith.constant 0 : index
    %38 = vector.load %arg5[%c1_34, %c0_35, %c0_36] : memref<3x6x13xbf16, #tpu.memory_space<vmem>>, vector<1x6x13xbf16>
    %39 = vector.shape_cast %38 : vector<1x6x13xbf16> to vector<6x13xbf16>
    %cst_37 = arith.constant dense<0.000000e+00> : vector<6x416xf32>
    %40 = tpu.matmul %39, %30, %cst_37 {dimension_numbers = #tpu.dot_dimension_numbers<[1], [0], [0], [1], [0, 0, 1, 1], [], []>} : vector<6x13xbf16>, vector<13x416xbf16>, vector<6x416xf32> -> vector<6x416xf32>
    %41 = arith.truncf %40 : vector<6x416xf32> to vector<6x416xbf16>
    %c1_38 = arith.constant 1 : index
    %c0_39 = arith.constant 0 : index
    %c0_40 = arith.constant 0 : index
    %42 = vector.load %arg6[%c1_38, %c0_39, %c0_40] : memref<3x416x384xbf16, #tpu.memory_space<vmem>>, vector<1x416x384xbf16>
    %43 = vector.shape_cast %42 : vector<1x416x384xbf16> to vector<416x384xbf16>
    %cst_41 = arith.constant dense<0.000000e+00> : vector<6x384xf32>
    %44 = tpu.matmul %41, %43, %cst_41 {dimension_numbers = #tpu.dot_dimension_numbers<[1], [0], [0], [1], [0, 0, 1, 1], [], []>} : vector<6x416xbf16>, vector<416x384xbf16>, vector<6x384xf32> -> vector<6x384xf32>
    %45 = arith.addf %37, %44 : vector<6x384xf32>
    %c2_42 = arith.constant 2 : index
    %c0_43 = arith.constant 0 : index
    %c0_44 = arith.constant 0 : index
    %46 = vector.load %arg5[%c2_42, %c0_43, %c0_44] : memref<3x6x13xbf16, #tpu.memory_space<vmem>>, vector<1x6x13xbf16>
    %47 = vector.shape_cast %46 : vector<1x6x13xbf16> to vector<6x13xbf16>
    %cst_45 = arith.constant dense<0.000000e+00> : vector<6x416xf32>
    %48 = tpu.matmul %47, %30, %cst_45 {dimension_numbers = #tpu.dot_dimension_numbers<[1], [0], [0], [1], [0, 0, 1, 1], [], []>} : vector<6x13xbf16>, vector<13x416xbf16>, vector<6x416xf32> -> vector<6x416xf32>
    %49 = arith.truncf %48 : vector<6x416xf32> to vector<6x416xbf16>
    %c2_46 = arith.constant 2 : index
    %c0_47 = arith.constant 0 : index
    %c0_48 = arith.constant 0 : index
    %50 = vector.load %arg6[%c2_46, %c0_47, %c0_48] : memref<3x416x384xbf16, #tpu.memory_space<vmem>>, vector<1x416x384xbf16>
    %51 = vector.shape_cast %50 : vector<1x416x384xbf16> to vector<416x384xbf16>
    %cst_49 = arith.constant dense<0.000000e+00> : vector<6x384xf32>
    %52 = tpu.matmul %49, %51, %cst_49 {dimension_numbers = #tpu.dot_dimension_numbers<[1], [0], [0], [1], [0, 0, 1, 1], [], []>} : vector<6x416xbf16>, vector<416x384xbf16>, vector<6x384xf32> -> vector<6x384xf32>
    %53 = arith.addf %45, %52 : vector<6x384xf32>
    %c0_50 = arith.constant 0 : index
    %c0_51 = arith.constant 0 : index
    %54 = vector.load %arg7[%c0_50, %c0_51] : memref<1x384xf32, #tpu.memory_space<vmem>>, vector<1x384xf32>
    %55 = vector.broadcast %54 : vector<1x384xf32> to vector<6x384xf32>
    %56 = arith.addf %53, %55 : vector<6x384xf32>
    %cst_52 = arith.constant 0.000000e+00 : f32
    %57 = vector.broadcast %cst_52 : f32 to vector<6x384xf32>
    %58 = arith.maximumf %56, %57 : vector<6x384xf32>
    %59 = arith.truncf %58 : vector<6x384xf32> to vector<6x384xbf16>
    %c0_53 = arith.constant 0 : index
    %c0_54 = arith.constant 0 : index
    %c0_55 = arith.constant 0 : index
    %60 = vector.load %arg8[%c0_53, %c0_54, %c0_55] : memref<3x2x6xbf16, #tpu.memory_space<vmem>>, vector<1x2x6xbf16>
    %61 = vector.shape_cast %60 : vector<1x2x6xbf16> to vector<2x6xbf16>
    %cst_56 = arith.constant dense<0.000000e+00> : vector<2x384xf32>
    %62 = tpu.matmul %61, %59, %cst_56 {dimension_numbers = #tpu.dot_dimension_numbers<[1], [0], [0], [1], [0, 0, 1, 1], [], []>} : vector<2x6xbf16>, vector<6x384xbf16>, vector<2x384xf32> -> vector<2x384xf32>
    %63 = arith.truncf %62 : vector<2x384xf32> to vector<2x384xbf16>
    %c0_57 = arith.constant 0 : index
    %c0_58 = arith.constant 0 : index
    %c0_59 = arith.constant 0 : index
    %64 = vector.load %arg9[%c0_57, %c0_58, %c0_59] : memref<3x384x256xbf16, #tpu.memory_space<vmem>>, vector<1x384x256xbf16>
    %65 = vector.shape_cast %64 : vector<1x384x256xbf16> to vector<384x256xbf16>
    %cst_60 = arith.constant dense<0.000000e+00> : vector<2x256xf32>
    %66 = tpu.matmul %63, %65, %cst_60 {dimension_numbers = #tpu.dot_dimension_numbers<[1], [0], [0], [1], [0, 0, 1, 1], [], []>} : vector<2x384xbf16>, vector<384x256xbf16>, vector<2x256xf32> -> vector<2x256xf32>
    %c1_61 = arith.constant 1 : index
    %c0_62 = arith.constant 0 : index
    %c0_63 = arith.constant 0 : index
    %67 = vector.load %arg8[%c1_61, %c0_62, %c0_63] : memref<3x2x6xbf16, #tpu.memory_space<vmem>>, vector<1x2x6xbf16>
    %68 = vector.shape_cast %67 : vector<1x2x6xbf16> to vector<2x6xbf16>
    %cst_64 = arith.constant dense<0.000000e+00> : vector<2x384xf32>
    %69 = tpu.matmul %68, %59, %cst_64 {dimension_numbers = #tpu.dot_dimension_numbers<[1], [0], [0], [1], [0, 0, 1, 1], [], []>} : vector<2x6xbf16>, vector<6x384xbf16>, vector<2x384xf32> -> vector<2x384xf32>
    %70 = arith.truncf %69 : vector<2x384xf32> to vector<2x384xbf16>
    %c1_65 = arith.constant 1 : index
    %c0_66 = arith.constant 0 : index
    %c0_67 = arith.constant 0 : index
    %71 = vector.load %arg9[%c1_65, %c0_66, %c0_67] : memref<3x384x256xbf16, #tpu.memory_space<vmem>>, vector<1x384x256xbf16>
    %72 = vector.shape_cast %71 : vector<1x384x256xbf16> to vector<384x256xbf16>
    %cst_68 = arith.constant dense<0.000000e+00> : vector<2x256xf32>
    %73 = tpu.matmul %70, %72, %cst_68 {dimension_numbers = #tpu.dot_dimension_numbers<[1], [0], [0], [1], [0, 0, 1, 1], [], []>} : vector<2x384xbf16>, vector<384x256xbf16>, vector<2x256xf32> -> vector<2x256xf32>
    %74 = arith.addf %66, %73 : vector<2x256xf32>
    %c2_69 = arith.constant 2 : index
    %c0_70 = arith.constant 0 : index
    %c0_71 = arith.constant 0 : index
    %75 = vector.load %arg8[%c2_69, %c0_70, %c0_71] : memref<3x2x6xbf16, #tpu.memory_space<vmem>>, vector<1x2x6xbf16>
    %76 = vector.shape_cast %75 : vector<1x2x6xbf16> to vector<2x6xbf16>
    %cst_72 = arith.constant dense<0.000000e+00> : vector<2x384xf32>
    %77 = tpu.matmul %76, %59, %cst_72 {dimension_numbers = #tpu.dot_dimension_numbers<[1], [0], [0], [1], [0, 0, 1, 1], [], []>} : vector<2x6xbf16>, vector<6x384xbf16>, vector<2x384xf32> -> vector<2x384xf32>
    %78 = arith.truncf %77 : vector<2x384xf32> to vector<2x384xbf16>
    %c2_73 = arith.constant 2 : index
    %c0_74 = arith.constant 0 : index
    %c0_75 = arith.constant 0 : index
    %79 = vector.load %arg9[%c2_73, %c0_74, %c0_75] : memref<3x384x256xbf16, #tpu.memory_space<vmem>>, vector<1x384x256xbf16>
    %80 = vector.shape_cast %79 : vector<1x384x256xbf16> to vector<384x256xbf16>
    %cst_76 = arith.constant dense<0.000000e+00> : vector<2x256xf32>
    %81 = tpu.matmul %78, %80, %cst_76 {dimension_numbers = #tpu.dot_dimension_numbers<[1], [0], [0], [1], [0, 0, 1, 1], [], []>} : vector<2x384xbf16>, vector<384x256xbf16>, vector<2x256xf32> -> vector<2x256xf32>
    %82 = arith.addf %74, %81 : vector<2x256xf32>
    %c0_77 = arith.constant 0 : index
    %c0_78 = arith.constant 0 : index
    %83 = vector.load %arg10[%c0_77, %c0_78] : memref<1x256xf32, #tpu.memory_space<vmem>>, vector<1x256xf32>
    %84 = vector.broadcast %83 : vector<1x256xf32> to vector<2x256xf32>
    %85 = arith.addf %82, %84 : vector<2x256xf32>
    %cst_79 = arith.constant 0.000000e+00 : f32
    %86 = vector.broadcast %cst_79 : f32 to vector<2x256xf32>
    %87 = arith.maximumf %85, %86 : vector<2x256xf32>
    %88 = arith.truncf %87 : vector<2x256xf32> to vector<2x256xbf16>
    %89 = vector.extract_strided_slice %88 {offsets = [0, 0], sizes = [1, 256], strides = [1, 1]} : vector<2x256xbf16> to vector<1x256xbf16>
    %c0_80 = arith.constant 0 : index
    %c0_81 = arith.constant 0 : index
    %c0_82 = arith.constant 0 : index
    %90 = vector.load %arg11[%c0_80, %c0_81, %c0_82] : memref<2x256x512xbf16, #tpu.memory_space<vmem>>, vector<1x256x512xbf16>
    %91 = vector.shape_cast %90 : vector<1x256x512xbf16> to vector<256x512xbf16>
    %cst_83 = arith.constant dense<0.000000e+00> : vector<1x512xf32>
    %92 = tpu.matmul %89, %91, %cst_83 {dimension_numbers = #tpu.dot_dimension_numbers<[1], [0], [0], [1], [0, 0, 1, 1], [], []>} : vector<1x256xbf16>, vector<256x512xbf16>, vector<1x512xf32> -> vector<1x512xf32>
    %93 = vector.extract_strided_slice %88 {offsets = [1, 0], sizes = [1, 256], strides = [1, 1]} : vector<2x256xbf16> to vector<1x256xbf16>
    %c1_84 = arith.constant 1 : index
    %c0_85 = arith.constant 0 : index
    %c0_86 = arith.constant 0 : index
    %94 = vector.load %arg11[%c1_84, %c0_85, %c0_86] : memref<2x256x512xbf16, #tpu.memory_space<vmem>>, vector<1x256x512xbf16>
    %95 = vector.shape_cast %94 : vector<1x256x512xbf16> to vector<256x512xbf16>
    %cst_87 = arith.constant dense<0.000000e+00> : vector<1x512xf32>
    %96 = tpu.matmul %93, %95, %cst_87 {dimension_numbers = #tpu.dot_dimension_numbers<[1], [0], [0], [1], [0, 0, 1, 1], [], []>} : vector<1x256xbf16>, vector<256x512xbf16>, vector<1x512xf32> -> vector<1x512xf32>
    %97 = arith.addf %92, %96 : vector<1x512xf32>
    %c0_88 = arith.constant 0 : index
    %c0_89 = arith.constant 0 : index
    %98 = vector.load %arg12[%c0_88, %c0_89] : memref<1x512xf32, #tpu.memory_space<vmem>>, vector<1x512xf32>
    %99 = arith.addf %97, %98 : vector<1x512xf32>
    %cst_90 = arith.constant 0.000000e+00 : f32
    %100 = vector.broadcast %cst_90 : f32 to vector<1x512xf32>
    %101 = arith.maximumf %99, %100 : vector<1x512xf32>
    %102 = arith.truncf %101 : vector<1x512xf32> to vector<1x512xbf16>
    %c0_91 = arith.constant 0 : index
    %c0_92 = arith.constant 0 : index
    %103 = vector.load %arg13[%c0_91, %c0_92] : memref<512x128xbf16, #tpu.memory_space<vmem>>, vector<512x128xbf16>
    %cst_93 = arith.constant dense<0.000000e+00> : vector<1x128xf32>
    %104 = tpu.matmul %102, %103, %cst_93 {dimension_numbers = #tpu.dot_dimension_numbers<[1], [0], [0], [1], [0, 0, 1, 1], [], []>} : vector<1x512xbf16>, vector<512x128xbf16>, vector<1x128xf32> -> vector<1x128xf32>
    %c0_94 = arith.constant 0 : index
    %c0_95 = arith.constant 0 : index
    %105 = vector.load %arg14[%c0_94, %c0_95] : memref<1x128xf32, #tpu.memory_space<vmem>>, vector<1x128xf32>
    %106 = arith.addf %104, %105 : vector<1x128xf32>
    %c0_96 = arith.constant 0 : index
    %c0_97 = arith.constant 0 : index
    %c0_98 = arith.constant 0 : index
    %107 = vector.load %arg15[%c0_96, %c0_97, %c0_98] : memref<1x1x128xf32, #tpu.memory_space<vmem>>, vector<1x1x128xf32>
    %108 = vector.shape_cast %107 : vector<1x1x128xf32> to vector<1x128xf32>
    %109 = vector.shape_cast %106 : vector<1x128xf32> to vector<1x1x128xf32>
    tpu.vector_store %arg15[%c0_96, %c0_97, %c0_98], %109 {strides = array<i32>} : memref<1x1x128xf32, #tpu.memory_space<vmem>>, vector<1x1x128xf32>,
    return
  }
  func.func @transform_0(%arg0: i32) -> (i32, i32, i32) {
    %c0_i32 = arith.constant 0 : i32
    %c0_i32_0 = arith.constant 0 : i32
    %c0_i32_1 = arith.constant 0 : i32
    return %arg0, %c0_i32, %c0_i32_0 : i32, i32, i32
  }
  func.func @transform_1(%arg0: i32) -> (i32, i32, i32) {
    %c0_i32 = arith.constant 0 : i32
    %c0_i32_0 = arith.constant 0 : i32
    %c0_i32_1 = arith.constant 0 : i32
    %c0_i32_2 = arith.constant 0 : i32
    return %c0_i32, %c0_i32_0, %c0_i32_1 : i32, i32, i32
  }
  func.func @transform_2(%arg0: i32) -> (i32, i32, i32) {
    %c0_i32 = arith.constant 0 : i32
    %c0_i32_0 = arith.constant 0 : i32
    %c0_i32_1 = arith.constant 0 : i32
    %c0_i32_2 = arith.constant 0 : i32
    return %c0_i32, %c0_i32_0, %c0_i32_1 : i32, i32, i32
  }
  func.func @transform_3(%arg0: i32) -> (i32, i32) {
    %c0_i32 = arith.constant 0 : i32
    %c0_i32_0 = arith.constant 0 : i32
    %c0_i32_1 = arith.constant 0 : i32
    return %c0_i32, %c0_i32_0 : i32, i32
  }
  func.func @transform_4(%arg0: i32) -> (i32, i32, i32) {
    %c0_i32 = arith.constant 0 : i32
    %c0_i32_0 = arith.constant 0 : i32
    %c0_i32_1 = arith.constant 0 : i32
    %c0_i32_2 = arith.constant 0 : i32
    return %c0_i32, %c0_i32_0, %c0_i32_1 : i32, i32, i32
  }
  func.func @transform_5(%arg0: i32) -> (i32, i32, i32) {
    %c0_i32 = arith.constant 0 : i32
    %c0_i32_0 = arith.constant 0 : i32
    %c0_i32_1 = arith.constant 0 : i32
    %c0_i32_2 = arith.constant 0 : i32
    return %c0_i32, %c0_i32_0, %c0_i32_1 : i32, i32, i32
  }
  func.func @transform_6(%arg0: i32) -> (i32, i32) {
    %c0_i32 = arith.constant 0 : i32
    %c0_i32_0 = arith.constant 0 : i32
    %c0_i32_1 = arith.constant 0 : i32
    return %c0_i32, %c0_i32_0 : i32, i32
  }
  func.func @transform_7(%arg0: i32) -> (i32, i32, i32) {
    %c0_i32 = arith.constant 0 : i32
    %c0_i32_0 = arith.constant 0 : i32
    %c0_i32_1 = arith.constant 0 : i32
    %c0_i32_2 = arith.constant 0 : i32
    return %c0_i32, %c0_i32_0, %c0_i32_1 : i32, i32, i32
  }
  func.func @transform_8(%arg0: i32) -> (i32, i32, i32) {
    %c0_i32 = arith.constant 0 : i32
    %c0_i32_0 = arith.constant 0 : i32
    %c0_i32_1 = arith.constant 0 : i32
    %c0_i32_2 = arith.constant 0 : i32
    return %c0_i32, %c0_i32_0, %c0_i32_1 : i32, i32, i32
  }
  func.func @transform_9(%arg0: i32) -> (i32, i32) {
    %c0_i32 = arith.constant 0 : i32
    %c0_i32_0 = arith.constant 0 : i32
    %c0_i32_1 = arith.constant 0 : i32
    return %c0_i32, %c0_i32_0 : i32, i32
  }
  func.func @transform_10(%arg0: i32) -> (i32, i32, i32) {
    %c0_i32 = arith.constant 0 : i32
    %c0_i32_0 = arith.constant 0 : i32
    %c0_i32_1 = arith.constant 0 : i32
    %c0_i32_2 = arith.constant 0 : i32
    return %c0_i32, %c0_i32_0, %c0_i32_1 : i32, i32, i32
  }
  func.func @transform_11(%arg0: i32) -> (i32, i32) {
    %c0_i32 = arith.constant 0 : i32
    %c0_i32_0 = arith.constant 0 : i32
    %c0_i32_1 = arith.constant 0 : i32
    return %c0_i32, %c0_i32_0 : i32, i32
  }
  func.func @transform_12(%arg0: i32) -> (i32, i32) {
    %c0_i32 = arith.constant 0 : i32
    %c0_i32_0 = arith.constant 0 : i32
    %c0_i32_1 = arith.constant 0 : i32
    return %c0_i32, %c0_i32_0 : i32, i32
  }
  func.func @transform_13(%arg0: i32) -> (i32, i32) {
    %c0_i32 = arith.constant 0 : i32
    %c0_i32_0 = arith.constant 0 : i32
    %c0_i32_1 = arith.constant 0 : i32
    return %c0_i32, %c0_i32_0 : i32, i32
  }
  func.func @transform_14(%arg0: i32) -> (i32, i32, i32) {
    %c0_i32 = arith.constant 0 : i32
    %c0_i32_0 = arith.constant 0 : i32
    %c0_i32_1 = arith.constant 0 : i32
    return %arg0, %c0_i32, %c0_i32_0 : i32, i32, i32
  }
}

</mosaic_0001>

<bundles_post_ra>
// kernel: _cnn_forward_padded.1
= control target key start
LH: loop header
LB: loop body
LE: loop exit
PB: predicated region body
PF: predicated region fallthrough
CT: control target
= control target key end

     0   :  { %s8862_s0 = inlined_call_operand.vmem [shape: bf16[2,28,28], index: 0, kind: input, shape index: {}]   ;;  %s8863_s1 = inlined_call_operand.vmem [shape: bf16[3,13,28], index: 1, kind: input, shape index: {}]   ;;  %s8864_s2 = inlined_call_operand.hbm [shape: bf16[3,28,416], index: 2, kind: input, shape index: {}]   ;;  %s8865_s3 = inlined_call_operand.vmem [shape: f32[1,416], index: 3, kind: input, shape index: {}]   ;;  %s8866_s4 = inlined_call_operand.vmem [shape: bf16[3,6,13], index: 4, kind: input, shape index: {}]   ;;  %s8867_s5 = inlined_call_operand.hbm [shape: bf16[3,416,384], index: 5, kind: input, shape index: {}]   ;;  %s8868_s6 = inlined_call_operand.vmem [shape: f32[1,384], index: 6, kind: input, shape index: {}]   ;;  %s8869_s7 = inlined_call_operand.vmem [shape: bf16[3,2,6], index: 7, kind: input, shape index: {}]   ;;  %s8870_s8 = inlined_call_operand.hbm [shape: bf16[3,384,256], index: 8, kind: input, shape index: {}]   ;;  %s8871_s9 = inlined_call_operand.vmem [shape: f32[1,256], index: 9, kind: input, shape index: {}]   ;;  %s8872_s10 = inlined_call_operand.hbm [shape: bf16[2,256,512], index: 10, kind: input, shape index: {}]   ;;  %s8873_s11 = inlined_call_operand.vmem [shape: f32[1,512], index: 11, kind: input, shape index: {}]   ;;  %s8874_s12 = inlined_call_operand.hbm [shape: bf16[512,128], index: 12, kind: input, shape index: {}]   ;;  %s8875_s13 = inlined_call_operand.vmem [shape: f32[1,128], index: 13, kind: input, shape index: {}]   ;;  %s8876_s14 = inlined_call_operand.hbm [shape: f32[2,1,128], index: 14, kind: output, shape index: {}]  }
   0x1   :  { %8885 = sst [smem:[#allocation22_spill]] %s8876_s14 }
   0x2   :  { %19 = vsyncpa [#allocation3], 0 }
   0x3   :  { %20 = vsyncpa [#allocation6], 0 }
   0x4   :  { %21 = vsyncpa [#allocation9], 0 }
   0x5   :  { %22 = vsyncpa [#allocation4], 0 }
   0x6   :  { %24 = vsyncpa [#allocation4 + $0x1], 0  ;;  %s8410_s29 = smov 0   ;;  %s8412_s30 = smov 0  }
   0x7   :  { %s8414_s15 = smov 0   ;;  %s8416_s16 = smov 0  }
   0x8 LB: > { %8886 = sst [smem:[#allocation16_spill]] %s8303_s29  ;;  %s8431_s17 = sadd.s32 4294967295, %s8315_s16   ;;  %s8315_s16 = sphi %s8416_s16, %s8908_s16   ;;  %s8311_s15 = sphi %s8414_s15, %s8913_s15   ;;  %s8307_s30 = sphi %s8412_s30, %s8912_s30   ;;  %s8303_s29 = sphi %s8410_s29, %s8911_s29  }
   0x9   : > { %8887 = sst [smem:[#allocation17_spill]] %s8311_s15  ;;  %s6419_s18 = sadd.s32 4294967294, %s8315_s16  }
   0xa   : > { %8888 = sst [smem:[#allocation18_spill]] %s8315_s16  ;;  %s8435_s19 = sadd.s32 1, %s8315_s16  }
   0xb   : > { %8889 = sst [smem:[#allocation19_spill]] %s8435_s19  ;;  %s336_s20 = sadd.s32 1, %s8311_s15 }
   0xc   : > { %s333_s21 = ssub.s32 %s8315_s16, %s8435_s19  ;;  %p346_p0 = scmp.ne.s32.totalorder %s8311_s15, %s8307_s30 }
   0xd   : > { %p334_p1 = scmp.eq.s32.totalorder %s333_s21, 0  ;;  %p347_p2 = scmp.eq.s32.totalorder %s8431_s17, 1 }
   0xe   : > { %p352_p3 = scmp.ne.s32.totalorder %s8307_s30, %s8303_s29  ;;  %p353_p4 = scmp.eq.s32.totalorder %s6419_s18, 1 }
   0xf   : > { %s8446_s22 = scalar_select %p334_p1, %s8311_s15, %s336_s20  }
  0x10   : > { %p8448_p5 = por %p347_p2, %p346_p0  ;;  %p8452_p6 = por %p353_p4, %p352_p3 }
  0x11   : > { %8890 = sst [smem:[#allocation20_spill]] %s8446_s22  ;;  %p6420_p7 = scmp.ge.s32.totalorder %s8315_s16, 1 }
  0x12   : > { %s8892_s24 = scalar_select %p8452_p6, 1, 0 }
  0x13   : > { %p360_p8 = scmp.lt.s32.totalorder %s8315_s16, 3  ;;  %p8884_p9 = scmp.eq.s32.totalorder %s8431_s17, 0 }
  0x14   : > { %8893 = sst [smem:[#allocation21_spill]] %s8892_s24  ;;  %s8317_s26 = smov [#allocation5]  }
  0x15   : > { %p8459_p10 = pnand %p6420_p7, %p360_p8  ;;  %s394_s27 = sshll.u32 %s8317_s26, 4  ;;  %s395_s27 = int_to_ptr.vmem [resolvable:$true] %s394_s27 }
  0x16   : > { %s8318_s18 = smov [#allocation8]   ;;  %s8124_s22 = scalar_lea.vmem %s395_s27, 29952 }
  0x17   : > { %p7239_p11 = pneg %p8459_p10  ;;  %s429_s20 = sshll.u32 %s8318_s18, 4  ;;  %s430_s20 = int_to_ptr.vmem [resolvable:$true] %s429_s20 }
  0x18   : > { %p8125_p0 = scmp.ne.s32.totalorder %s395_s27, %s8124_s22  ;;  %p8132_p3 = scmp.lt.s32.totalorder %s395_s27, %s395_s27 }
  0x19   : > { %p8467_p12 = pnand %p8884_p9, %p7239_p11  ;;  %p8133_p4 = scmp.lt.s32.totalorder %s8124_s22, %s8124_s22 }
  0x1b   : > { %p8473_p13 = pneg %p8467_p12  ;;  %p8134_p7 = por %p8133_p4, %p8132_p3 }
  0x1d   : > { %p8127_p1 = pnand %p8125_p0, %p8473_p13 }
  0x1f   : > { %p8128_p2 = pneg %p8127_p1 }
  0x21   : > { %p8135_p8 = pnand %p8134_p7, %p8128_p2 }
  0x23   : > { %8138 = shalt.err (!%p8135_p8)
}
  0x24   : > { %s8319_s26 = smov 192   ;;  %s8320_s18 = smov 12  }
  0x25   : > { %7245 = dma.hbm_to_vmem [thread:$0]  (!%p8467_p12), %s8867_s5, 29952, %s395_s27, [#allocation6], %s8319_s26, %s8319_s26, %s8320_s18  }
  0x26   : > { %s8321_s24 = smov [#allocation2]   ;;  %s8150_s16 = scalar_lea.vmem %s430_s20, 16384 }
  0x27   : > { %s375_s29 = sshll.u32 %s8321_s24, 4  ;;  %p8151_p11 = scmp.ne.s32.totalorder %s430_s20, %s8150_s16  ;;  %s376_s29 = int_to_ptr.vmem [resolvable:$true] %s375_s29 }
  0x28   : > { %p8158_p3 = scmp.lt.s32.totalorder %s430_s20, %s430_s20  ;;  %p8159_p2 = scmp.lt.s32.totalorder %s8150_s16, %s8150_s16 }
  0x29   : > { %p8153_p0 = pnand %p8151_p11, %p8473_p13 }
  0x2a   : > { %p8160_p4 = por %p8159_p2, %p8158_p3 }
  0x2b   : > { %p8154_p1 = pneg %p8153_p0 }
  0x2d   : > { %p8161_p7 = pnand %p8160_p4, %p8154_p1 }
  0x2f   : > { %8164 = shalt.err (!%p8161_p7)
}
  0x30   : > { %s8322_s22 = smov 256   ;;  %s8323_s14 = smov 16  }
  0x31   : > { %7251 = dma.hbm_to_vmem [thread:$0]  (!%p8467_p12), %s8872_s10, 16384, %s430_s20, [#allocation9], %s8322_s22, %s8322_s22, %s8323_s14  }
  0x32   : > { %s8176_s24 = scalar_lea.vmem %s376_s29, 3072  ;;  %p8184_p9 = scmp.lt.s32.totalorder %s376_s29, %s376_s29 }
  0x33   : > { %p8177_p8 = scmp.ne.s32.totalorder %s376_s29, %s8176_s24  ;;  %p8185_p6 = scmp.lt.s32.totalorder %s8176_s24, %s8176_s24 }
  0x35   : > { %p8179_p11 = pnand %p8177_p8, %p8473_p13  ;;  %p8186_p3 = por %p8185_p6, %p8184_p9 }
  0x37   : > { %p8180_p0 = pneg %p8179_p11 }
  0x39   : > { %p8187_p1 = pnand %p8186_p3, %p8180_p0 }
  0x3b   : > { %8190 = shalt.err (!%p8187_p1)
}
  0x3c   : > { %7242 = dma.hbm_to_vmem [thread:$0]  (!%p8467_p12), %s8864_s2, 3072, %s376_s29, [#allocation3], %s8322_s22, %s8322_s22, %s8323_s14  }
  0x3d   : > { %s8324_s26 = smov [#allocation7]  }
  0x3e   : > { %s413_s20 = sshll.u32 %s8324_s26, 4  ;;  %s414_s20 = int_to_ptr.vmem [resolvable:$true] %s413_s20 }
  0x3f   : > { %s8202_s18 = scalar_lea.vmem %s414_s20, 18432  ;;  %p8210_p8 = scmp.lt.s32.totalorder %s414_s20, %s414_s20 }
  0x40   : > { %p8203_p2 = scmp.ne.s32.totalorder %s414_s20, %s8202_s18  ;;  %p8211_p11 = scmp.lt.s32.totalorder %s8202_s18, %s8202_s18 }
  0x42   : > { %p8205_p4 = pnand %p8203_p2, %p8473_p13  ;;  %p8212_p6 = por %p8211_p11, %p8210_p8 }
  0x44   : > { %p8206_p7 = pneg %p8205_p4 }
  0x46   : > { %p8213_p9 = pnand %p8212_p6, %p8206_p7 }
  0x48   : > { %8216 = shalt.err (!%p8213_p9)
}
  0x49   : > { %s8325_s15 = smov 128   ;;  %s8326_s19 = smov 8  }
  0x4a   : > { %7248 = dma.hbm_to_vmem [thread:$0]  (!%p8467_p12), %s8870_s8, 18432, %s414_s20, [#allocation6], %s8325_s15, %s8325_s15, %s8326_s19  }
  0x4b   : > { %s8327_s29 = smov [#allocation10]  }
  0x4c   : > { %s445_s22 = sshll.u32 %s8327_s29, 4  ;;  %s446_s22 = int_to_ptr.vmem [resolvable:$true] %s445_s22 }
  0x4d   : > { %s8228_s16 = scalar_lea.vmem %s446_s22, 4096  ;;  %p8236_p2 = scmp.lt.s32.totalorder %s446_s22, %s446_s22 }
  0x4e   : > { %p8229_p0 = scmp.ne.s32.totalorder %s446_s22, %s8228_s16  ;;  %p8237_p4 = scmp.lt.s32.totalorder %s8228_s16, %s8228_s16 }
  0x50   : > { %p8231_p3 = pnand %p8229_p0, %p8473_p13  ;;  %p8238_p7 = por %p8237_p4, %p8236_p2 }
  0x52   : > { %p8232_p1 = pneg %p8231_p3 }
  0x54   : > { %p8239_p8 = pnand %p8238_p7, %p8232_p1 }
  0x56   : > { %8242 = shalt.err (!%p8239_p8)
}
  0x57   : > { %s8328_s27 = smov 64   ;;  %s8329_s26 = smov 4  }
  0x58   : > { %7254 = dma.hbm_to_vmem [thread:$0]  (!%p8467_p12), %s8874_s12, 4096, %s446_s22, [#allocation9], %s8328_s27, %s8328_s27, %s8329_s26  }
  0x59   : > { %472 = sbr.rel (%p8459_p10) target bundleno = 2710 (0xa96), region = 76  ;;  %p8897_p11 = scmp.eq.s32.totalorder (!%p8459_p10), %s8431_s17, 0 }
  0x5e   : > { %8286 = dma.done.wait (%p8897_p11), [#allocation3], 3072   ;;  %p8898_p13 = pmov %p8897_p11 }
  0x5f   : > { %p8899_p6 = pmov %p8897_p11 }
  0x60   : > { %8288 = vsyncadd (%p8898_p13), [#allocation3], 4294964224 }
  0x61   : > { %8290 = dma.done.wait (%p8899_p6), [#allocation6], 48384   ;;  %p8900_p9 = pmov %p8899_p6 }
  0x62   : > { %p8901_p0 = pmov %p8899_p6 }
  0x63   : > { %8292 = vsyncadd (%p8900_p9), [#allocation6], 4294918912 }
  0x64   : > { %8294 = dma.done.wait (%p8901_p0), [#allocation9], 20480   ;;  %p8902_p12 = pmov %p8901_p0 }
  0x65   : > { %p533_p10 = scmp.lt.s32.totalorder %s8431_s17, 1  ;;  %v8330_v0 = vmov 0.0   ;;  %vm8331_vm0 = vmmov 0   ;;  %vm565_vm1 = vcmask 1045504   ;;  %v7321_v4 = vld [vmem:[%s8863_s1] sm:$0x7f]  }
  0x66   : > { %8296 = vsyncadd (%p8902_p12), [#allocation9], 4294946816  ;;  %7175 = vmatprep.subr.bf16.mxu0 %v8330_v0  ;;  %7179 = vmatprep.mubr.msk.bf16.mxu0 %vm8331_vm0, %v8330_v0  ;;  %vm561_vm2 = vcmask 228352   ;;  %v7322_v5 = vld [vmem:[%s8863_s1 + $0x8] sm:$0x7f]   ;;  %v8332_v17 = vmov 0  }
  0x67   : > { %s534_s25 = scalar_select %p533_p10, %s8431_s17, 1  ;;  %v7323_v6 = vld [vmem:[#allocation2 + $0x64] ss:$16 sps:$4 sm:$0x3f]   ;;  %v7332_v13 = vld [vmem:[#allocation2 + $0x4c] ss:$16 sps:$4 sm:$0xff]   ;;  %807 = vmatprep.mubr.bf16.mxu1 %v8332_v17 }
  0x68   : > { %v7325_v7 = vld [vmem:[#allocation2 + $0x6c] ss:$16 sps:$4 sm:$0x3f]   ;;  %v7327_v8 = vld [vmem:[#allocation2 + $0x60] ss:$16 sps:$4 sm:$0x3f]  }
  0x69   : > { %s7049_s28 = sshll.u32 %s534_s25, 4  ;;  %v7328_v9 = vld [vmem:[#allocation2 + $0x68] ss:$16 sps:$4 sm:$0x3f]   ;;  %6453 = vmatprep.subr.msk.bf16.mxu1 %vm565_vm1, %v7325_v7  ;;  %v721_v10 = vsel %vm565_vm1, %v7327_v8, 0  ;;  %vm1209_vm3 = vcmask 1046528  }
  0x6a   : > { %s8534_s15 = scalar_lea.vmem %s8862_s0, %s7049_s28  ;;  %v727_v11 = vsel %vm565_vm1, %v7328_v9, 0  ;;  %v7331_v12 = vld [vmem:[#allocation2 + $0x44] ss:$16 sps:$4 sm:$0xff]   ;;  %v7329_v14 = vld [vmem:[#allocation2 + $0x40] ss:$16 sps:$4 sm:$0xff]   ;;  %v1164_v9 = vlaneseq  ;;  %vm1205_vm4 = vcmask 105472  }
  0x6b   : > { %v7319_v1 = vld [vmem:[%s8534_s15 + $0x8] sm:$0x3f]   ;;  %v7320_v3 = vld [vmem:[%s8534_s15] sm:$0xff]   ;;  %788 = vmatpush1.bf16.msra.mxu1 %v727_v11  ;;  %v7347_v37 = vld [vmem:[%s8863_s1 + $0x10] sm:$0x7f]   ;;  %vm2026_vm5 = vcmask 261120  }
  0x6c   : > { %v8538_v2 = vsel %vm565_vm1, %v7319_v1, 0  ;;  %v7334_v15 = vld [vmem:[#allocation2 + $0x48] ss:$16 sps:$4 sm:$0xff]   ;;  %789 = vmatprep.subr.bf16.mxu1 %v7332_v13  ;;  %v7335_v16 = vld [vmem:[#allocation2 + $0x24] ss:$16 sps:$4 sm:$0x3f]  }
  0x6d   : > { %7176 = vmatpush3.bf16.msra.mxu0 %v8538_v2  ;;  %v7337_v18 = vld [vmem:[#allocation2 + $0x2c] ss:$16 sps:$4 sm:$0x3f]   ;;  %v7339_v22 = vld [vmem:[#allocation2 + $0x20] ss:$16 sps:$4 sm:$0x3f]  }
  0x6e   : > { %7177 = vmatprep.subr.bf16.mxu0 %v8330_v0  ;;  %v7340_v24 = vld [vmem:[#allocation2 + $0x28] ss:$16 sps:$4 sm:$0x3f]   ;;  %v858_v27 = vsel %vm565_vm1, %v7339_v22, 0  ;;  %v7343_v28 = vld [vmem:[#allocation2 + $0x4] ss:$16 sps:$4 sm:$0xff]  }
  0x6f   : > { %790 = vmatpush1.bf16.msra.mxu1 %v7334_v15  ;;  %v7346_v29 = vld [vmem:[#allocation2 + $0xc] ss:$16 sps:$4 sm:$0xff]   ;;  %v864_v31 = vsel %vm565_vm1, %v7340_v24, 0  ;;  %v7341_v34 = vld [vmem:[#allocation2] ss:$16 sps:$4 sm:$0xff]   ;;  %v8592_v11 = vshrl.u32 %v1164_v9, 7 }
  0x70   : > { %6465 = vmatprep.subr.msk.bf16.mxu1 %vm565_vm1, %v7337_v18  ;;  %v7344_v35 = vld [vmem:[#allocation2 + $0x8] ss:$16 sps:$4 sm:$0xff]   ;;  %v8112_v38 = vld [vmem:[%s8534_s15] sm:$0xff]   ;;  %v7350_v40 = vld [vmem:[#allocation2 + $0xac] ss:$16 sps:$4 sm:$0x3f]  }
  0x71   : > { %7178 = vmatpush3.bf16.msra.mxu0 %v7320_v3  ;;  %v7348_v39 = vld [vmem:[#allocation2 + $0xa4] ss:$16 sps:$4 sm:$0x3f]   ;;  %v7352_v41 = vld [vmem:[#allocation2 + $0xa0] ss:$16 sps:$4 sm:$0x3f]  }
  0x72   : > { %7183 = vmatprep.subr.bf16.mxu0 %v8330_v0  ;;  %v7353_v42 = vld [vmem:[#allocation2 + $0xa8] ss:$16 sps:$4 sm:$0x3f]   ;;  %v1057_v43 = vsel %vm565_vm1, %v7352_v41, 0  ;;  %v7356_v45 = vld [vmem:[#allocation2 + $0x84] ss:$16 sps:$4 sm:$0xff]  }
  0x73   : > { %v1063_v44 = vsel %vm565_vm1, %v7353_v42, 0  ;;  %v7359_v46 = vld [vmem:[#allocation2 + $0x8c] ss:$16 sps:$4 sm:$0xff]   ;;  %v7354_v47 = vld [vmem:[#allocation2 + $0x80] ss:$16 sps:$4 sm:$0xff]   ;;  %v8595_v13 = vsub.s32 0, %v8592_v11 }
  0x74   : > { %7180 = vmatmul.mubr.msk.bf16.vlgmr.msra.gmra.mxu0 %vm561_vm2, %v7321_v4  ;;  %v7357_v48 = vld [vmem:[#allocation2 + $0x88] ss:$16 sps:$4 sm:$0xff]   ;;  %v1162_v15 = vld [vmem:[%s8865_s3] sm:$0xf]  ;;  %v1178_v18 = vsub.s32 3, %v8592_v11  ;;  %vm3584_vm6 = vcmask 1042432  }
  0x75   : > { %7184 = vmatpush3.bf16.msra.mxu0 %v8538_v2  ;;  %7187 = vmatprep.mubr.msk.bf16.mxu0 %vm8331_vm0, %v8330_v0  ;;  %v1167_v24 = vrot.slane %v1162_v15, %v8595_v13  ;;  %v7383_v9 = vld [vmem:[#allocation5 + $0x49c] ss:$12 sps:$4 sm:$0xff]   ;;  %vm3580_vm7 = vcmask 48128   ;;  %s531_s20 = sand.u32 1, %s8307_s30   ;;  %s7046_s14 = sshll.u32 %s8431_s17, 4 }
  0x76   : > { %7185 = vmatprep.subr.bf16.mxu0 %v8330_v0  ;;  %s532_s29 = scalar_lea.vmem [#allocation11], %s531_s20  ;;  %s8903_s26 = sld [smem:[#allocation22_spill]] }
  0x77   : > { %s6314_s22 = sshll.u32 %s532_s29, 4  ;;  %s6302_s24 = scalar_lea.sflag [#allocation4], %s531_s20  ;;  %s6315_s22 = int_to_ptr.vmem [resolvable:$true] %s6314_s22 }
  0x78   : > { %s8243_s25 = scalar_lea.vmem %s6315_s22, 16  ;;  %s8334_s17 = smov [#allocation11]  }
  0x79   : > { %7186 = vmatpush3.bf16.msra.mxu0 %v7320_v3  ;;  %p8244_p3 = scmp.ne.s32.totalorder %s6315_s22, %s8243_s25  ;;  %s8247_s28 = sshll.u32 %s8334_s17, 4  ;;  %s8248_s28 = int_to_ptr.vmem [resolvable:$false] %s8247_s28 }
  0x7a   : > { %6451 = vmatprep.subr.msk.bf16.mxu0 %vm565_vm1, %v7323_v6  ;;  %s8249_s21 = scalar_lea.vmem %s8248_s28, 32  ;;  %p8250_p4 = scmp.lt.s32.totalorder %s6315_s22, %s8248_s28 }
  0x7b   : > { %p8245_p1 = pnand %p8244_p3, %p8448_p5  ;;  %p8251_p7 = scmp.lt.s32.totalorder %s8249_s21, %s8243_s25 }
  0x7c   : > { %7188 = vmatmul.mubr.msk.bf16.vlgmr.msra.gmra.mxu0 %vm561_vm2, %v7322_v5  ;;  %s6312_s18 = scalar_lea.hbm %s8903_s26, %s7046_s14 }
  0x7d   : > { %745 = vmatpush1.bf16.msra.mxu0 %v721_v10  ;;  %764 = vmatprep.mubr.bf16.mxu0 %v8332_v17  ;;  %p8246_p2 = pneg %p8245_p1  ;;  %p8252_p8 = por %p8251_p7, %p8250_p4 }
  0x7e   : > { %746 = vmatprep.subr.bf16.mxu0 %v7331_v12 }
  0x7f   : > { %p8253_p11 = pnand %p8252_p8, %p8246_p2 }
  0x81   : > { %747 = vmatpush1.bf16.msra.mxu0 %v7329_v14  ;;  %v8598_v14 = vsub.s32 2, %v8592_v11 }
  0x82   : > { %6463 = vmatprep.subr.msk.bf16.mxu0 %vm565_vm1, %v7335_v16  ;;  %v8604_v16 = vsub.s32 1, %v8592_v11 }
 0x134   : > { %v603_v19 = vpop.f32.mrf.mxu0 }
 0x136   : > { %v7181_v20 = vpop.f32.mrf.mxu0 }
 0x138   : > { %v606_v21 = vpop.f32.mrf.mxu0 }
 0x139   : > { %v610_v36 = vpack.c.bf16 %v606_v21, %v603_v19 }
 0x13a   : > { %v7182_v23 = vpop.f32.mrf.mxu0 }
 0x13c   : > { %v664_v25 = vpop.f32.mrf.mxu0 }
 0x13e   : > { %v7189_v26 = vpop.f32.mrf.mxu0 }
 0x13f   : > { %v1175_v26 = vrot.slane %v1162_v15, %v8598_v14 }
 0x140   : > { %v667_v30 = vpop.f32.mrf.mxu0 }
 0x141   : > { %v671_v32 = vpack.c.bf16 %v667_v30, %v664_v25  ;;  %v1171_v30 = vrot.slane %v1162_v15, %v8604_v16 }
 0x142   : > { %v7190_v33 = vpop.f32.mrf.mxu0 }
 0x143   : > { %6452 = vmatmul.mubr.msk.bf16.vlgmr.msra.gmra.mxu0 %vm561_vm2, %v671_v32  ;;  %6454 = vmatmul.mubr.msk.bf16.vlgmr.msra.gmra.mxu1 %vm561_vm2, %v671_v32  ;;  %v1179_v32 = vrot.slane %v1162_v15, %v1178_v18  ;;  %v7381_v15 = vld [vmem:[#allocation5 + $0x498] ss:$12 sps:$4 sm:$0xff]  }
 0x144   : > { %882 = vmatpush1.bf16.msra.mxu0 %v858_v27  ;;  %925 = vmatpush1.bf16.msra.mxu1 %v864_v31 }
 0x145   : > { %883 = vmatprep.subr.bf16.mxu0 %v7343_v28  ;;  %926 = vmatprep.subr.bf16.mxu1 %v7346_v29 }
 0x146   : > { %901 = vmatprep.mubr.bf16.mxu0 %v8332_v17  ;;  %944 = vmatprep.mubr.bf16.mxu1 %v8332_v17 }
 0x148   : > { %884 = vmatpush1.bf16.msra.mxu0 %v7341_v34  ;;  %927 = vmatpush1.bf16.msra.mxu1 %v7344_v35 }
 0x149   : > { %7191 = vmatprep.subr.bf16.mxu0 %v8330_v0  ;;  %6479 = vmatprep.subr.msk.bf16.mxu1 %vm565_vm1, %v7348_v39 }
 0x14b   : > { %6464 = vmatmul.mubr.msk.bf16.vlgmr.msra.gmra.mxu0 %vm561_vm2, %v610_v36  ;;  %6466 = vmatmul.mubr.msk.bf16.vlgmr.msra.gmra.mxu1 %vm561_vm2, %v610_v36 }
 0x14c   : > { %7192 = vmatpush3.bf16.msra.mxu0 %v8538_v2  ;;  %7195 = vmatprep.mubr.msk.bf16.mxu0 %vm8331_vm0, %v8330_v0 }
 0x14d   : > { %7193 = vmatprep.subr.bf16.mxu0 %v8330_v0  ;;  %1100 = vmatprep.mubr.bf16.mxu1 %v8332_v17 }
 0x14e   : > { %1081 = vmatpush1.bf16.msra.mxu1 %v1057_v43 }
 0x14f   : > { %1082 = vmatprep.subr.bf16.mxu1 %v7356_v45 }
 0x150   : > { %7194 = vmatpush3.bf16.msra.mxu0 %v8112_v38 }
 0x151   : > { %6481 = vmatprep.subr.msk.bf16.mxu0 %vm565_vm1, %v7350_v40 }
 0x152   : > { %1083 = vmatpush1.bf16.msra.mxu1 %v7354_v47 }
 0x153   : > { %7196 = vmatmul.mubr.msk.bf16.vlgmr.msra.gmra.mxu0 %vm561_vm2, %v7347_v37 }
 0x154   : > { %1143 = vmatprep.mubr.bf16.mxu0 %v8332_v17  ;;  %1124 = vmatpush1.bf16.msra.mxu0 %v1063_v44 }
 0x155   : > { %1125 = vmatprep.subr.bf16.mxu0 %v7359_v46 }
 0x158   : > { %1126 = vmatpush1.bf16.msra.mxu0 %v7357_v48 }
 0x203   : > { %v766_v49 = vpop.f32.mrf.mxu0  ;;  %v809_v3 = vpop.f32.mrf.mxu1 }
 0x205   : > { %v768_v50 = vpop.f32.mrf.mxu0  ;;  %v811_v4 = vpop.f32.mrf.mxu1 }
 0x207   : > { %v770_v51 = vpop.f32.mrf.mxu0  ;;  %v813_v5 = vpop.f32.mrf.mxu1 }
 0x209   : > { %v772_v52 = vpop.f32.mrf.mxu0  ;;  %v815_v6 = vpop.f32.mrf.mxu1 }
 0x20b   : > { %v903_v53 = vpop.f32.mrf.mxu0  ;;  %v946_v7 = vpop.f32.mrf.mxu1 }
 0x20c   : > { %v904_v54 = vadd.f32 %v903_v53, %v766_v49  ;;  %v947_v19 = vadd.f32 %v946_v7, %v809_v3  ;;  %v8333_v49 = vmov 65535   ;;  %v1204_v7 = vld [vmem:[%s8866_s4] sm:$0x7] }
 0x20d   : > { %v905_v55 = vpop.f32.mrf.mxu0  ;;  %v948_v8 = vpop.f32.mrf.mxu1 }
 0x20e   : > { %v906_v56 = vadd.f32 %v905_v55, %v768_v50  ;;  %v949_v22 = vadd.f32 %v948_v8, %v811_v4  ;;  %v1210_v50 = vsel %vm565_vm1, 4294967295, %v8333_v49  ;;  %v7362_v8 = vld [vmem:[#allocation5 + $0x31c] ss:$12 sps:$4 sm:$0xff]   ;;  %v7404_v49 = vld [vmem:[#allocation5 + $0x3ac] ss:$12 sps:$4 sm:$0xff]  }
 0x20f   : > { %v907_v57 = vpop.f32.mrf.mxu0  ;;  %v950_v10 = vpop.f32.mrf.mxu1 }
 0x210   : > { %v908_v58 = vadd.f32 %v907_v57, %v770_v51  ;;  %v951_v33 = vadd.f32 %v950_v10, %v813_v5  ;;  %v6485_v10 = vld [vmem:[%s8866_s4 + $0x4] sm:$0x7] }
 0x211   : > { %v909_v59 = vpop.f32.mrf.mxu0  ;;  %v952_v12 = vpop.f32.mrf.mxu1 }
 0x212   : > { %v910_v60 = vadd.f32 %v909_v59, %v772_v52  ;;  %v953_v36 = vadd.f32 %v952_v12, %v815_v6  ;;  %v7360_v12 = vld [vmem:[#allocation5 + $0x318] ss:$12 sps:$4 sm:$0xff]  }
 0x213   : > { %v1000_v61 = vpop.f32.mrf.mxu0 }
 0x215   : > { %v7197_v62 = vpop.f32.mrf.mxu0 }
 0x217   : > { %v1003_v63 = vpop.f32.mrf.mxu0 }
 0x218   : > { %v1007_v1 = vpack.c.bf16 %v1003_v63, %v1000_v61 }
 0x219   : > { %v7198_v2 = vpop.f32.mrf.mxu0 }
 0x21a   : > { %6480 = vmatmul.mubr.msk.bf16.vlgmr.msra.gmra.mxu1 %vm561_vm2, %v1007_v1  ;;  %6482 = vmatmul.mubr.msk.bf16.vlgmr.msra.gmra.mxu0 %vm561_vm2, %v1007_v1 }
 0x21b   : > { %1256 = vmatprep.mubr.bf16.mxu1 %v8332_v17  ;;  %1297 = vmatprep.mubr.bf16.mxu0 %v8332_v17 }
 0x2da   : > { %v1102_v20 = vpop.f32.mrf.mxu1  ;;  %v1145_v21 = vpop.f32.mrf.mxu0 }
 0x2db   : > { %v1154_v23 = vadd.f32 %v1102_v20, %v904_v54  ;;  %v1156_v25 = vadd.f32 %v1145_v21, %v947_v19  ;;  %v7365_v19 = vld [vmem:[#allocation5 + $0x304] ss:$12 sps:$4 sm:$0xff]   ;;  %v7363_v21 = vld [vmem:[#allocation5 + $0x300] ss:$12 sps:$4 sm:$0xff]  }
 0x2dc   : > { %v1104_v27 = vpop.f32.mrf.mxu1  ;;  %v1147_v28 = vpop.f32.mrf.mxu0  ;;  %v7389_v20 = vld [vmem:[#allocation5 + $0x484] ss:$12 sps:$4 sm:$0xff]  }
 0x2dd   : > { %v1155_v29 = vadd.f32 %v1104_v27, %v906_v56  ;;  %v1157_v31 = vadd.f32 %v1147_v28, %v949_v22  ;;  %v1184_v37 = vadd.f32 %v1167_v24, %v1154_v23  ;;  %v1186_v38 = vadd.f32 %v1175_v26, %v1156_v25  ;;  %v7387_v22 = vld [vmem:[#allocation5 + $0x480] ss:$12 sps:$4 sm:$0xff]   ;;  %v7366_v25 = vld [vmem:[#allocation5 + $0x2e8] ss:$12 sps:$4 sm:$0xff]  }
 0x2de   : > { %v1106_v34 = vpop.f32.mrf.mxu1  ;;  %v1149_v35 = vpop.f32.mrf.mxu0  ;;  %v7368_v23 = vld [vmem:[#allocation5 + $0x2ec] ss:$12 sps:$4 sm:$0xff]   ;;  %v7371_v27 = vld [vmem:[#allocation5 + $0x2d4] ss:$12 sps:$4 sm:$0xff]  }
 0x2df   : > { %v1158_v39 = vadd.f32 %v1106_v34, %v908_v58  ;;  %v1160_v40 = vadd.f32 %v1149_v35, %v951_v33  ;;  %v1185_v43 = vadd.f32 %v1171_v30, %v1155_v29  ;;  %v1187_v44 = vadd.f32 %v1179_v32, %v1157_v31  ;;  %v7401_v28 = vld [vmem:[#allocation5 + $0x454] ss:$12 sps:$4 sm:$0xff]   ;;  %v7369_v29 = vld [vmem:[#allocation5 + $0x2d0] ss:$12 sps:$4 sm:$0xff]   ;;  %v7372_v33 = vld [vmem:[#allocation5 + $0x2b8] ss:$12 sps:$4 sm:$0xff]  }
 0x2e0   : > { %v1108_v41 = vpop.f32.mrf.mxu1  ;;  %v1151_v42 = vpop.f32.mrf.mxu0  ;;  %v1192_v53 = vmax.f32 %v1184_v37, 0.0  ;;  %v1194_v54 = vmax.f32 %v1186_v38, 0.0  ;;  %v7374_v31 = vld [vmem:[#allocation5 + $0x2bc] ss:$12 sps:$4 sm:$0xff]   ;;  %v7405_v34 = vld [vmem:[#allocation5 + $0x438] ss:$12 sps:$4 sm:$0xff]  }
 0x2e1   : > { %v1159_v45 = vadd.f32 %v1108_v41, %v910_v60  ;;  %v1161_v46 = vadd.f32 %v1151_v42, %v953_v36  ;;  %v1188_v47 = vadd.f32 %v1167_v24, %v1158_v39  ;;  %v1190_v48 = vadd.f32 %v1175_v26, %v1160_v40  ;;  %v7395_v24 = vld [vmem:[#allocation5 + $0x46c] ss:$12 sps:$4 sm:$0xff]   ;;  %v7393_v26 = vld [vmem:[#allocation5 + $0x468] ss:$12 sps:$4 sm:$0xff]   ;;  %v7377_v35 = vld [vmem:[#allocation5 + $0x2a4] ss:$12 sps:$4 sm:$0xff]  }
 0x2e2   : > { %v1193_v57 = vmax.f32 %v1185_v43, 0.0  ;;  %v1195_v58 = vmax.f32 %v1187_v44, 0.0  ;;  %v1211_v60 = vsel %vm1209_vm3, %v1210_v50, 0  ;;  %v7413_v36 = vld [vmem:[#allocation5 + $0x424] ss:$12 sps:$4 sm:$0xff]  }
 0x2e3   : > { %v1189_v51 = vadd.f32 %v1171_v30, %v1159_v45  ;;  %v1191_v52 = vadd.f32 %v1179_v32, %v1161_v46  ;;  %v1196_v55 = vmax.f32 %v1188_v47, 0.0  ;;  %v1198_v56 = vmax.f32 %v1190_v48, 0.0  ;;  %v7399_v30 = vld [vmem:[#allocation5 + $0x450] ss:$12 sps:$4 sm:$0xff]   ;;  %v7375_v37 = vld [vmem:[#allocation5 + $0x2a0] ss:$12 sps:$4 sm:$0xff]  }
 0x2e4   : > { %v7407_v32 = vld [vmem:[#allocation5 + $0x43c] ss:$12 sps:$4 sm:$0xff]   ;;  %v7411_v38 = vld [vmem:[#allocation5 + $0x420] ss:$12 sps:$4 sm:$0xff]   ;;  %v7390_v46 = vld [vmem:[#allocation5 + $0x3d8] ss:$12 sps:$4 sm:$0xff]  }
 0x2e5   : > { %v1197_v59 = vmax.f32 %v1189_v51, 0.0  ;;  %v1199_v61 = vmax.f32 %v1191_v52, 0.0  ;;  %v1200_v62 = vpack.c.bf16 %v1196_v55, %v1192_v53  ;;  %v1202_v63 = vpack.c.bf16 %v1198_v56, %v1194_v54  ;;  %v7380_v39 = vld [vmem:[#allocation5 + $0x28c] ss:$12 sps:$4 sm:$0xff]   ;;  %v7378_v41 = vld [vmem:[#allocation5 + $0x288] ss:$12 sps:$4 sm:$0xff]  }
 0x2e6   : > { %v7419_v40 = vld [vmem:[#allocation5 + $0x40c] ss:$12 sps:$4 sm:$0xff]   ;;  %v7417_v42 = vld [vmem:[#allocation5 + $0x408] ss:$12 sps:$4 sm:$0xff]   ;;  %v7384_v44 = vld [vmem:[#allocation5 + $0x270] ss:$12 sps:$4 sm:$0xff]  }
 0x2e7   : > { %v1201_v1 = vpack.c.bf16 %v1197_v59, %v1193_v57  ;;  %v1203_v2 = vpack.c.bf16 %v1199_v61, %v1195_v58  ;;  %v8617_v5 = vand.u32 %v1211_v60, %v1200_v62  ;;  %v8619_v6 = vand.u32 %v1211_v60, %v1202_v63  ;;  %v7386_v43 = vld [vmem:[#allocation5 + $0x274] ss:$12 sps:$4 sm:$0xff]   ;;  %v7392_v45 = vld [vmem:[#allocation5 + $0x3dc] ss:$12 sps:$4 sm:$0xff]   ;;  %v7398_v47 = vld [vmem:[#allocation5 + $0x3c4] ss:$12 sps:$4 sm:$0xff]  }
 0x2e8   : > { %v7396_v48 = vld [vmem:[#allocation5 + $0x3c0] ss:$12 sps:$4 sm:$0xff]   ;;  %v7402_v50 = vld [vmem:[#allocation5 + $0x3a8] ss:$12 sps:$4 sm:$0xff]   ;;  %v7408_v52 = vld [vmem:[#allocation5 + $0x390] ss:$12 sps:$4 sm:$0xff]  }
 0x2e9   : > { %v8613_v3 = vand.u32 %v1211_v60, %v1201_v1  ;;  %v8615_v4 = vand.u32 %v1211_v60, %v1203_v2  ;;  %v7410_v51 = vld [vmem:[#allocation5 + $0x394] ss:$12 sps:$4 sm:$0xff]   ;;  %v7416_v53 = vld [vmem:[#allocation5 + $0x37c] ss:$12 sps:$4 sm:$0xff]   ;;  %v7414_v54 = vld [vmem:[#allocation5 + $0x378] ss:$12 sps:$4 sm:$0xff]  }
 0x2ea   : > { %v7422_v55 = vld [vmem:[#allocation5 + $0x364] ss:$12 sps:$4 sm:$0xff]   ;;  %v7425_v56 = vld [vmem:[#allocation5 + $0x3f4] ss:$12 sps:$4 sm:$0xff]   ;;  %v7428_v61 = vld [vmem:[#allocation5 + $0x34c] ss:$12 sps:$4 sm:$0xff]  }
 0x2eb   : > { %1238 = vmatprep.subr.bf16.mxu1 %v8613_v3  ;;  %1279 = vmatprep.subr.bf16.mxu0 %v8615_v4  ;;  %v7420_v57 = vld [vmem:[#allocation5 + $0x360] ss:$12 sps:$4 sm:$0xff]   ;;  %v7423_v58 = vld [vmem:[#allocation5 + $0x3f0] ss:$12 sps:$4 sm:$0xff]   ;;  %v7426_v59 = vld [vmem:[#allocation5 + $0x348] ss:$12 sps:$4 sm:$0xff]  }
 0x2ec   : > { %1239 = vmatpush1.bf16.msra.mxu1 %v8617_v5  ;;  %1280 = vmatpush1.bf16.msra.mxu0 %v8619_v6  ;;  %v7429_v62 = vld [vmem:[#allocation5 + $0x4c8] ss:$12 sps:$4 sm:$0xff]   ;;  %v7431_v63 = vld [vmem:[#allocation5 + $0x4cc] ss:$12 sps:$4 sm:$0xff]   ;;  %v7432_v2 = vld [vmem:[#allocation5 + $0x330] ss:$12 sps:$4 sm:$0xff]  }
 0x2ed   : > { %1433 = vmatprep.subr.bf16.mxu1 %v8613_v3  ;;  %1474 = vmatprep.subr.bf16.mxu0 %v8615_v4  ;;  %v7434_v60 = vld [vmem:[#allocation5 + $0x334] ss:$12 sps:$4 sm:$0xff]  }
 0x2ee   : > { %v7437_v1 = vld [vmem:[#allocation5 + $0x4b4] ss:$12 sps:$4 sm:$0xff]  }
 0x2ef   : > { %6483 = vmatmul.mubr.msk.bf16.vlgmr.msra.gmra.mxu1 %vm1205_vm4, %v1204_v7  ;;  %6484 = vmatmul.mubr.msk.bf16.vlgmr.msra.gmra.mxu0 %vm1205_vm4, %v1204_v7  ;;  %v7435_v7 = vld [vmem:[#allocation5 + $0x4b0] ss:$12 sps:$4 sm:$0xff]  }
 0x2f0   : > { %1434 = vmatpush1.bf16.msra.mxu1 %v8617_v5  ;;  %1475 = vmatpush1.bf16.msra.mxu0 %v8619_v6 }
 0x2f1   : > { %1451 = vmatprep.mubr.bf16.mxu1 %v8332_v17  ;;  %1492 = vmatprep.mubr.bf16.mxu0 %v8332_v17 }
 0x2f2   : > { %2030 = vmatprep.subr.bf16.mxu1 %v7362_v8  ;;  %2071 = vmatprep.subr.bf16.mxu0 %v7383_v9  ;;  %v7438_v8 = vld [vmem:[#allocation5 + $0x3e0] ss:$12 sps:$4 sm:$0xff]  }
 0x2f7   : > { %6486 = vmatmul.mubr.msk.bf16.vlgmr.msra.gmra.mxu1 %vm1205_vm4, %v6485_v10  ;;  %6487 = vmatmul.mubr.msk.bf16.vlgmr.msra.gmra.mxu0 %vm1205_vm4, %v6485_v10 }
 0x2f8   : > { %2031 = vmatpush1.bf16.msra.mxu1 %v7360_v12  ;;  %2072 = vmatpush1.bf16.msra.mxu0 %v7381_v15 }
 0x2f9   : > { %2032 = vmatprep.subr.bf16.mxu1 %v7365_v19  ;;  %2073 = vmatprep.subr.bf16.mxu0 %v7389_v20 }
 0x2fc   : > { %2033 = vmatpush1.bf16.msra.mxu1 %v7363_v21  ;;  %2074 = vmatpush1.bf16.msra.mxu0 %v7387_v22 }
 0x2fd   : > { %2034 = vmatprep.subr.bf16.mxu1 %v7368_v23  ;;  %2075 = vmatprep.subr.bf16.mxu0 %v7395_v24 }
 0x300   : > { %2035 = vmatpush1.bf16.msra.mxu1 %v7366_v25  ;;  %2076 = vmatpush1.bf16.msra.mxu0 %v7393_v26 }
 0x301   : > { %2036 = vmatprep.subr.bf16.mxu1 %v7371_v27  ;;  %2077 = vmatprep.subr.bf16.mxu0 %v7401_v28 }
 0x304   : > { %2037 = vmatpush1.bf16.msra.mxu1 %v7369_v29  ;;  %2078 = vmatpush1.bf16.msra.mxu0 %v7399_v30  ;;  %v7439_v30 = vld [vmem:[#allocation5 + $0x320] ss:$12 sps:$4 sm:$0xff]  }
 0x305   : > { %2038 = vmatprep.subr.bf16.mxu1 %v7374_v31  ;;  %2079 = vmatprep.subr.bf16.mxu0 %v7407_v32  ;;  %v7440_v31 = vld [vmem:[#allocation5 + $0x4a0] ss:$12 sps:$4 sm:$0xff]  }
 0x308   : > { %2039 = vmatpush1.bf16.msra.mxu1 %v7372_v33  ;;  %2080 = vmatpush1.bf16.msra.mxu0 %v7405_v34  ;;  %v7441_v34 = vld [vmem:[#allocation5 + $0x3c8] ss:$12 sps:$4 sm:$0xff]  }
 0x309   : > { %2040 = vmatprep.subr.bf16.mxu1 %v7377_v35  ;;  %2081 = vmatprep.subr.bf16.mxu0 %v7413_v36 }
 0x30c   : > { %2041 = vmatpush1.bf16.msra.mxu1 %v7375_v37  ;;  %2082 = vmatpush1.bf16.msra.mxu0 %v7411_v38  ;;  %v7442_v38 = vld [vmem:[#allocation5 + $0x308] ss:$12 sps:$4 sm:$0xff]  }
 0x30d   : > { %2042 = vmatprep.subr.bf16.mxu1 %v7380_v39  ;;  %2083 = vmatprep.subr.bf16.mxu0 %v7419_v40  ;;  %v7443_v39 = vld [vmem:[#allocation5 + $0x488] ss:$12 sps:$4 sm:$0xff]   ;;  %v7444_v40 = vld [vmem:[#allocation5 + $0x3b0] ss:$12 sps:$4 sm:$0xff]  }
 0x310   : > { %2043 = vmatpush1.bf16.msra.mxu1 %v7378_v41  ;;  %2084 = vmatpush1.bf16.msra.mxu0 %v7417_v42  ;;  %v7445_v41 = vld [vmem:[#allocation5 + $0x2f0] ss:$12 sps:$4 sm:$0xff]  }
 0x311   : > { %2044 = vmatprep.subr.bf16.mxu1 %v7386_v43  ;;  %2085 = vmatprep.subr.bf16.mxu0 %v7425_v56  ;;  %v7446_v42 = vld [vmem:[#allocation5 + $0x470] ss:$12 sps:$4 sm:$0xff]   ;;  %v7447_v43 = vld [vmem:[#allocation5 + $0x398] ss:$12 sps:$4 sm:$0xff]  }
 0x312   : > { %v7460_v56 = vld [vmem:[#allocation5 + $0x278] ss:$12 sps:$4 sm:$0xff]  }
 0x314   : > { %2045 = vmatpush1.bf16.msra.mxu1 %v7384_v44  ;;  %2086 = vmatpush1.bf16.msra.mxu0 %v7423_v58  ;;  %v7448_v44 = vld [vmem:[#allocation5 + $0x2d8] ss:$12 sps:$4 sm:$0xff]  }
 0x315   : > { %2046 = vmatprep.subr.bf16.mxu1 %v7392_v45  ;;  %2099 = vmatprep.subr.bf16.mxu0 %v7431_v63  ;;  %v7449_v45 = vld [vmem:[#allocation5 + $0x458] ss:$12 sps:$4 sm:$0xff]  }
 0x316   : > { %v7464_v58 = vld [vmem:[#allocation5 + $0xac] ss:$12 sps:$4 sm:$0xff]  }
 0x318   : > { %2047 = vmatpush2.bf16.msra.mxu1 %v7390_v46  ;;  %2100 = vmatpush2.bf16.msra.mxu0 %v7429_v62  ;;  %v7450_v46 = vld [vmem:[#allocation5 + $0x380] ss:$12 sps:$4 sm:$0xff]  }
 0x319   : > { %2048 = vmatprep.subr.bf16.mxu1 %v7398_v47  ;;  %2101 = vmatprep.subr.bf16.mxu0 %v7437_v1  ;;  %v7451_v47 = vld [vmem:[#allocation5 + $0x2c0] ss:$12 sps:$4 sm:$0xff]   ;;  %v7469_v1 = vld [vmem:[#allocation5 + $0x4b8] ss:$12 sps:$4 sm:$0xff]  }
 0x31a   : > { %v7468_v62 = vld [vmem:[#allocation5 + $0x94] ss:$12 sps:$4 sm:$0xff]  }
 0x31c   : > { %2049 = vmatpush2.bf16.msra.mxu1 %v7396_v48  ;;  %2102 = vmatpush2.bf16.msra.mxu0 %v7435_v7  ;;  %v7452_v48 = vld [vmem:[#allocation5 + $0x440] ss:$12 sps:$4 sm:$0xff]  }
 0x31d   : > { %2050 = vmatprep.subr.bf16.mxu1 %v7404_v49  ;;  %7059 = vmatprep.subr.bf16.mxu0 %v7438_v8  ;;  %v7453_v49 = vld [vmem:[#allocation5 + $0x368] ss:$12 sps:$4 sm:$0xff]   ;;  %v7475_v7 = vld [vmem:[#allocation5 + $0x22c] ss:$12 sps:$4 sm:$0xff]  }
 0x31e   : > { %v7470_v8 = vld [vmem:[#allocation5 + $0x78] ss:$12 sps:$4 sm:$0xff]  }
 0x320   : > { %2051 = vmatpush2.bf16.msra.mxu1 %v7402_v50  ;;  %v7454_v50 = vld [vmem:[#allocation5 + $0x2a8] ss:$12 sps:$4 sm:$0xff]  }
 0x321   : > { %2052 = vmatprep.subr.bf16.mxu1 %v7410_v51  ;;  %v7455_v51 = vld [vmem:[#allocation5 + $0x428] ss:$12 sps:$4 sm:$0xff]  }
 0x324   : > { %2053 = vmatpush2.bf16.msra.mxu1 %v7408_v52  ;;  %v7456_v52 = vld [vmem:[#allocation5 + $0x350] ss:$12 sps:$4 sm:$0xff]  }
 0x325   : > { %2054 = vmatprep.subr.bf16.mxu1 %v7416_v53  ;;  %v7457_v53 = vld [vmem:[#allocation5 + $0x290] ss:$12 sps:$4 sm:$0xff]  }
 0x328   : > { %2055 = vmatpush2.bf16.msra.mxu1 %v7414_v54  ;;  %v7458_v54 = vld [vmem:[#allocation5 + $0x410] ss:$12 sps:$4 sm:$0xff]  }
 0x329   : > { %2056 = vmatprep.subr.bf16.mxu1 %v7422_v55  ;;  %v7459_v55 = vld [vmem:[#allocation5 + $0x338] ss:$12 sps:$4 sm:$0xff]  }
 0x32c   : > { %2057 = vmatpush2.bf16.msra.mxu1 %v7420_v57  ;;  %v7461_v57 = vld [vmem:[#allocation5 + $0x3f8] ss:$12 sps:$4 sm:$0xff]  }
 0x32d   : > { %2058 = vmatprep.subr.bf16.mxu1 %v7428_v61  ;;  %v7465_v61 = vld [vmem:[#allocation5 + $0x4d0] ss:$12 sps:$4 sm:$0xff]  }
 0x330   : > { %2059 = vmatpush2.bf16.msra.mxu1 %v7426_v59  ;;  %v7462_v59 = vld [vmem:[#allocation5 + $0xa8] ss:$12 sps:$4 sm:$0xff]  }
 0x331   : > { %2060 = vmatprep.subr.bf16.mxu1 %v7434_v60  ;;  %v7466_v60 = vld [vmem:[#allocation5 + $0x90] ss:$12 sps:$4 sm:$0xff]  }
 0x334   : > { %2061 = vmatpush2.bf16.msra.mxu1 %v7432_v2  ;;  %v7472_v2 = vld [vmem:[#allocation5 + $0x7c] ss:$12 sps:$4 sm:$0xff]  }
 0x335   : > { %2152 = vmatprep.subr.bf16.mxu1 %v8332_v17 }
 0x3af   : > { %v8642_v9 = vpop.f32.mrf.mxu1  ;;  %v8644_v10 = vpop.f32.mrf.mxu0 }
 0x3b1   : > { %v8646_v12 = vpop.f32.mrf.mxu1  ;;  %v8648_v15 = vpop.f32.mrf.mxu0 }
 0x3b2   : > { %v8668_v63 = vpack.c.bf16 %v8646_v12, %v8646_v12  ;;  %v7478_v12 = vld [vmem:[#allocation5 + $0x64] ss:$12 sps:$4 sm:$0xff]  }
 0x3b3   : > { %v1262_v19 = vpop.f32.mrf.mxu1  ;;  %v1303_v20 = vpop.f32.mrf.mxu0 }
 0x3b4   : > { %v7473_v19 = vld [vmem:[#allocation5 + $0x228] ss:$12 sps:$4 sm:$0xff]  }
 0x3b5   : > { %v1263_v21 = vpop.f32.mrf.mxu1  ;;  %v1304_v22 = vpop.f32.mrf.mxu0  ;;  %v7481_v20 = vld [vmem:[#allocation5 + $0x214] ss:$12 sps:$4 sm:$0xff]  }
 0x3b6   : > { %v8675_v21 = vpack.c.bf16 %v8648_v15, %v8648_v15  ;;  %v7476_v22 = vld [vmem:[#allocation5 + $0x60] ss:$12 sps:$4 sm:$0xff]  }
 0x3b7   : > { %v1453_v23 = vpop.f32.mrf.mxu1  ;;  %v1494_v24 = vpop.f32.mrf.mxu0  ;;  %v7490_v15 = vld [vmem:[#allocation5 + $0x34] ss:$12 sps:$4 sm:$0xff]  }
 0x3b8   : > { %v8650_v25 = vpack.c.bf16 %v1453_v23, %v1453_v23  ;;  %v8652_v32 = vpack.c.bf16 %v1494_v24, %v1494_v24  ;;  %v7479_v23 = vld [vmem:[#allocation5 + $0x210] ss:$12 sps:$4 sm:$0xff]   ;;  %v7484_v24 = vld [vmem:[#allocation5 + $0x4c] ss:$12 sps:$4 sm:$0xff]  }
 0x3b9   : > { %v1455_v26 = vpop.f32.mrf.mxu1  ;;  %v1496_v27 = vpop.f32.mrf.mxu0 }
 0x3ba   : > { %v1502_v28 = vpack.c.bf16 %v1455_v26, %v1455_v26  ;;  %v1504_v29 = vpack.c.bf16 %v1496_v27, %v1496_v27  ;;  %v7482_v26 = vld [vmem:[#allocation5 + $0x48] ss:$12 sps:$4 sm:$0xff]   ;;  %v7485_v27 = vld [vmem:[#allocation5 + $0x1f8] ss:$12 sps:$4 sm:$0xff]  }
 0x3bb   : > { %v1498_v33 = vpop.f32.mrf.mxu0  ;;  %v1457_v35 = vpop.f32.mrf.mxu1 }
 0x3bc   : > { %2062 = vmatprep.mubr.bf16.mxu1 %v1502_v28  ;;  %6566 = vmatprep.mubr.msk.bf16.mxu0 %vm2026_vm5, %v1504_v29  ;;  %v7494_v33 = vld [vmem:[#allocation5 + $0x18] ss:$12 sps:$4 sm:$0xff]  }
 0x3bd   : > { %v1499_v36 = vpop.f32.mrf.mxu0  ;;  %2063 = vmatmul.mubr.bf16.vlgmr.msra.gmra.mxu1 %v8650_v25  ;;  %2104 = vmatmul.mubr.bf16.vlgmr.msra.gmra.mxu0 %v8652_v32  ;;  %v1458_v37 = vpop.f32.mrf.mxu1  ;;  %v7502_v35 = vld [vmem:[#allocation5 + $0x4] ss:$12 sps:$4 sm:$0xff]  }
 0x3be   : > { %7060 = vmatpush3.bf16.msra.mxu0 %v7439_v30  ;;  %2153 = vmatpush1.bf16.msra.mxu1 %v7440_v31  ;;  %v7491_v30 = vld [vmem:[#allocation5 + $0x1e0] ss:$12 sps:$4 sm:$0xff]   ;;  %v7496_v31 = vld [vmem:[#allocation5 + $0x1c] ss:$12 sps:$4 sm:$0xff]  }
 0x3bf   : > { %6567 = vmatprep.mubr.msk.bf16.mxu1 %vm2026_vm5, %v1504_v29  ;;  %7061 = vmatprep.subr.bf16.mxu0 %v7441_v34  ;;  %v7488_v29 = vld [vmem:[#allocation5 + $0x30] ss:$12 sps:$4 sm:$0xff]   ;;  %v7497_v34 = vld [vmem:[#allocation5 + $0x1c8] ss:$12 sps:$4 sm:$0xff]   ;;  %v7500_v37 = vld [vmem:[#allocation5] ss:$12 sps:$4 sm:$0xff]  }
 0x3c0   : > { %2154 = vmatprep.subr.bf16.mxu1 %v8332_v17  ;;  %2144 = vmatprep.mubr.bf16.mxu0 %v1502_v28  ;;  %v7493_v28 = vld [vmem:[#allocation5 + $0x1e4] ss:$12 sps:$4 sm:$0xff]   ;;  %v7505_v36 = vld [vmem:[#allocation5 + $0x1b4] ss:$12 sps:$4 sm:$0xff]  }
 0x3c2   : > { %7062 = vmatpush3.bf16.msra.mxu0 %v7442_v38  ;;  %2155 = vmatpush1.bf16.msra.mxu1 %v7443_v39  ;;  %v7503_v38 = vld [vmem:[#allocation5 + $0x1b0] ss:$12 sps:$4 sm:$0xff]   ;;  %v7508_v39 = vld [vmem:[#allocation5 + $0x16c] ss:$12 sps:$4 sm:$0xff]  }
 0x3c3   : > { %7063 = vmatprep.subr.bf16.mxu0 %v7444_v40  ;;  %2156 = vmatprep.subr.bf16.mxu1 %v8332_v17  ;;  %v7511_v40 = vld [vmem:[#allocation5 + $0x19c] ss:$12 sps:$4 sm:$0xff]  }
 0x3c6   : > { %7064 = vmatpush3.bf16.msra.mxu0 %v7445_v41  ;;  %2157 = vmatpush1.bf16.msra.mxu1 %v7446_v42  ;;  %v7506_v41 = vld [vmem:[#allocation5 + $0x168] ss:$12 sps:$4 sm:$0xff]   ;;  %v7509_v42 = vld [vmem:[#allocation5 + $0x198] ss:$12 sps:$4 sm:$0xff]  }
 0x3c7   : > { %7065 = vmatprep.subr.bf16.mxu0 %v7447_v43  ;;  %2158 = vmatprep.subr.bf16.mxu1 %v8332_v17  ;;  %v7514_v43 = vld [vmem:[#allocation5 + $0x154] ss:$12 sps:$4 sm:$0xff]  }
 0x3ca   : > { %7066 = vmatpush3.bf16.msra.mxu0 %v7448_v44  ;;  %2159 = vmatpush1.bf16.msra.mxu1 %v7449_v45  ;;  %v7517_v44 = vld [vmem:[#allocation5 + $0x184] ss:$12 sps:$4 sm:$0xff]  }
 0x3cb   : > { %7067 = vmatprep.subr.bf16.mxu0 %v7450_v46  ;;  %2160 = vmatprep.subr.bf16.mxu1 %v8332_v17  ;;  %v7512_v45 = vld [vmem:[#allocation5 + $0x150] ss:$12 sps:$4 sm:$0xff]   ;;  %v7515_v46 = vld [vmem:[#allocation5 + $0x180] ss:$12 sps:$4 sm:$0xff]  }
 0x3ce   : > { %7068 = vmatpush3.bf16.msra.mxu0 %v7451_v47  ;;  %2161 = vmatpush1.bf16.msra.mxu1 %v7452_v48  ;;  %v7520_v47 = vld [vmem:[#allocation5 + $0x13c] ss:$12 sps:$4 sm:$0xff]  }
 0x3cf   : > { %7069 = vmatprep.subr.bf16.mxu0 %v7453_v49  ;;  %2162 = vmatprep.subr.bf16.mxu1 %v8332_v17  ;;  %v7523_v48 = vld [vmem:[#allocation5 + $0x25c] ss:$12 sps:$4 sm:$0xff]   ;;  %v7518_v49 = vld [vmem:[#allocation5 + $0x138] ss:$12 sps:$4 sm:$0xff]  }
 0x3d2   : > { %7070 = vmatpush3.bf16.msra.mxu0 %v7454_v50  ;;  %2163 = vmatpush1.bf16.msra.mxu1 %v7455_v51  ;;  %v7521_v50 = vld [vmem:[#allocation5 + $0x258] ss:$12 sps:$4 sm:$0xff]  }
 0x3d3   : > { %7071 = vmatprep.subr.bf16.mxu0 %v7456_v52  ;;  %2164 = vmatprep.subr.bf16.mxu1 %v8332_v17  ;;  %v7526_v51 = vld [vmem:[#allocation5 + $0x124] ss:$12 sps:$4 sm:$0xff]  }
 0x3d4   : > { %v7529_v52 = vld [vmem:[#allocation5 + $0x244] ss:$12 sps:$4 sm:$0xff]  }
 0x3d6   : > { %7072 = vmatpush3.bf16.msra.mxu0 %v7457_v53  ;;  %2165 = vmatpush1.bf16.msra.mxu1 %v7458_v54  ;;  %v7524_v53 = vld [vmem:[#allocation5 + $0x120] ss:$12 sps:$4 sm:$0xff]  }
 0x3d7   : > { %7073 = vmatprep.subr.bf16.mxu0 %v7459_v55  ;;  %2166 = vmatprep.subr.bf16.mxu1 %v8332_v17  ;;  %v7527_v54 = vld [vmem:[#allocation5 + $0x240] ss:$12 sps:$4 sm:$0xff]  }
 0x3d8   : > { %v7532_v55 = vld [vmem:[#allocation5 + $0x10c] ss:$12 sps:$4 sm:$0xff]  }
 0x3da   : > { %7074 = vmatpush3.bf16.msra.mxu0 %v7460_v56  ;;  %2167 = vmatpush1.bf16.msra.mxu1 %v7461_v57  ;;  %v7530_v56 = vld [vmem:[#allocation5 + $0x108] ss:$12 sps:$4 sm:$0xff]   ;;  %v7533_v57 = vld [vmem:[#allocation5 + $0x230] ss:$12 sps:$4 sm:$0xff]  }
 0x3db   : > { %2180 = vmatprep.subr.bf16.mxu1 %v8332_v17  ;;  %2611 = vmatprep.subr.bf16.mxu0 %v7464_v58  ;;  %v8682_v58 = vpack.c.bf16 %v8644_v10, %v8644_v10  ;;  %v7538_v10 = vld [vmem:[#allocation5 + $0xd8] ss:$12 sps:$4 sm:$0xff]  }
 0x3dd   : > { %2145 = vmatmul.mubr.bf16.vlgmr.msra.gmra.mxu0 %v8650_v25  ;;  %v7487_v25 = vld [vmem:[#allocation5 + $0x1fc] ss:$12 sps:$4 sm:$0xff]  }
 0x3de   : > { %2181 = vmatpush2.bf16.msra.mxu1 %v7465_v61  ;;  %2612 = vmatpush1.bf16.msra.mxu0 %v7462_v59  ;;  %v7536_v59 = vld [vmem:[#allocation5 + $0xf4] ss:$12 sps:$4 sm:$0xff]   ;;  %v7534_v61 = vld [vmem:[#allocation5 + $0xf0] ss:$12 sps:$4 sm:$0xff]  }
 0x3df   : > { %2643 = vmatprep.mubr.bf16.mxu0 %v8668_v63  ;;  %2182 = vmatprep.subr.bf16.mxu1 %v8332_v17 }
 0x3e0   : > { %2613 = vmatprep.subr.bf16.mxu0 %v7468_v62  ;;  %v7537_v62 = vld [vmem:[#allocation5 + $0x218] ss:$12 sps:$4 sm:$0xff]  }
 0x3e2   : > { %2183 = vmatpush2.bf16.msra.mxu1 %v7469_v1  ;;  %2614 = vmatpush1.bf16.msra.mxu0 %v7466_v60  ;;  %v7540_v60 = vld [vmem:[#allocation5 + $0xdc] ss:$12 sps:$4 sm:$0xff]   ;;  %v7541_v1 = vld [vmem:[#allocation5 + $0x200] ss:$12 sps:$4 sm:$0xff]  }
 0x3e3   : > { %2615 = vmatprep.subr.bf16.mxu0 %v7472_v2  ;;  %2652 = vmatprep.subr.bf16.mxu1 %v7475_v7  ;;  %v7544_v2 = vld [vmem:[#allocation5 + $0xc4] ss:$12 sps:$4 sm:$0xff]   ;;  %v7542_v7 = vld [vmem:[#allocation5 + $0xc0] ss:$12 sps:$4 sm:$0xff]  }
 0x3e5   : > { %2185 = vmatmul.mubr.bf16.vlgmr.msra.gmra.mxu1 %v8652_v32  ;;  %v7499_v32 = vld [vmem:[#allocation5 + $0x1cc] ss:$12 sps:$4 sm:$0xff]  }
 0x3e6   : > { %2616 = vmatpush1.bf16.msra.mxu0 %v7470_v8  ;;  %2653 = vmatpush1.bf16.msra.mxu1 %v7473_v19  ;;  %v7545_v8 = vld [vmem:[#allocation5 + $0x1e8] ss:$12 sps:$4 sm:$0xff]   ;;  %v7546_v19 = vld [vmem:[#allocation5 + $0x170] ss:$12 sps:$4 sm:$0xff]  }
 0x3e7   : > { %6646 = vmatprep.mubr.msk.bf16.mxu1 %vm2026_vm5, %v8675_v21  ;;  %2617 = vmatprep.subr.bf16.mxu0 %v7478_v12  ;;  %v7547_v12 = vld [vmem:[#allocation5 + $0xb0] ss:$12 sps:$4 sm:$0xff]  }
 0x3e8   : > { %2654 = vmatprep.subr.bf16.mxu1 %v7481_v20  ;;  %v1306_v20 = vpack.c.bf16 %v8642_v9, %v8642_v9  ;;  %v7554_v9 = vld [vmem:[#allocation5 + $0x1a0] ss:$12 sps:$4 sm:$0xff]  }
 0x3ea   : > { %2618 = vmatpush1.bf16.msra.mxu0 %v7476_v22  ;;  %2655 = vmatpush1.bf16.msra.mxu1 %v7479_v23  ;;  %v7549_v22 = vld [vmem:[#allocation5 + $0x158] ss:$12 sps:$4 sm:$0xff]  }
 0x3eb   : > { %2619 = vmatprep.subr.bf16.mxu0 %v7484_v24  ;;  %2656 = vmatprep.subr.bf16.mxu1 %v7487_v25  ;;  %v7550_v23 = vld [vmem:[#allocation5 + $0x98] ss:$12 sps:$4 sm:$0xff]   ;;  %v7552_v25 = vld [vmem:[#allocation5 + $0x140] ss:$12 sps:$4 sm:$0xff]  }
 0x3ec   : > { %v7551_v24 = vld [vmem:[#allocation5 + $0x1b8] ss:$12 sps:$4 sm:$0xff]  }
 0x3ee   : > { %2620 = vmatpush1.bf16.msra.mxu0 %v7482_v26  ;;  %2657 = vmatpush1.bf16.msra.mxu1 %v7485_v27  ;;  %v7553_v26 = vld [vmem:[#allocation5 + $0x80] ss:$12 sps:$4 sm:$0xff]   ;;  %v7555_v27 = vld [vmem:[#allocation5 + $0x128] ss:$12 sps:$4 sm:$0xff]  }
 0x3ef   : > { %2621 = vmatprep.subr.bf16.mxu0 %v7490_v15  ;;  %2658 = vmatprep.subr.bf16.mxu1 %v7493_v28  ;;  %v7556_v15 = vld [vmem:[#allocation5 + $0x68] ss:$12 sps:$4 sm:$0xff]   ;;  %v7558_v28 = vld [vmem:[#allocation5 + $0x110] ss:$12 sps:$4 sm:$0xff]  }
 0x3f2   : > { %2622 = vmatpush1.bf16.msra.mxu0 %v7488_v29  ;;  %2659 = vmatpush1.bf16.msra.mxu1 %v7491_v30  ;;  %v7559_v29 = vld [vmem:[#allocation5 + $0x50] ss:$12 sps:$4 sm:$0xff]   ;;  %v7560_v30 = vld [vmem:[#allocation5 + $0x260] ss:$12 sps:$4 sm:$0xff]  }
 0x3f3   : > { %2623 = vmatprep.subr.bf16.mxu0 %v7496_v31  ;;  %2660 = vmatprep.subr.bf16.mxu1 %v7499_v32  ;;  %v7561_v31 = vld [vmem:[#allocation5 + $0xf8] ss:$12 sps:$4 sm:$0xff]  }
 0x3f4   : > { %v7562_v32 = vld [vmem:[#allocation5 + $0x38] ss:$12 sps:$4 sm:$0xff]  }
 0x3f6   : > { %2624 = vmatpush1.bf16.msra.mxu0 %v7494_v33  ;;  %2661 = vmatpush1.bf16.msra.mxu1 %v7497_v34  ;;  %v7563_v33 = vld [vmem:[#allocation5 + $0x248] ss:$12 sps:$4 sm:$0xff]   ;;  %v7564_v34 = vld [vmem:[#allocation5 + $0xe0] ss:$12 sps:$4 sm:$0xff]  }
 0x3f7   : > { %2625 = vmatprep.subr.bf16.mxu0 %v7502_v35  ;;  %2662 = vmatprep.subr.bf16.mxu1 %v7505_v36  ;;  %v7570_v35 = vld [vmem:[#allocation5 + $0x58c] ss:$12 sps:$4 sm:$0xff]  }
 0x3f8   : > { %v7565_v36 = vld [vmem:[#allocation5 + $0x20] ss:$12 sps:$4 sm:$0xff]  }
 0x3fa   : > { %2626 = vmatpush1.bf16.msra.mxu0 %v7500_v37  ;;  %2663 = vmatpush1.bf16.msra.mxu1 %v7503_v38  ;;  %v7566_v37 = vld [vmem:[#allocation5 + $0xc8] ss:$12 sps:$4 sm:$0xff]  }
 0x3fb   : > { %2627 = vmatprep.subr.bf16.mxu0 %v7508_v39  ;;  %2664 = vmatprep.subr.bf16.mxu1 %v7511_v40  ;;  %v7568_v38 = vld [vmem:[#allocation5 + $0x588] ss:$12 sps:$4 sm:$0xff]  }
 0x3fc   : > { %v7567_v39 = vld [vmem:[#allocation5 + $0x8] ss:$12 sps:$4 sm:$0xff]  }
 0x3fd   : > { %v6648_v40 = vld [vmem:[%s8866_s4 + $0x8] sm:$0x7] }
 0x3fe   : > { %2628 = vmatpush2.bf16.msra.mxu0 %v7506_v41  ;;  %2665 = vmatpush1.bf16.msra.mxu1 %v7509_v42  ;;  %v7573_v41 = vld [vmem:[#allocation5 + $0x574] ss:$12 sps:$4 sm:$0xff]   ;;  %v7576_v42 = vld [vmem:[#allocation5 + $0x55c] ss:$12 sps:$4 sm:$0xff]  }
 0x3ff   : > { %2629 = vmatprep.subr.bf16.mxu0 %v7514_v43  ;;  %2666 = vmatprep.subr.bf16.mxu1 %v7517_v44  ;;  %v7577_v43 = vld [vmem:[#allocation5 + $0x540] ss:$12 sps:$4 sm:$0xff]  }
 0x400   : > { %v7582_v44 = vld [vmem:[#allocation5 + $0x52c] ss:$12 sps:$4 sm:$0xff]  }
 0x402   : > { %2630 = vmatpush2.bf16.msra.mxu0 %v7512_v45  ;;  %2667 = vmatpush1.bf16.msra.mxu1 %v7515_v46  ;;  %v7580_v45 = vld [vmem:[#allocation5 + $0x528] ss:$12 sps:$4 sm:$0xff]   ;;  %v7583_v46 = vld [vmem:[#allocation5 + $0x510] ss:$12 sps:$4 sm:$0xff]  }
 0x403   : > { %2631 = vmatprep.subr.bf16.mxu0 %v7520_v47  ;;  %2680 = vmatprep.subr.bf16.mxu1 %v7523_v48  ;;  %v7588_v47 = vld [vmem:[#allocation5 + $0x4fc] ss:$12 sps:$4 sm:$0xff]   ;;  %v7586_v48 = vld [vmem:[#allocation5 + $0x4f8] ss:$12 sps:$4 sm:$0xff]  }
 0x406   : > { %2632 = vmatpush2.bf16.msra.mxu0 %v7518_v49  ;;  %2681 = vmatpush2.bf16.msra.mxu1 %v7521_v50  ;;  %v7591_v49 = vld [vmem:[#allocation5 + $0x4e4] ss:$12 sps:$4 sm:$0xff]   ;;  %v7589_v50 = vld [vmem:[#allocation5 + $0x4e0] ss:$12 sps:$4 sm:$0xff]  }
 0x407   : > { %2633 = vmatprep.subr.bf16.mxu0 %v7526_v51  ;;  %2682 = vmatprep.subr.bf16.mxu1 %v7529_v52  ;;  %v7595_v51 = vld [vmem:[#allocation5 + $0x708] ss:$12 sps:$4 sm:$0xff]   ;;  %v7597_v52 = vld [vmem:[#allocation5 + $0x70c] ss:$12 sps:$4 sm:$0xff]  }
 0x40a   : > { %2634 = vmatpush2.bf16.msra.mxu0 %v7524_v53  ;;  %2683 = vmatpush2.bf16.msra.mxu1 %v7527_v54  ;;  %v7594_v53 = vld [vmem:[#allocation5 + $0x64c] ss:$12 sps:$4 sm:$0xff]   ;;  %v7603_v54 = vld [vmem:[#allocation5 + $0x6f4] ss:$12 sps:$4 sm:$0xff]  }
 0x40b   : > { %2635 = vmatprep.subr.bf16.mxu0 %v7532_v55  ;;  %2733 = vmatprep.subr.bf16.mxu1 %v8332_v17  ;;  %v7601_v55 = vld [vmem:[#allocation5 + $0x6f0] ss:$12 sps:$4 sm:$0xff]  }
 0x40d   : > { %2685 = vmatmul.mubr.bf16.vlgmr.msra.gmra.mxu1 %v8682_v58 }
 0x40e   : > { %2636 = vmatpush2.bf16.msra.mxu0 %v7530_v56  ;;  %2734 = vmatpush1.bf16.msra.mxu1 %v7533_v57  ;;  %v7592_v56 = vld [vmem:[#allocation5 + $0x648] ss:$12 sps:$4 sm:$0xff]  }
 0x40f   : > { %6647 = vmatprep.mubr.msk.bf16.mxu1 %vm2026_vm5, %v8675_v21  ;;  %2637 = vmatprep.subr.bf16.mxu0 %v7536_v59  ;;  %v7548_v21 = vld [vmem:[#allocation5 + $0x1d0] ss:$12 sps:$4 sm:$0xff]   ;;  %v7607_v59 = vld [vmem:[#allocation5 + $0x6d8] ss:$12 sps:$4 sm:$0xff]  }
 0x410   : > { %2735 = vmatprep.subr.bf16.mxu1 %v8332_v17  ;;  %v7609_v57 = vld [vmem:[#allocation5 + $0x6dc] ss:$12 sps:$4 sm:$0xff]  }
 0x412   : > { %2638 = vmatpush2.bf16.msra.mxu0 %v7534_v61  ;;  %2736 = vmatpush1.bf16.msra.mxu1 %v7537_v62  ;;  %v7598_v61 = vld [vmem:[#allocation5 + $0x630] ss:$12 sps:$4 sm:$0xff]  }
 0x413   : > { %2639 = vmatprep.subr.bf16.mxu0 %v7540_v60  ;;  %2737 = vmatprep.subr.bf16.mxu1 %v8332_v17  ;;  %v7606_v62 = vld [vmem:[#allocation5 + $0x61c] ss:$12 sps:$4 sm:$0xff]   ;;  %v7604_v60 = vld [vmem:[#allocation5 + $0x618] ss:$12 sps:$4 sm:$0xff]  }
 0x416   : > { %2640 = vmatpush2.bf16.msra.mxu0 %v7538_v10  ;;  %2738 = vmatpush1.bf16.msra.mxu1 %v7541_v1  ;;  %v7612_v10 = vld [vmem:[#allocation5 + $0x604] ss:$12 sps:$4 sm:$0xff]  }
 0x417   : > { %2641 = vmatprep.subr.bf16.mxu0 %v7544_v2  ;;  %2739 = vmatprep.subr.bf16.mxu1 %v8332_v17  ;;  %v7615_v1 = vld [vmem:[#allocation5 + $0x6c4] ss:$12 sps:$4 sm:$0xff]   ;;  %v7610_v2 = vld [vmem:[#allocation5 + $0x600] ss:$12 sps:$4 sm:$0xff]  }
 0x41a   : > { %2642 = vmatpush2.bf16.msra.mxu0 %v7542_v7  ;;  %2740 = vmatpush1.bf16.msra.mxu1 %v7545_v8  ;;  %v7613_v7 = vld [vmem:[#allocation5 + $0x6c0] ss:$12 sps:$4 sm:$0xff]  }
 0x41b   : > { %7081 = vmatprep.subr.bf16.mxu0 %v7546_v19  ;;  %2741 = vmatprep.subr.bf16.mxu1 %v8332_v17  ;;  %v7618_v8 = vld [vmem:[#allocation5 + $0x5ec] ss:$12 sps:$4 sm:$0xff]  }
 0x41c   : > { %v7621_v19 = vld [vmem:[#allocation5 + $0x6ac] ss:$12 sps:$4 sm:$0xff]  }
 0x41d   : > { %2644 = vmatmul.mubr.bf16.vlgmr.msra.gmra.mxu0 %v1306_v20 }
 0x41e   : > { %7082 = vmatpush3.bf16.msra.mxu0 %v7547_v12  ;;  %2725 = vmatprep.mubr.bf16.mxu0 %v8668_v63  ;;  %v7557_v63 = vld [vmem:[#allocation5 + $0x188] ss:$12 sps:$4 sm:$0xff]  }
 0x41f   : > { %2742 = vmatpush1.bf16.msra.mxu1 %v7548_v21  ;;  %7083 = vmatprep.subr.bf16.mxu0 %v7549_v22  ;;  %v7616_v12 = vld [vmem:[#allocation5 + $0x5e8] ss:$12 sps:$4 sm:$0xff]  }
 0x420   : > { %2743 = vmatprep.subr.bf16.mxu1 %v8332_v17 }
 0x422   : > { %7084 = vmatpush3.bf16.msra.mxu0 %v7550_v23  ;;  %v7622_v23 = vld [vmem:[#allocation5 + $0x5d0] ss:$12 sps:$4 sm:$0xff]  }
 0x423   : > { %2744 = vmatpush1.bf16.msra.mxu1 %v7551_v24  ;;  %7085 = vmatprep.subr.bf16.mxu0 %v7552_v25  ;;  %v7624_v24 = vld [vmem:[#allocation5 + $0x5d4] ss:$12 sps:$4 sm:$0xff]   ;;  %v7625_v25 = vld [vmem:[#allocation5 + $0x690] ss:$12 sps:$4 sm:$0xff]  }
 0x424   : > { %2745 = vmatprep.subr.bf16.mxu1 %v8332_v17 }
 0x426   : > { %7086 = vmatpush3.bf16.msra.mxu0 %v7553_v26 }
 0x427   : > { %2746 = vmatpush1.bf16.msra.mxu1 %v7554_v9  ;;  %7087 = vmatprep.subr.bf16.mxu0 %v7555_v27  ;;  %v7627_v9 = vld [vmem:[#allocation5 + $0x694] ss:$12 sps:$4 sm:$0xff]  }
 0x428   : > { %2747 = vmatprep.subr.bf16.mxu1 %v8332_v17 }
 0x42a   : > { %7088 = vmatpush3.bf16.msra.mxu0 %v7556_v15 }
 0x42b   : > { %2748 = vmatpush1.bf16.msra.mxu1 %v7557_v63  ;;  %7089 = vmatprep.subr.bf16.mxu0 %v7558_v28 }
 0x42c   : > { %2761 = vmatprep.subr.bf16.mxu1 %v8332_v17 }
 0x42e   : > { %7090 = vmatpush3.bf16.msra.mxu0 %v7559_v29 }
 0x42f   : > { %2762 = vmatpush2.bf16.msra.mxu1 %v7560_v30  ;;  %7091 = vmatprep.subr.bf16.mxu0 %v7561_v31  ;;  %v7630_v30 = vld [vmem:[#allocation5 + $0x5bc] ss:$12 sps:$4 sm:$0xff]  }
 0x430   : > { %2763 = vmatprep.subr.bf16.mxu1 %v8332_v17  ;;  %v7633_v31 = vld [vmem:[#allocation5 + $0x67c] ss:$12 sps:$4 sm:$0xff]  }
 0x432   : > { %7092 = vmatpush3.bf16.msra.mxu0 %v7562_v32  ;;  %v7628_v32 = vld [vmem:[#allocation5 + $0x5b8] ss:$12 sps:$4 sm:$0xff]  }
 0x433   : > { %2764 = vmatpush2.bf16.msra.mxu1 %v7563_v33  ;;  %7093 = vmatprep.subr.bf16.mxu0 %v7564_v34  ;;  %v7631_v33 = vld [vmem:[#allocation5 + $0x678] ss:$12 sps:$4 sm:$0xff]  }
 0x434   : > { %3388 = vmatprep.subr.bf16.mxu1 %v7570_v35 }
 0x436   : > { %2766 = vmatmul.mubr.bf16.vlgmr.msra.gmra.mxu1 %v8682_v58  ;;  %7094 = vmatpush3.bf16.msra.mxu0 %v7565_v36  ;;  %v7600_v58 = vld [vmem:[#allocation5 + $0x634] ss:$12 sps:$4 sm:$0xff]   ;;  %v7636_v36 = vld [vmem:[#allocation5 + $0x5a4] ss:$12 sps:$4 sm:$0xff]  }
 0x437   : > { %7095 = vmatprep.subr.bf16.mxu0 %v7566_v37  ;;  %3389 = vmatpush1.bf16.msra.mxu1 %v7568_v38  ;;  %v7639_v37 = vld [vmem:[#allocation5 + $0x664] ss:$12 sps:$4 sm:$0xff]   ;;  %v7634_v38 = vld [vmem:[#allocation5 + $0x5a0] ss:$12 sps:$4 sm:$0xff]  }
 0x438   : > { %3390 = vmatprep.subr.bf16.mxu1 %v7573_v41  ;;  %v7646_v41 = vld [vmem:[#allocation5 + $0x724] ss:$12 sps:$4 sm:$0xff]  }
 0x43a   : > { %7096 = vmatpush3.bf16.msra.mxu0 %v7567_v39  ;;  %v7637_v39 = vld [vmem:[#allocation5 + $0x660] ss:$12 sps:$4 sm:$0xff]  }
 0x43b   : > { %2792 = vmatprep.subr.bf16.mxu0 %v8613_v3  ;;  %v7571_v3 = vld [vmem:[#allocation5 + $0x570] ss:$12 sps:$4 sm:$0xff]  }
 0x43c   : > { %3391 = vmatpush1.bf16.msra.mxu1 %v7571_v3  ;;  %v7640_v3 = vld [vmem:[#allocation5 + $0x738] ss:$12 sps:$4 sm:$0xff]  }
 0x43d   : > { %2726 = vmatmul.mubr.bf16.vlgmr.msra.gmra.mxu0 %v1306_v20  ;;  %3392 = vmatprep.subr.bf16.mxu1 %v7576_v42  ;;  %v7619_v20 = vld [vmem:[#allocation5 + $0x6a8] ss:$12 sps:$4 sm:$0xff]   ;;  %v7648_v42 = vld [vmem:[#allocation5 + $0x650] ss:$12 sps:$4 sm:$0xff]  }
 0x43e   : > { %2793 = vmatpush1.bf16.msra.mxu0 %v8617_v5  ;;  %2810 = vmatprep.mubr.bf16.mxu0 %v8332_v17  ;;  %v7574_v5 = vld [vmem:[#allocation5 + $0x558] ss:$12 sps:$4 sm:$0xff]  }
 0x43f   : > { %2833 = vmatprep.subr.bf16.mxu0 %v8615_v4  ;;  %v7579_v4 = vld [vmem:[#allocation5 + $0x544] ss:$12 sps:$4 sm:$0xff]  }
 0x440   : > { %3393 = vmatpush1.bf16.msra.mxu1 %v7574_v5  ;;  %v7644_v5 = vld [vmem:[#allocation5 + $0x720] ss:$12 sps:$4 sm:$0xff]  }
 0x441   : > { %3394 = vmatprep.subr.bf16.mxu1 %v7579_v4 }
 0x444   : > { %3395 = vmatpush1.bf16.msra.mxu1 %v7577_v43 }
 0x445   : > { %6649 = vmatmul.mubr.msk.bf16.vlgmr.msra.gmra.mxu0 %vm1205_vm4, %v6648_v40  ;;  %3396 = vmatprep.subr.bf16.mxu1 %v7582_v44 }
 0x446   : > { %2834 = vmatpush1.bf16.msra.mxu0 %v8619_v6  ;;  %2851 = vmatprep.mubr.bf16.mxu0 %v8332_v17  ;;  %v7585_v6 = vld [vmem:[#allocation5 + $0x514] ss:$12 sps:$4 sm:$0xff]  }
 0x447   : > { %3429 = vmatprep.subr.bf16.mxu0 %v7597_v52 }
 0x448   : > { %3397 = vmatpush1.bf16.msra.mxu1 %v7580_v45 }
 0x449   : > { %3398 = vmatprep.subr.bf16.mxu1 %v7585_v6 }
 0x44c   : > { %3399 = vmatpush1.bf16.msra.mxu1 %v7583_v46 }
 0x44d   : > { %6650 = vmatmul.mubr.msk.bf16.vlgmr.msra.gmra.mxu0 %vm1205_vm4, %v6648_v40  ;;  %3400 = vmatprep.subr.bf16.mxu1 %v7588_v47  ;;  %v7642_v40 = vld [vmem:[#allocation5 + $0x73c] ss:$12 sps:$4 sm:$0xff]  }
 0x44e   : > { %3430 = vmatpush1.bf16.msra.mxu0 %v7595_v51 }
 0x44f   : > { %3431 = vmatprep.subr.bf16.mxu0 %v7603_v54 }
 0x450   : > { %3401 = vmatpush1.bf16.msra.mxu1 %v7586_v48 }
 0x451   : > { %3402 = vmatprep.subr.bf16.mxu1 %v7591_v49 }
 0x452   : > { %3432 = vmatpush1.bf16.msra.mxu0 %v7601_v55 }
 0x453   : > { %3433 = vmatprep.subr.bf16.mxu0 %v7609_v57 }
 0x454   : > { %3403 = vmatpush1.bf16.msra.mxu1 %v7589_v50 }
 0x455   : > { %3404 = vmatprep.subr.bf16.mxu1 %v7594_v53 }
 0x456   : > { %3434 = vmatpush1.bf16.msra.mxu0 %v7607_v59 }
 0x457   : > { %3435 = vmatprep.subr.bf16.mxu0 %v7615_v1 }
 0x458   : > { %3405 = vmatpush2.bf16.msra.mxu1 %v7592_v56 }
 0x459   : > { %3406 = vmatprep.subr.bf16.mxu1 %v7600_v58 }
 0x45a   : > { %3436 = vmatpush1.bf16.msra.mxu0 %v7613_v7 }
 0x45b   : > { %3437 = vmatprep.subr.bf16.mxu0 %v7621_v19 }
 0x45c   : > { %3407 = vmatpush2.bf16.msra.mxu1 %v7598_v61 }
 0x45d   : > { %3408 = vmatprep.subr.bf16.mxu1 %v7606_v62 }
 0x45e   : > { %3438 = vmatpush1.bf16.msra.mxu0 %v7619_v20 }
 0x45f   : > { %3439 = vmatprep.subr.bf16.mxu0 %v7627_v9  ;;  %v7643_v9 = vld [vmem:[#allocation5 + $0x710] ss:$12 sps:$4 sm:$0xff]  }
 0x460   : > { %3409 = vmatpush2.bf16.msra.mxu1 %v7604_v60 }
 0x461   : > { %3410 = vmatprep.subr.bf16.mxu1 %v7612_v10 }
 0x462   : > { %3440 = vmatpush1.bf16.msra.mxu0 %v7625_v25 }
 0x463   : > { %3441 = vmatprep.subr.bf16.mxu0 %v7633_v31 }
 0x464   : > { %3411 = vmatpush2.bf16.msra.mxu1 %v7610_v2 }
 0x465   : > { %3412 = vmatprep.subr.bf16.mxu1 %v7618_v8 }
 0x466   : > { %3442 = vmatpush1.bf16.msra.mxu0 %v7631_v33  ;;  %v7650_v33 = vld [vmem:[#allocation5 + $0x6e0] ss:$12 sps:$4 sm:$0xff]  }
 0x467   : > { %3443 = vmatprep.subr.bf16.mxu0 %v7639_v37 }
 0x468   : > { %3413 = vmatpush2.bf16.msra.mxu1 %v7616_v12 }
 0x469   : > { %3414 = vmatprep.subr.bf16.mxu1 %v7624_v24 }
 0x46a   : > { %3444 = vmatpush1.bf16.msra.mxu0 %v7637_v39  ;;  %v7653_v39 = vld [vmem:[#allocation5 + $0x6c8] ss:$12 sps:$4 sm:$0xff]  }
 0x46b   : > { %3457 = vmatprep.subr.bf16.mxu0 %v7642_v40  ;;  %v7654_v40 = vld [vmem:[#allocation5 + $0x620] ss:$12 sps:$4 sm:$0xff]  }
 0x46c   : > { %3415 = vmatpush2.bf16.msra.mxu1 %v7622_v23 }
 0x46d   : > { %3416 = vmatprep.subr.bf16.mxu1 %v7630_v30 }
 0x46e   : > { %3458 = vmatpush2.bf16.msra.mxu0 %v7640_v3  ;;  %v7655_v3 = vld [vmem:[#allocation5 + $0x560] ss:$12 sps:$4 sm:$0xff]  }
 0x46f   : > { %3459 = vmatprep.subr.bf16.mxu0 %v7646_v41  ;;  %v7656_v41 = vld [vmem:[#allocation5 + $0x6b0] ss:$12 sps:$4 sm:$0xff]  }
 0x470   : > { %3417 = vmatpush2.bf16.msra.mxu1 %v7628_v32  ;;  %v7649_v32 = vld [vmem:[#allocation5 + $0x590] ss:$12 sps:$4 sm:$0xff]  }
 0x471   : > { %3418 = vmatprep.subr.bf16.mxu1 %v7636_v36  ;;  %v7651_v36 = vld [vmem:[#allocation5 + $0x638] ss:$12 sps:$4 sm:$0xff]  }
 0x472   : > { %3460 = vmatpush2.bf16.msra.mxu0 %v7644_v5  ;;  %v7657_v5 = vld [vmem:[#allocation5 + $0x608] ss:$12 sps:$4 sm:$0xff]  }
 0x473   : > { %7103 = vmatprep.subr.bf16.mxu0 %v7648_v42  ;;  %v7658_v42 = vld [vmem:[#allocation5 + $0x548] ss:$12 sps:$4 sm:$0xff]  }
 0x474   : > { %3419 = vmatpush2.bf16.msra.mxu1 %v7634_v38  ;;  %v7652_v38 = vld [vmem:[#allocation5 + $0x578] ss:$12 sps:$4 sm:$0xff]  }
 0x475   : > { %3510 = vmatprep.subr.bf16.mxu1 %v8332_v17 }
 0x47d   : > { %v2064_v21 = vpop.f32.mrf.mxu1  ;;  %v2105_v22 = vpop.f32.mrf.mxu0 }
 0x47e   : > { %v2106_v26 = vadd.f32 %v2105_v22, %v2064_v21 }
 0x47f   : > { %v2066_v27 = vpop.f32.mrf.mxu1  ;;  %v2107_v15 = vpop.f32.mrf.mxu0 }
 0x480   : > { %v2108_v63 = vadd.f32 %v2107_v15, %v2066_v27 }
 0x481   : > { %v2109_v28 = vpop.f32.mrf.mxu0  ;;  %v2068_v29 = vpop.f32.mrf.mxu1 }
 0x482   : > { %v7647_v28 = vld [vmem:[#allocation5 + $0x6f8] ss:$12 sps:$4 sm:$0xff]  }
 0x483   : > { %v2110_v34 = vpop.f32.mrf.mxu0  ;;  %v2069_v35 = vpop.f32.mrf.mxu1 }
 0x49d   : > { %v7075_v4 = vpop.f32.mrf.mxu0 }
 0x49f   : > { %v7076_v43 = vpop.f32.mrf.mxu0 }
 0x4a0   : > { %v7077_v44 = vadd.f32 %v7076_v43, %v7075_v4  ;;  %v7659_v4 = vld [vmem:[#allocation5 + $0x698] ss:$12 sps:$4 sm:$0xff]   ;;  %v7660_v43 = vld [vmem:[#allocation5 + $0x5f0] ss:$12 sps:$4 sm:$0xff]  }
 0x4a1   : > { %v7078_v45 = vpop.f32.mrf.mxu0 }
 0x4a2   : > { %v7662_v45 = vld [vmem:[#allocation5 + $0x680] ss:$12 sps:$4 sm:$0xff]  }
 0x4a3   : > { %v7079_v6 = vpop.f32.mrf.mxu0 }
 0x4a4   : > { %v7663_v6 = vld [vmem:[#allocation5 + $0x5d8] ss:$12 sps:$4 sm:$0xff]  }
 0x4a5   : > { %v2186_v46 = vpop.f32.mrf.mxu1 }
 0x4a6   : > { %v2187_v47 = vadd.f32 %v7077_v44, %v2186_v46  ;;  %v7661_v44 = vld [vmem:[#allocation5 + $0x530] ss:$12 sps:$4 sm:$0xff]   ;;  %v7664_v46 = vld [vmem:[#allocation5 + $0x518] ss:$12 sps:$4 sm:$0xff]  }
 0x4a7   : > { %v2188_v48 = vpop.f32.mrf.mxu1 }
 0x4a8   : > { %v7666_v48 = vld [vmem:[#allocation5 + $0x5c0] ss:$12 sps:$4 sm:$0xff]  }
 0x4a9   : > { %v2189_v49 = vpop.f32.mrf.mxu1 }
 0x4aa   : > { %v7667_v49 = vld [vmem:[#allocation5 + $0x500] ss:$12 sps:$4 sm:$0xff]  }
 0x4ab   : > { %v2190_v50 = vpop.f32.mrf.mxu1 }
 0x4ac   : > { %v7668_v50 = vld [vmem:[#allocation5 + $0x740] ss:$12 sps:$4 sm:$0xff]  }
 0x4cd   : > { %v2686_v51 = vpop.f32.mrf.mxu1 }
 0x4cf   : > { %v2688_v52 = vpop.f32.mrf.mxu1 }
 0x4d1   : > { %v2690_v53 = vpop.f32.mrf.mxu1 }
 0x4d2   : > { %v7671_v53 = vld [vmem:[#allocation5 + $0x728] ss:$12 sps:$4 sm:$0xff]  }
 0x4d3   : > { %v2691_v54 = vpop.f32.mrf.mxu1 }
 0x4d4   : > { %v7672_v54 = vld [vmem:[#allocation7 + $0x1f0] ss:$8 sps:$4 sm:$0xff]  }
 0x4dd   : > { %v2645_v55 = vpop.f32.mrf.mxu0 }
 0x4de   : > { %v2646_v56 = vadd.f32 %v2645_v55, %v2106_v26  ;;  %v7674_v55 = vld [vmem:[#allocation7 + $0x1f4] ss:$8 sps:$4 sm:$0xff]  }
 0x4df   : > { %v2647_v57 = vpop.f32.mrf.mxu0 }
 0x4e0   : > { %v8713_v58 = vadd.f32 %v2686_v51, %v2646_v56  ;;  %v2648_v59 = vadd.f32 %v2647_v57, %v2108_v63  ;;  %v7669_v51 = vld [vmem:[#allocation5 + $0x5a8] ss:$12 sps:$4 sm:$0xff]   ;;  %v7675_v57 = vld [vmem:[#allocation7 + $0x1e0] ss:$8 sps:$4 sm:$0xff]  }
 0x4e1   : > { %v2649_v61 = vpop.f32.mrf.mxu0  ;;  %v7677_v56 = vld [vmem:[#allocation7 + $0x1e4] ss:$8 sps:$4 sm:$0xff]  }
 0x4e2   : > { %v8715_v62 = vadd.f32 %v2688_v52, %v2648_v59  ;;  %v7670_v52 = vld [vmem:[#allocation5 + $0x4e8] ss:$12 sps:$4 sm:$0xff]   ;;  %v7680_v59 = vld [vmem:[#allocation7 + $0x1d4] ss:$8 sps:$4 sm:$0xff]  }
 0x4e3   : > { %v2650_v60 = vpop.f32.mrf.mxu0  ;;  %v7678_v61 = vld [vmem:[#allocation7 + $0x1d0] ss:$8 sps:$4 sm:$0xff]  }
 0x4e4   : > { %v7683_v60 = vld [vmem:[#allocation7 + $0x1c4] ss:$8 sps:$4 sm:$0xff]  }
 0x4f6   : > { %v2767_v10 = vpop.f32.mrf.mxu1 }
 0x4f8   : > { %v2769_v1 = vpop.f32.mrf.mxu1 }
 0x4f9   : > { %v7686_v1 = vld [vmem:[#allocation7 + $0x1b4] ss:$8 sps:$4 sm:$0xff]  }
 0x4fa   : > { %v2770_v2 = vpop.f32.mrf.mxu1 }
 0x4fb   : > { %v7684_v2 = vld [vmem:[#allocation7 + $0x1b0] ss:$8 sps:$4 sm:$0xff]  }
 0x4fc   : > { %v2771_v7 = vpop.f32.mrf.mxu1 }
 0x4fd   : > { %v7097_v8 = vpop.f32.mrf.mxu0  ;;  %v7689_v7 = vld [vmem:[#allocation7 + $0x1a4] ss:$8 sps:$4 sm:$0xff]  }
 0x4ff   : > { %v7098_v19 = vpop.f32.mrf.mxu0 }
 0x500   : > { %v7099_v12 = vadd.f32 %v7098_v19, %v7097_v8  ;;  %v7687_v8 = vld [vmem:[#allocation7 + $0x1a0] ss:$8 sps:$4 sm:$0xff]   ;;  %v7692_v19 = vld [vmem:[#allocation7 + $0x194] ss:$8 sps:$4 sm:$0xff]  }
 0x501   : > { %v7100_v20 = vpop.f32.mrf.mxu0 }
 0x502   : > { %v2728_v21 = vadd.f32 %v7099_v12, %v2187_v47  ;;  %v7665_v47 = vld [vmem:[#allocation5 + $0x668] ss:$12 sps:$4 sm:$0xff]  }
 0x503   : > { %v7101_v22 = vpop.f32.mrf.mxu0  ;;  %v7690_v12 = vld [vmem:[#allocation7 + $0x190] ss:$8 sps:$4 sm:$0xff]   ;;  %v7695_v20 = vld [vmem:[#allocation7 + $0x184] ss:$8 sps:$4 sm:$0xff]  }
 0x504   : > { %v8717_v23 = vadd.f32 %v2767_v10, %v2728_v21  ;;  %v7681_v10 = vld [vmem:[#allocation7 + $0x1c0] ss:$8 sps:$4 sm:$0xff]   ;;  %v7698_v22 = vld [vmem:[#allocation7 + $0x274] ss:$8 sps:$4 sm:$0xff]  }
 0x505   : > { %v2812_v24 = vpop.f32.mrf.mxu0  ;;  %v7693_v21 = vld [vmem:[#allocation7 + $0x180] ss:$8 sps:$4 sm:$0xff]  }
 0x506   : > { %v8719_v27 = vpack.c.bf16 %v2812_v24, %v2812_v24  ;;  %v7696_v24 = vld [vmem:[#allocation7 + $0x270] ss:$8 sps:$4 sm:$0xff]  }
 0x507   : > { %v2814_v25 = vpop.f32.mrf.mxu0 }
 0x508   : > { %v2861_v26 = vpack.c.bf16 %v2814_v25, %v2814_v25  ;;  %v7701_v25 = vld [vmem:[#allocation7 + $0x264] ss:$8 sps:$4 sm:$0xff]  }
 0x509   : > { %v2816_v15 = vpop.f32.mrf.mxu0 }
 0x50a   : > { %3420 = vmatprep.mubr.bf16.mxu1 %v2861_v26 }
 0x50b   : > { %v2817_v63 = vpop.f32.mrf.mxu0  ;;  %3421 = vmatmul.mubr.bf16.vlgmr.msra.gmra.mxu1 %v8719_v27 }
 0x50c   : > { %3511 = vmatpush1.bf16.msra.mxu1 %v7643_v9  ;;  %v7707_v9 = vld [vmem:[#allocation7 + $0x254] ss:$8 sps:$4 sm:$0xff]  }
 0x50d   : > { %v2853_v29 = vpop.f32.mrf.mxu0  ;;  %3512 = vmatprep.subr.bf16.mxu1 %v8332_v17 }
 0x50e   : > { %v2862_v34 = vpack.c.bf16 %v2853_v29, %v2853_v29 }
 0x50f   : > { %v2855_v30 = vpop.f32.mrf.mxu0 }
 0x510   : > { %v2863_v31 = vpack.c.bf16 %v2855_v30, %v2855_v30  ;;  %3513 = vmatpush1.bf16.msra.mxu1 %v7647_v28  ;;  %v3553_v30 = vld [vmem:[%s8868_s6] sm:$0x7] }
 0x511   : > { %v2857_v35 = vpop.f32.mrf.mxu0  ;;  %3514 = vmatprep.subr.bf16.mxu1 %v8332_v17 }
 0x512   : > { %6729 = vmatprep.mubr.msk.bf16.mxu0 %vm2026_vm5, %v2863_v31  ;;  %6730 = vmatprep.mubr.msk.bf16.mxu1 %vm2026_vm5, %v2863_v31 }
 0x513   : > { %v2858_v37 = vpop.f32.mrf.mxu0  ;;  %3462 = vmatmul.mubr.bf16.vlgmr.msra.gmra.mxu0 %v2862_v34 }
 0x514   : > { %7104 = vmatpush3.bf16.msra.mxu0 %v7649_v32  ;;  %3515 = vmatpush1.bf16.msra.mxu1 %v7650_v33  ;;  %v3558_v33 = vrot.slane %v3553_v30, %v8595_v13  ;;  %v3562_v37 = vrot.slane %v3553_v30, %v8604_v16 }
 0x515   : > { %3502 = vmatprep.mubr.bf16.mxu0 %v2861_v26  ;;  %7105 = vmatprep.subr.bf16.mxu0 %v7651_v36  ;;  %v7699_v26 = vld [vmem:[#allocation7 + $0x260] ss:$8 sps:$4 sm:$0xff]  }
 0x516   : > { %3516 = vmatprep.subr.bf16.mxu1 %v8332_v17 }
 0x518   : > { %7106 = vmatpush3.bf16.msra.mxu0 %v7652_v38  ;;  %3517 = vmatpush1.bf16.msra.mxu1 %v7653_v39 }
 0x519   : > { %7107 = vmatprep.subr.bf16.mxu0 %v7654_v40  ;;  %3518 = vmatprep.subr.bf16.mxu1 %v8332_v17 }
 0x51c   : > { %7108 = vmatpush3.bf16.msra.mxu0 %v7655_v3  ;;  %3519 = vmatpush1.bf16.msra.mxu1 %v7656_v41 }
 0x51d   : > { %7109 = vmatprep.subr.bf16.mxu0 %v7657_v5  ;;  %3520 = vmatprep.subr.bf16.mxu1 %v8332_v17 }
 0x520   : > { %7110 = vmatpush3.bf16.msra.mxu0 %v7658_v42  ;;  %3521 = vmatpush1.bf16.msra.mxu1 %v7659_v4 }
 0x521   : > { %7111 = vmatprep.subr.bf16.mxu0 %v7660_v43  ;;  %3522 = vmatprep.subr.bf16.mxu1 %v8332_v17 }
 0x524   : > { %7112 = vmatpush3.bf16.msra.mxu0 %v7661_v44  ;;  %3523 = vmatpush1.bf16.msra.mxu1 %v7662_v45 }
 0x525   : > { %7113 = vmatprep.subr.bf16.mxu0 %v7663_v6  ;;  %3524 = vmatprep.subr.bf16.mxu1 %v8332_v17 }
 0x528   : > { %7114 = vmatpush3.bf16.msra.mxu0 %v7664_v46  ;;  %3525 = vmatpush1.bf16.msra.mxu1 %v7665_v47 }
 0x529   : > { %7115 = vmatprep.subr.bf16.mxu0 %v7666_v48  ;;  %3538 = vmatprep.subr.bf16.mxu1 %v8332_v17 }
 0x52c   : > { %7116 = vmatpush3.bf16.msra.mxu0 %v7667_v49  ;;  %3539 = vmatpush2.bf16.msra.mxu1 %v7668_v50 }
 0x52d   : > { %7117 = vmatprep.subr.bf16.mxu0 %v7669_v51  ;;  %3540 = vmatprep.subr.bf16.mxu1 %v8332_v17  ;;  %v3566_v51 = vrot.slane %v3553_v30, %v8598_v14  ;;  %v7735_v30 = vld [vmem:[#allocation7 + $0x200] ss:$8 sps:$4 sm:$0xff]  }
 0x530   : > { %7118 = vmatpush3.bf16.msra.mxu0 %v7670_v52  ;;  %3541 = vmatpush2.bf16.msra.mxu1 %v7671_v53 }
 0x531   : > { %4104 = vmatprep.subr.bf16.mxu1 %v7674_v55 }
 0x533   : > { %3503 = vmatmul.mubr.bf16.vlgmr.msra.gmra.mxu0 %v8719_v27  ;;  %3543 = vmatmul.mubr.bf16.vlgmr.msra.gmra.mxu1 %v2862_v34  ;;  %v7705_v27 = vld [vmem:[#allocation7 + $0x250] ss:$8 sps:$4 sm:$0xff]  }
 0x534   : > { %3626 = vmatprep.mubr.bf16.mxu0 %v8332_v17  ;;  %4105 = vmatpush1.bf16.msra.mxu1 %v7672_v54 }
 0x535   : > { %4106 = vmatprep.subr.bf16.mxu1 %v7677_v56 }
 0x538   : > { %4107 = vmatpush1.bf16.msra.mxu1 %v7675_v57 }
 0x539   : > { %4108 = vmatprep.subr.bf16.mxu1 %v7680_v59 }
 0x53c   : > { %4109 = vmatpush1.bf16.msra.mxu1 %v7678_v61  ;;  %v7704_v61 = vld [vmem:[#allocation7 + $0x2f4] ss:$8 sps:$4 sm:$0xff]  }
 0x53d   : > { %4110 = vmatprep.subr.bf16.mxu1 %v7683_v60  ;;  %v7702_v60 = vld [vmem:[#allocation7 + $0x2f0] ss:$8 sps:$4 sm:$0xff]  }
 0x540   : > { %4111 = vmatpush1.bf16.msra.mxu1 %v7681_v10  ;;  %v7708_v10 = vld [vmem:[#allocation7 + $0x2e0] ss:$8 sps:$4 sm:$0xff]  }
 0x541   : > { %4112 = vmatprep.subr.bf16.mxu1 %v7686_v1  ;;  %v7710_v1 = vld [vmem:[#allocation7 + $0x2e4] ss:$8 sps:$4 sm:$0xff]  }
 0x544   : > { %4113 = vmatpush1.bf16.msra.mxu1 %v7684_v2  ;;  %v7711_v2 = vld [vmem:[#allocation7 + $0x240] ss:$8 sps:$4 sm:$0xff]  }
 0x545   : > { %4114 = vmatprep.subr.bf16.mxu1 %v7689_v7  ;;  %v7713_v7 = vld [vmem:[#allocation7 + $0x244] ss:$8 sps:$4 sm:$0xff]  }
 0x548   : > { %4115 = vmatpush1.bf16.msra.mxu1 %v7687_v8  ;;  %v7714_v8 = vld [vmem:[#allocation7 + $0x2d0] ss:$8 sps:$4 sm:$0xff]  }
 0x549   : > { %4116 = vmatprep.subr.bf16.mxu1 %v7692_v19  ;;  %v7716_v19 = vld [vmem:[#allocation7 + $0x2d4] ss:$8 sps:$4 sm:$0xff]  }
 0x54c   : > { %4117 = vmatpush1.bf16.msra.mxu1 %v7690_v12  ;;  %v7717_v12 = vld [vmem:[#allocation7 + $0x230] ss:$8 sps:$4 sm:$0xff]  }
 0x54d   : > { %4118 = vmatprep.subr.bf16.mxu1 %v7695_v20  ;;  %v7719_v20 = vld [vmem:[#allocation7 + $0x234] ss:$8 sps:$4 sm:$0xff]  }
 0x550   : > { %4119 = vmatpush1.bf16.msra.mxu1 %v7693_v21  ;;  %v7722_v21 = vld [vmem:[#allocation7 + $0x2c4] ss:$8 sps:$4 sm:$0xff]  }
 0x551   : > { %4120 = vmatprep.subr.bf16.mxu1 %v7698_v22  ;;  %v7720_v22 = vld [vmem:[#allocation7 + $0x2c0] ss:$8 sps:$4 sm:$0xff]  }
 0x554   : > { %4121 = vmatpush2.bf16.msra.mxu1 %v7696_v24  ;;  %v7725_v24 = vld [vmem:[#allocation7 + $0x224] ss:$8 sps:$4 sm:$0xff]  }
 0x555   : > { %4122 = vmatprep.subr.bf16.mxu1 %v7701_v25  ;;  %v7723_v25 = vld [vmem:[#allocation7 + $0x220] ss:$8 sps:$4 sm:$0xff]  }
 0x558   : > { %4123 = vmatpush2.bf16.msra.mxu1 %v7699_v26  ;;  %v7728_v26 = vld [vmem:[#allocation7 + $0x2b4] ss:$8 sps:$4 sm:$0xff]  }
 0x559   : > { %4124 = vmatprep.subr.bf16.mxu1 %v7707_v9  ;;  %v7726_v9 = vld [vmem:[#allocation7 + $0x2b0] ss:$8 sps:$4 sm:$0xff]  }
 0x55c   : > { %4125 = vmatpush2.bf16.msra.mxu1 %v7705_v27  ;;  %v7729_v27 = vld [vmem:[#allocation7 + $0x210] ss:$8 sps:$4 sm:$0xff]  }
 0x55d   : > { %4126 = vmatprep.subr.bf16.mxu1 %v7713_v7  ;;  %v7762_v7 = vld [vmem:[#allocation7 + $0x50] ss:$8 sps:$4 sm:$0xff]  }
 0x560   : > { %4127 = vmatpush2.bf16.msra.mxu1 %v7711_v2  ;;  %v7759_v2 = vld [vmem:[#allocation7 + $0x140] ss:$8 sps:$4 sm:$0xff]  }
 0x561   : > { %4128 = vmatprep.subr.bf16.mxu1 %v7719_v20  ;;  %v7768_v20 = vld [vmem:[#allocation7 + $0x40] ss:$8 sps:$4 sm:$0xff]  }
 0x564   : > { %4129 = vmatpush2.bf16.msra.mxu1 %v7717_v12  ;;  %v7765_v12 = vld [vmem:[#allocation7 + $0x130] ss:$8 sps:$4 sm:$0xff]  }
 0x565   : > { %4130 = vmatprep.subr.bf16.mxu1 %v7725_v24  ;;  %v7771_v24 = vld [vmem:[#allocation7 + $0x120] ss:$8 sps:$4 sm:$0xff]  }
 0x568   : > { %4131 = vmatpush2.bf16.msra.mxu1 %v7723_v25  ;;  %v7774_v25 = vld [vmem:[#allocation7 + $0x30] ss:$8 sps:$4 sm:$0xff]  }
 0x5cb   : > { %v3422_v15 = vpop.f32.mrf.mxu1 }
 0x5cd   : > { %v3424_v63 = vpop.f32.mrf.mxu1 }
 0x5cf   : > { %v3426_v28 = vpop.f32.mrf.mxu1 }
 0x5d0   : > { %v7732_v28 = vld [vmem:[#allocation7 + $0x2a0] ss:$8 sps:$4 sm:$0xff]  }
 0x5d1   : > { %v3427_v29 = vpop.f32.mrf.mxu1 }
 0x5d2   : > { %v7737_v29 = vld [vmem:[#allocation7 + $0x204] ss:$8 sps:$4 sm:$0xff]  }
 0x5d3   : > { %v3463_v31 = vpop.f32.mrf.mxu0 }
 0x5d4   : > { %v3464_v32 = vadd.f32 %v3463_v31, %v3422_v15  ;;  %v7731_v15 = vld [vmem:[#allocation7 + $0x214] ss:$8 sps:$4 sm:$0xff]  }
 0x5d5   : > { %v3465_v34 = vpop.f32.mrf.mxu0  ;;  %4132 = vmatprep.subr.bf16.mxu1 %v7731_v15  ;;  %v7740_v31 = vld [vmem:[#allocation7 + $0x294] ss:$8 sps:$4 sm:$0xff]   ;;  %v7780_v15 = vld [vmem:[#allocation7 + $0x20] ss:$8 sps:$4 sm:$0xff]  }
 0x5d6   : > { %v3550_v35 = vadd.f32 %v3464_v32, %v8713_v58  ;;  %v3466_v36 = vadd.f32 %v3465_v34, %v3424_v63  ;;  %v7734_v63 = vld [vmem:[#allocation7 + $0x2a4] ss:$8 sps:$4 sm:$0xff]   ;;  %4133 = vmatpush2.bf16.msra.mxu1 %v7729_v27  ;;  %v7738_v32 = vld [vmem:[#allocation7 + $0x290] ss:$8 sps:$4 sm:$0xff]  }
 0x5d7   : > { %v3467_v38 = vpop.f32.mrf.mxu0  ;;  %4134 = vmatprep.subr.bf16.mxu1 %v7737_v29  ;;  %v7746_v34 = vld [vmem:[#allocation7 + $0x284] ss:$8 sps:$4 sm:$0xff]   ;;  %v7777_v27 = vld [vmem:[#allocation7 + $0x110] ss:$8 sps:$4 sm:$0xff]   ;;  %v7783_v29 = vld [vmem:[#allocation7 + $0x100] ss:$8 sps:$4 sm:$0xff]  }
 0x5d8   : > { %v3570_v39 = vadd.f32 %v3558_v33, %v3550_v35  ;;  %v3551_v40 = vadd.f32 %v3466_v36, %v8715_v62  ;;  %v3579_v62 = vld [vmem:[%s8869_s7] sm:$0x1]  ;;  %v7743_v33 = vld [vmem:[#allocation7 + $0x174] ss:$8 sps:$4 sm:$0xff]   ;;  %v7744_v35 = vld [vmem:[#allocation7 + $0x280] ss:$8 sps:$4 sm:$0xff]  }
 0x5d9   : > { %v3468_v3 = vpop.f32.mrf.mxu0  ;;  %v7752_v36 = vld [vmem:[#allocation7 + $0x74] ss:$8 sps:$4 sm:$0xff]  }
 0x5da   : > { %v3573_v41 = vmax.f32 %v3570_v39, 0.0  ;;  %v3571_v5 = vadd.f32 %v3562_v37, %v3551_v40  ;;  %4135 = vmatpush2.bf16.msra.mxu1 %v7735_v30  ;;  %v7786_v30 = vld [vmem:[#allocation7 + $0x10] ss:$8 sps:$4 sm:$0xff]  }
 0x5db   : > { %4467 = vmatprep.subr.bf16.mxu1 %v7743_v33  ;;  %v7789_v33 = vld [vmem:[#allocation7] ss:$8 sps:$4 sm:$0xff]  }
 0x5dc   : > { %v3574_v42 = vmax.f32 %v3571_v5, 0.0  ;;  %v3576_v4 = vpack.c.bf16 %v3573_v41, %v3573_v41 }
 0x5de   : > { %v8742_v43 = vpack.c.bf16 %v3574_v42, %v3574_v42  ;;  %v8747_v58 = vsel %vm3584_vm6, %v3576_v4, 0 }
 0x5e0   : > { %6731 = vmatprep.subr.msk.bf16.mxu0 %vm3584_vm6, %v8742_v43 }
 0x5e1   : > { %3609 = vmatpush1.bf16.msra.mxu0 %v8747_v58 }
 0x5e2   : > { %7199 = vmatprep.subr.bf16.mxu0 %v8330_v0 }
 0x5e4   : > { %6732 = vmatmul.mubr.msk.bf16.vlgmr.msra.gmra.mxu0 %vm3580_vm7, %v3579_v62 }
 0x5e5   : > { %7201 = vmatprep.mubr.msk.bf16.mxu0 %vm8331_vm0, %v8330_v0 }
 0x5f3   : > { %v7119_v44 = vpop.f32.mrf.mxu0  ;;  %v3544_v45 = vpop.f32.mrf.mxu1 }
 0x5f5   : > { %v7120_v6 = vpop.f32.mrf.mxu0  ;;  %v3546_v46 = vpop.f32.mrf.mxu1 }
 0x5f6   : > { %v7121_v47 = vadd.f32 %v7120_v6, %v7119_v44 }
 0x5f7   : > { %v7122_v48 = vpop.f32.mrf.mxu0  ;;  %v3547_v49 = vpop.f32.mrf.mxu1 }
 0x5f8   : > { %v3545_v50 = vadd.f32 %v7121_v47, %v3544_v45  ;;  %v7741_v45 = vld [vmem:[#allocation7 + $0x170] ss:$8 sps:$4 sm:$0xff]   ;;  %v7749_v47 = vld [vmem:[#allocation7 + $0x164] ss:$8 sps:$4 sm:$0xff]   ;;  %v7747_v49 = vld [vmem:[#allocation7 + $0x160] ss:$8 sps:$4 sm:$0xff]  }
 0x5f9   : > { %v7123_v52 = vpop.f32.mrf.mxu0  ;;  %v3548_v53 = vpop.f32.mrf.mxu1 }
 0x5fa   : > { %v3552_v54 = vadd.f32 %v3545_v50, %v8717_v23  ;;  %v6734_v23 = vld [vmem:[%s8869_s7 + $0x1] sm:$0x1]  ;;  %v7755_v53 = vld [vmem:[#allocation7 + $0x154] ss:$8 sps:$4 sm:$0xff]  }
 0x5fc   : > { %v3572_v55 = vadd.f32 %v3566_v51, %v3552_v54  ;;  %v7750_v51 = vld [vmem:[#allocation7 + $0x70] ss:$8 sps:$4 sm:$0xff]   ;;  %v7758_v54 = vld [vmem:[#allocation7 + $0x64] ss:$8 sps:$4 sm:$0xff]  }
 0x5fe   : > { %v3575_v56 = vmax.f32 %v3572_v55, 0.0 }
 0x600   : > { %v3578_v57 = vpack.c.bf16 %v3575_v56, %v3575_v56 }
 0x602   : > { %v8760_v59 = vsel %vm3584_vm6, %v3578_v57, 0  ;;  %v7753_v57 = vld [vmem:[#allocation7 + $0x150] ss:$8 sps:$4 sm:$0xff]  }
 0x603   : > { %7200 = vmatpush3.bf16.msra.mxu0 %v8760_v59 }
 0x604   : > { %6735 = vmatprep.subr.msk.bf16.mxu0 %vm3584_vm6, %v8742_v43 }
 0x606   : > { %7202 = vmatmul.mubr.msk.bf16.vlgmr.msra.gmra.mxu0 %vm3580_vm7, %v3579_v62 }
 0x607   : > { %3746 = vmatpush1.bf16.msra.mxu0 %v8747_v58  ;;  %3763 = vmatprep.mubr.bf16.mxu0 %v8332_v17 }
 0x608   : > { %7205 = vmatprep.subr.bf16.mxu0 %v8330_v0 }
 0x60e   : > { %6736 = vmatmul.mubr.msk.bf16.vlgmr.msra.gmra.mxu0 %vm3580_vm7, %v6734_v23 }
 0x60f   : > { %7206 = vmatpush3.bf16.msra.mxu0 %v8760_v59  ;;  %7207 = vmatprep.mubr.msk.bf16.mxu0 %vm8331_vm0, %v8330_v0 }
 0x610   : > { %4145 = vmatprep.subr.bf16.mxu0 %v7704_v61  ;;  %v7756_v61 = vld [vmem:[#allocation7 + $0x60] ss:$8 sps:$4 sm:$0xff]  }
 0x616   : > { %7208 = vmatmul.mubr.msk.bf16.vlgmr.msra.gmra.mxu0 %vm3580_vm7, %v6734_v23 }
 0x617   : > { %4146 = vmatpush1.bf16.msra.mxu0 %v7702_v60  ;;  %4177 = vmatprep.mubr.bf16.mxu0 %v8332_v17  ;;  %v7761_v60 = vld [vmem:[#allocation7 + $0x144] ss:$8 sps:$4 sm:$0xff]  }
 0x618   : > { %4147 = vmatprep.subr.bf16.mxu0 %v7710_v1 }
 0x61b   : > { %4148 = vmatpush1.bf16.msra.mxu0 %v7708_v10  ;;  %v7764_v10 = vld [vmem:[#allocation7 + $0x54] ss:$8 sps:$4 sm:$0xff]  }
 0x61c   : > { %4149 = vmatprep.subr.bf16.mxu0 %v7716_v19  ;;  %v7770_v19 = vld [vmem:[#allocation7 + $0x44] ss:$8 sps:$4 sm:$0xff]  }
 0x61f   : > { %4150 = vmatpush1.bf16.msra.mxu0 %v7714_v8  ;;  %v7767_v8 = vld [vmem:[#allocation7 + $0x134] ss:$8 sps:$4 sm:$0xff]  }
 0x620   : > { %4151 = vmatprep.subr.bf16.mxu0 %v7722_v21  ;;  %v7773_v21 = vld [vmem:[#allocation7 + $0x124] ss:$8 sps:$4 sm:$0xff]  }
 0x623   : > { %4152 = vmatpush1.bf16.msra.mxu0 %v7720_v22  ;;  %v7776_v22 = vld [vmem:[#allocation7 + $0x34] ss:$8 sps:$4 sm:$0xff]  }
 0x624   : > { %4153 = vmatprep.subr.bf16.mxu0 %v7728_v26  ;;  %v7779_v26 = vld [vmem:[#allocation7 + $0x114] ss:$8 sps:$4 sm:$0xff]  }
 0x627   : > { %4154 = vmatpush1.bf16.msra.mxu0 %v7726_v9  ;;  %v7782_v9 = vld [vmem:[#allocation7 + $0x24] ss:$8 sps:$4 sm:$0xff]  }
 0x628   : > { %4155 = vmatprep.subr.bf16.mxu0 %v7734_v63  ;;  %v7785_v63 = vld [vmem:[#allocation7 + $0x104] ss:$8 sps:$4 sm:$0xff]  }
 0x62b   : > { %4156 = vmatpush1.bf16.msra.mxu0 %v7732_v28  ;;  %v7788_v28 = vld [vmem:[#allocation7 + $0x14] ss:$8 sps:$4 sm:$0xff]  }
 0x62c   : > { %4157 = vmatprep.subr.bf16.mxu0 %v7740_v31  ;;  %v7791_v31 = vld [vmem:[#allocation7 + $0x4] ss:$8 sps:$4 sm:$0xff]  }
 0x62f   : > { %4158 = vmatpush1.bf16.msra.mxu0 %v7738_v32 }
 0x630   : > { %4159 = vmatprep.subr.bf16.mxu0 %v7746_v34  ;;  %v7794_v34 = vld [vmem:[#allocation7 + $0xf4] ss:$8 sps:$4 sm:$0xff]  }
 0x633   : > { %4160 = vmatpush1.bf16.msra.mxu0 %v7744_v35  ;;  %v7792_v35 = vld [vmem:[#allocation7 + $0xf0] ss:$8 sps:$4 sm:$0xff]  }
 0x634   : > { %4426 = vmatprep.subr.bf16.mxu0 %v7752_v36  ;;  %v7797_v36 = vld [vmem:[#allocation7 + $0xe4] ss:$8 sps:$4 sm:$0xff]  }
 0x6a4   : > { %v8778_v37 = vpop.f32.mrf.mxu0 }
 0x6a6   : > { %v3630_v38 = vpop.f32.mrf.mxu0 }
 0x6a7   : > { %v3676_v55 = vpack.c.bf16 %v3630_v38, %v3630_v38  ;;  %v6834_v38 = vld [vmem:[%s8869_s7 + $0x2] sm:$0x1] }
 0x6a8   : > { %v3632_v39 = vpop.f32.mrf.mxu0 }
 0x6a9   : > { %v7795_v39 = vld [vmem:[#allocation7 + $0xe0] ss:$8 sps:$4 sm:$0xff]  }
 0x6aa   : > { %v3633_v40 = vpop.f32.mrf.mxu0 }
 0x6ab   : > { %v7798_v40 = vld [vmem:[#allocation7 + $0xd0] ss:$8 sps:$4 sm:$0xff]  }
 0x6c6   : > { %v8780_v3 = vpop.f32.mrf.mxu0 }
 0x6c7   : > { %v3677_v32 = vpack.c.bf16 %v8780_v3, %v8780_v3  ;;  %v7801_v3 = vld [vmem:[#allocation7 + $0xc0] ss:$8 sps:$4 sm:$0xff]  }
 0x6c8   : > { %v7203_v41 = vpop.f32.mrf.mxu0 }
 0x6c9   : > { %v7806_v41 = vld [vmem:[#allocation7 + $0xb4] ss:$8 sps:$4 sm:$0xff]  }
 0x6ca   : > { %v3672_v5 = vpop.f32.mrf.mxu0 }
 0x6cb   : > { %v7804_v5 = vld [vmem:[#allocation7 + $0xb0] ss:$8 sps:$4 sm:$0xff]  }
 0x6cc   : > { %v7204_v42 = vpop.f32.mrf.mxu0 }
 0x6cd   : > { %v7809_v42 = vld [vmem:[#allocation7 + $0xa4] ss:$8 sps:$4 sm:$0xff]  }
 0x6ce   : > { %v3765_v4 = vpop.f32.mrf.mxu0 }
 0x6cf   : > { %v3812_v6 = vpack.c.bf16 %v3765_v4, %v3765_v4  ;;  %v7807_v4 = vld [vmem:[#allocation7 + $0xa0] ss:$8 sps:$4 sm:$0xff]  }
 0x6d0   : > { %v3767_v62 = vpop.f32.mrf.mxu0 }
 0x6d1   : > { %v3813_v44 = vpack.c.bf16 %v3767_v62, %v3767_v62  ;;  %v7812_v62 = vld [vmem:[#allocation7 + $0x94] ss:$8 sps:$4 sm:$0xff]  }
 0x6d2   : > { %v3769_v46 = vpop.f32.mrf.mxu0 }
 0x6d3   : > { %4136 = vmatprep.mubr.bf16.mxu1 %v3813_v44  ;;  %v7810_v44 = vld [vmem:[#allocation7 + $0x90] ss:$8 sps:$4 sm:$0xff]   ;;  %v3675_v46 = vpack.c.bf16 %v8778_v37, %v8778_v37  ;;  %v7827_v37 = vld [vmem:[#allocation7 + $0x344] ss:$8 sps:$4 sm:$0xff]  }
 0x6d4   : > { %v3770_v48 = vpop.f32.mrf.mxu0  ;;  %4137 = vmatmul.mubr.bf16.vlgmr.msra.gmra.mxu1 %v3812_v6  ;;  %v7813_v6 = vld [vmem:[#allocation7 + $0x80] ss:$8 sps:$4 sm:$0xff]  }
 0x6d5   : > { %4468 = vmatpush1.bf16.msra.mxu1 %v7741_v45  ;;  %4499 = vmatprep.mubr.bf16.mxu1 %v8332_v17  ;;  %v7815_v45 = vld [vmem:[#allocation7 + $0x84] ss:$8 sps:$4 sm:$0xff]   ;;  %v7816_v48 = vld [vmem:[#allocation7 + $0x370] ss:$8 sps:$4 sm:$0xff]  }
 0x6d6   : > { %v3806_v50 = vpop.f32.mrf.mxu0  ;;  %4469 = vmatprep.subr.bf16.mxu1 %v7749_v47  ;;  %v7818_v47 = vld [vmem:[#allocation7 + $0x374] ss:$8 sps:$4 sm:$0xff]  }
 0x6d7   : > { %v3814_v52 = vpack.c.bf16 %v3806_v50, %v3806_v50  ;;  %v7819_v50 = vld [vmem:[#allocation7 + $0x360] ss:$8 sps:$4 sm:$0xff]  }
 0x6d8   : > { %v7209_v56 = vpop.f32.mrf.mxu0 }
 0x6d9   : > { %4470 = vmatpush1.bf16.msra.mxu1 %v7747_v49  ;;  %4178 = vmatmul.mubr.bf16.vlgmr.msra.gmra.mxu0 %v3814_v52  ;;  %v7821_v49 = vld [vmem:[#allocation7 + $0x364] ss:$8 sps:$4 sm:$0xff]   ;;  %v7822_v52 = vld [vmem:[#allocation7 + $0x350] ss:$8 sps:$4 sm:$0xff]   ;;  %v7836_v56 = vld [vmem:[#allocation7 + $0x314] ss:$8 sps:$4 sm:$0xff]  }
 0x6da   : > { %4427 = vmatpush1.bf16.msra.mxu0 %v7750_v51  ;;  %v3809_v23 = vpop.f32.mrf.mxu0  ;;  %4458 = vmatprep.mubr.bf16.mxu0 %v3676_v55  ;;  %v7824_v51 = vld [vmem:[#allocation7 + $0x354] ss:$8 sps:$4 sm:$0xff]   ;;  %v7831_v55 = vld [vmem:[#allocation7 + $0x320] ss:$8 sps:$4 sm:$0xff]  }
 0x6db   : > { %4471 = vmatprep.subr.bf16.mxu1 %v7755_v53  ;;  %4428 = vmatprep.subr.bf16.mxu0 %v7758_v54  ;;  %v7830_v53 = vld [vmem:[#allocation7 + $0x334] ss:$8 sps:$4 sm:$0xff]   ;;  %v7833_v54 = vld [vmem:[#allocation7 + $0x324] ss:$8 sps:$4 sm:$0xff]  }
 0x6dc   : > { %v7210_v1 = vpop.f32.mrf.mxu0  ;;  %v7839_v23 = vld [vmem:[#allocation7 + $0x304] ss:$8 sps:$4 sm:$0xff]  }
 0x6dd   : > { %4472 = vmatpush1.bf16.msra.mxu1 %v7753_v57  ;;  %v7834_v57 = vld [vmem:[#allocation7 + $0x310] ss:$8 sps:$4 sm:$0xff]  }
 0x6de   : > { %4429 = vmatpush1.bf16.msra.mxu0 %v7756_v61  ;;  %4473 = vmatprep.subr.bf16.mxu1 %v7761_v60  ;;  %v7837_v61 = vld [vmem:[#allocation7 + $0x300] ss:$8 sps:$4 sm:$0xff]   ;;  %v7840_v60 = vld [vmem:[#allocation7 + $0x3f0] ss:$8 sps:$4 sm:$0xff]  }
 0x6df   : > { %4430 = vmatprep.subr.bf16.mxu0 %v7764_v10  ;;  %v7845_v10 = vld [vmem:[#allocation7 + $0x3e4] ss:$8 sps:$4 sm:$0xff]   ;;  %v7846_v1 = vld [vmem:[#allocation7 + $0x470] ss:$8 sps:$4 sm:$0xff]  }
 0x6e1   : > { %4474 = vmatpush1.bf16.msra.mxu1 %v7759_v2  ;;  %v7848_v2 = vld [vmem:[#allocation7 + $0x474] ss:$8 sps:$4 sm:$0xff]  }
 0x6e2   : > { %4431 = vmatpush1.bf16.msra.mxu0 %v7762_v7  ;;  %4475 = vmatprep.subr.bf16.mxu1 %v7767_v8  ;;  %v7843_v7 = vld [vmem:[#allocation7 + $0x3e0] ss:$8 sps:$4 sm:$0xff]   ;;  %v7854_v8 = vld [vmem:[#allocation7 + $0x464] ss:$8 sps:$4 sm:$0xff]  }
 0x6e3   : > { %4432 = vmatprep.subr.bf16.mxu0 %v7770_v19  ;;  %v7851_v19 = vld [vmem:[#allocation7 + $0x3d4] ss:$8 sps:$4 sm:$0xff]  }
 0x6e5   : > { %4476 = vmatpush1.bf16.msra.mxu1 %v7765_v12  ;;  %v7852_v12 = vld [vmem:[#allocation7 + $0x460] ss:$8 sps:$4 sm:$0xff]  }
 0x6e6   : > { %4433 = vmatpush1.bf16.msra.mxu0 %v7768_v20  ;;  %4477 = vmatprep.subr.bf16.mxu1 %v7773_v21  ;;  %v7860_v20 = vld [vmem:[#allocation7 + $0x454] ss:$8 sps:$4 sm:$0xff]   ;;  %v7849_v21 = vld [vmem:[#allocation7 + $0x3d0] ss:$8 sps:$4 sm:$0xff]  }
 0x6e7   : > { %4434 = vmatprep.subr.bf16.mxu0 %v7776_v22  ;;  %v7857_v22 = vld [vmem:[#allocation7 + $0x3c4] ss:$8 sps:$4 sm:$0xff]  }
 0x6e9   : > { %4478 = vmatpush1.bf16.msra.mxu1 %v7771_v24  ;;  %v7858_v24 = vld [vmem:[#allocation7 + $0x450] ss:$8 sps:$4 sm:$0xff]  }
 0x6ea   : > { %4435 = vmatpush1.bf16.msra.mxu0 %v7774_v25  ;;  %4479 = vmatprep.subr.bf16.mxu1 %v7779_v26  ;;  %v7866_v25 = vld [vmem:[#allocation7 + $0x444] ss:$8 sps:$4 sm:$0xff]   ;;  %v7855_v26 = vld [vmem:[#allocation7 + $0x3c0] ss:$8 sps:$4 sm:$0xff]  }
 0x6eb   : > { %4436 = vmatprep.subr.bf16.mxu0 %v7782_v9  ;;  %v7863_v9 = vld [vmem:[#allocation7 + $0x3b4] ss:$8 sps:$4 sm:$0xff]  }
 0x6ed   : > { %4480 = vmatpush1.bf16.msra.mxu1 %v7777_v27  ;;  %v7864_v27 = vld [vmem:[#allocation7 + $0x440] ss:$8 sps:$4 sm:$0xff]  }
 0x6ee   : > { %4437 = vmatpush1.bf16.msra.mxu0 %v7780_v15  ;;  %4481 = vmatprep.subr.bf16.mxu1 %v7785_v63  ;;  %v7872_v15 = vld [vmem:[#allocation7 + $0x434] ss:$8 sps:$4 sm:$0xff]   ;;  %v7861_v63 = vld [vmem:[#allocation7 + $0x3b0] ss:$8 sps:$4 sm:$0xff]  }
 0x6ef   : > { %4438 = vmatprep.subr.bf16.mxu0 %v7788_v28  ;;  %v7869_v28 = vld [vmem:[#allocation7 + $0x3a4] ss:$8 sps:$4 sm:$0xff]  }
 0x6f1   : > { %4482 = vmatpush1.bf16.msra.mxu1 %v7783_v29  ;;  %v7870_v29 = vld [vmem:[#allocation7 + $0x430] ss:$8 sps:$4 sm:$0xff]  }
 0x6f2   : > { %4439 = vmatpush1.bf16.msra.mxu0 %v7786_v30  ;;  %6835 = vmatprep.subr.msk.bf16.mxu1 %vm3584_vm6, %v8742_v43  ;;  %v7800_v43 = vld [vmem:[#allocation7 + $0xd4] ss:$8 sps:$4 sm:$0xff]   ;;  %v7878_v30 = vld [vmem:[#allocation7 + $0x424] ss:$8 sps:$4 sm:$0xff]  }
 0x6f3   : > { %4440 = vmatprep.subr.bf16.mxu0 %v7791_v31  ;;  %v7867_v31 = vld [vmem:[#allocation7 + $0x3a0] ss:$8 sps:$4 sm:$0xff]  }
 0x6f4   : > { %4500 = vmatmul.mubr.bf16.vlgmr.msra.gmra.mxu1 %v3677_v32  ;;  %v7875_v32 = vld [vmem:[#allocation7 + $0x394] ss:$8 sps:$4 sm:$0xff]  }
 0x6f5   : > { %4528 = vmatpush1.bf16.msra.mxu1 %v8747_v58  ;;  %4545 = vmatprep.mubr.bf16.mxu1 %v8332_v17  ;;  %v7803_v58 = vld [vmem:[#allocation7 + $0xc4] ss:$8 sps:$4 sm:$0xff]  }
 0x6f6   : > { %4441 = vmatpush1.bf16.msra.mxu0 %v7789_v33  ;;  %4886 = vmatprep.subr.bf16.mxu1 %v7818_v47  ;;  %v7876_v33 = vld [vmem:[#allocation7 + $0x420] ss:$8 sps:$4 sm:$0xff]  }
 0x6f7   : > { %4442 = vmatprep.subr.bf16.mxu0 %v7794_v34  ;;  %v7873_v34 = vld [vmem:[#allocation7 + $0x390] ss:$8 sps:$4 sm:$0xff]  }
 0x6fa   : > { %4443 = vmatpush2.bf16.msra.mxu0 %v7792_v35  ;;  %v7881_v35 = vld [vmem:[#allocation7 + $0x384] ss:$8 sps:$4 sm:$0xff]  }
 0x6fb   : > { %4444 = vmatprep.subr.bf16.mxu0 %v7797_v36  ;;  %v7879_v36 = vld [vmem:[#allocation7 + $0x380] ss:$8 sps:$4 sm:$0xff]  }
 0x6fc   : > { %6836 = vmatmul.mubr.msk.bf16.vlgmr.msra.gmra.mxu1 %vm3580_vm7, %v6834_v38 }
 0x6fd   : > { %4887 = vmatpush1.bf16.msra.mxu1 %v7816_v48 }
 0x6fe   : > { %4445 = vmatpush2.bf16.msra.mxu0 %v7795_v39  ;;  %4888 = vmatprep.subr.bf16.mxu1 %v7821_v49  ;;  %v7882_v39 = vld [vmem:[#allocation7 + $0x410] ss:$8 sps:$4 sm:$0xff]  }
 0x6ff   : > { %4446 = vmatprep.subr.bf16.mxu0 %v7800_v43  ;;  %v7887_v43 = vld [vmem:[#allocation7 + $0x404] ss:$8 sps:$4 sm:$0xff]  }
 0x701   : > { %4889 = vmatpush1.bf16.msra.mxu1 %v7819_v50 }
 0x702   : > { %4447 = vmatpush2.bf16.msra.mxu0 %v7798_v40  ;;  %4890 = vmatprep.subr.bf16.mxu1 %v7824_v51  ;;  %v7885_v40 = vld [vmem:[#allocation7 + $0x400] ss:$8 sps:$4 sm:$0xff]  }
 0x703   : > { %4448 = vmatprep.subr.bf16.mxu0 %v7803_v58  ;;  %v7890_v58 = vld [vmem:[#allocation8 + $0x2e4] ss:$16 sps:$4 sm:$0xff]  }
 0x705   : > { %4891 = vmatpush1.bf16.msra.mxu1 %v7822_v52 }
 0x706   : > { %4449 = vmatpush2.bf16.msra.mxu0 %v7801_v3  ;;  %4892 = vmatprep.subr.bf16.mxu1 %v7827_v37  ;;  %v7893_v3 = vld [vmem:[#allocation8 + $0x2ec] ss:$16 sps:$4 sm:$0xff]  }
 0x707   : > { %4450 = vmatprep.subr.bf16.mxu0 %v7806_v41 }
 0x70a   : > { %4451 = vmatpush2.bf16.msra.mxu0 %v7804_v5 }
 0x70b   : > { %4452 = vmatprep.subr.bf16.mxu0 %v7809_v42 }
 0x70e   : > { %4453 = vmatpush2.bf16.msra.mxu0 %v7807_v4 }
 0x70f   : > { %4454 = vmatprep.subr.bf16.mxu0 %v7812_v62 }
 0x712   : > { %4455 = vmatpush2.bf16.msra.mxu0 %v7810_v44 }
 0x713   : > { %4456 = vmatprep.subr.bf16.mxu0 %v7815_v45 }
 0x716   : > { %4457 = vmatpush2.bf16.msra.mxu0 %v7813_v6 }
 0x717   : > { %7211 = vmatprep.subr.bf16.mxu0 %v8330_v0 }
 0x719   : > { %4459 = vmatmul.mubr.bf16.vlgmr.msra.gmra.mxu0 %v3675_v46 }
 0x71a   : > { %7212 = vmatpush3.bf16.msra.mxu0 %v8760_v59  ;;  %7213 = vmatprep.mubr.msk.bf16.mxu0 %vm8331_vm0, %v8330_v0  ;;  %v7825_v59 = vld [vmem:[#allocation7 + $0x340] ss:$8 sps:$4 sm:$0xff]   ;;  %v7828_v0 = vld [vmem:[#allocation7 + $0x330] ss:$8 sps:$4 sm:$0xff]  }
 0x71b   : > { %4893 = vmatpush1.bf16.msra.mxu1 %v7825_v59  ;;  %4927 = vmatprep.subr.bf16.mxu0 %v7848_v2  ;;  %v7923_v2 = vld [vmem:[#allocation8 + $0x24c] ss:$16 sps:$4 sm:$0xff]  }
 0x71c   : > { %4894 = vmatprep.subr.bf16.mxu1 %v7830_v53 }
 0x71f   : > { %4895 = vmatpush1.bf16.msra.mxu1 %v7828_v0  ;;  %v7891_v0 = vld [vmem:[#allocation8 + $0x2e8] ss:$16 sps:$4 sm:$0xff]  }
 0x720   : > { %4896 = vmatprep.subr.bf16.mxu1 %v7833_v54 }
 0x721   : > { %7214 = vmatmul.mubr.msk.bf16.vlgmr.msra.gmra.mxu0 %vm3580_vm7, %v6834_v38  ;;  %v7884_v38 = vld [vmem:[#allocation7 + $0x414] ss:$8 sps:$4 sm:$0xff]  }
 0x722   : > { %4959 = vmatprep.mubr.bf16.mxu0 %v8332_v17  ;;  %v7842_v17 = vld [vmem:[#allocation7 + $0x3f4] ss:$8 sps:$4 sm:$0xff]   ;;  %4928 = vmatpush1.bf16.msra.mxu0 %v7846_v1  ;;  %v7915_v1 = vld [vmem:[#allocation8 + $0x268] ss:$16 sps:$4 sm:$0xff]  }
 0x723   : > { %4897 = vmatpush1.bf16.msra.mxu1 %v7831_v55  ;;  %4929 = vmatprep.subr.bf16.mxu0 %v7854_v8  ;;  %v7899_v55 = vld [vmem:[#allocation8 + $0x2cc] ss:$16 sps:$4 sm:$0xff]  }
 0x724   : > { %4898 = vmatprep.subr.bf16.mxu1 %v7836_v56  ;;  %v7929_v8 = vld [vmem:[#allocation8 + $0x22c] ss:$16 sps:$4 sm:$0xff]  }
 0x726   : > { %4930 = vmatpush1.bf16.msra.mxu0 %v7852_v12  ;;  %v7935_v12 = vld [vmem:[#allocation8 + $0x20c] ss:$16 sps:$4 sm:$0xff]  }
 0x727   : > { %4899 = vmatpush1.bf16.msra.mxu1 %v7834_v57  ;;  %4931 = vmatprep.subr.bf16.mxu0 %v7860_v20  ;;  %v7897_v57 = vld [vmem:[#allocation8 + $0x2c8] ss:$16 sps:$4 sm:$0xff]  }
 0x728   : > { %4900 = vmatprep.subr.bf16.mxu1 %v7839_v23  ;;  %v7905_v23 = vld [vmem:[#allocation8 + $0x2ac] ss:$16 sps:$4 sm:$0xff]  }
 0x72a   : > { %4932 = vmatpush1.bf16.msra.mxu0 %v7858_v24  ;;  %v7933_v24 = vld [vmem:[#allocation8 + $0x208] ss:$16 sps:$4 sm:$0xff]  }
 0x72b   : > { %4901 = vmatpush1.bf16.msra.mxu1 %v7837_v61  ;;  %4933 = vmatprep.subr.bf16.mxu0 %v7866_v25  ;;  %v7903_v61 = vld [vmem:[#allocation8 + $0x2a8] ss:$16 sps:$4 sm:$0xff]  }
 0x72c   : > { %4902 = vmatprep.subr.bf16.mxu1 %v7842_v17  ;;  %v7911_v17 = vld [vmem:[#allocation8 + $0x28c] ss:$16 sps:$4 sm:$0xff]  }
 0x72e   : > { %4934 = vmatpush1.bf16.msra.mxu0 %v7864_v27 }
 0x72f   : > { %4903 = vmatpush2.bf16.msra.mxu1 %v7840_v60  ;;  %4935 = vmatprep.subr.bf16.mxu0 %v7872_v15  ;;  %v7909_v60 = vld [vmem:[#allocation8 + $0x288] ss:$16 sps:$4 sm:$0xff]  }
 0x730   : > { %4904 = vmatprep.subr.bf16.mxu1 %v7845_v10  ;;  %v7917_v10 = vld [vmem:[#allocation8 + $0x26c] ss:$16 sps:$4 sm:$0xff]  }
 0x732   : > { %4936 = vmatpush1.bf16.msra.mxu0 %v7870_v29  ;;  %v7947_v29 = vld [vmem:[#allocation8 + $0x3cc] ss:$16 sps:$4 sm:$0xff]  }
 0x733   : > { %4905 = vmatpush2.bf16.msra.mxu1 %v7843_v7  ;;  %4937 = vmatprep.subr.bf16.mxu0 %v7878_v30  ;;  %v7921_v7 = vld [vmem:[#allocation8 + $0x248] ss:$16 sps:$4 sm:$0xff]  }
 0x734   : > { %4906 = vmatprep.subr.bf16.mxu1 %v7851_v19  ;;  %v7927_v19 = vld [vmem:[#allocation8 + $0x228] ss:$16 sps:$4 sm:$0xff]  }
 0x736   : > { %4938 = vmatpush1.bf16.msra.mxu0 %v7876_v33  ;;  %v7896_v33 = vld [vmem:[#allocation8 + $0x2c4] ss:$16 sps:$4 sm:$0xff]  }
 0x737   : > { %4907 = vmatpush2.bf16.msra.mxu1 %v7849_v21  ;;  %4939 = vmatprep.subr.bf16.mxu0 %v7884_v38 }
 0x738   : > { %4908 = vmatprep.subr.bf16.mxu1 %v7857_v22 }
 0x73a   : > { %4940 = vmatpush1.bf16.msra.mxu0 %v7882_v39  ;;  %v7894_v39 = vld [vmem:[#allocation8 + $0x2c0] ss:$16 sps:$4 sm:$0xff]  }
 0x73b   : > { %4909 = vmatpush2.bf16.msra.mxu1 %v7855_v26  ;;  %4941 = vmatprep.subr.bf16.mxu0 %v7887_v43  ;;  %v7902_v43 = vld [vmem:[#allocation8 + $0x2a4] ss:$16 sps:$4 sm:$0xff]  }
 0x73c   : > { %4910 = vmatprep.subr.bf16.mxu1 %v7863_v9  ;;  %v7941_v9 = vld [vmem:[#allocation8 + $0x3ec] ss:$16 sps:$4 sm:$0xff]  }
 0x73e   : > { %4942 = vmatpush1.bf16.msra.mxu0 %v7885_v40 }
 0x73f   : > { %4911 = vmatpush2.bf16.msra.mxu1 %v7861_v63  ;;  %5445 = vmatprep.subr.bf16.mxu0 %v7890_v58  ;;  %v7951_v58 = vld [vmem:[#allocation8 + $0x3a8] ss:$16 sps:$4 sm:$0xff]  }
 0x740   : > { %4912 = vmatprep.subr.bf16.mxu1 %v7869_v28  ;;  %v7939_v28 = vld [vmem:[#allocation8 + $0x3e8] ss:$16 sps:$4 sm:$0xff]  }
 0x743   : > { %4913 = vmatpush2.bf16.msra.mxu1 %v7867_v31  ;;  %v7888_v31 = vld [vmem:[#allocation8 + $0x2e0] ss:$16 sps:$4 sm:$0xff]  }
 0x744   : > { %4914 = vmatprep.subr.bf16.mxu1 %v7875_v32 }
 0x747   : > { %4915 = vmatpush2.bf16.msra.mxu1 %v7873_v34 }
 0x748   : > { %4916 = vmatprep.subr.bf16.mxu1 %v7881_v35  ;;  %v7945_v35 = vld [vmem:[#allocation8 + $0x3c8] ss:$16 sps:$4 sm:$0xff]  }
 0x74b   : > { %4917 = vmatpush2.bf16.msra.mxu1 %v7879_v36  ;;  %v7953_v36 = vld [vmem:[#allocation8 + $0x3ac] ss:$16 sps:$4 sm:$0xff]  }
 0x74c   : > { %5486 = vmatprep.subr.bf16.mxu1 %v7893_v3  ;;  %v7959_v3 = vld [vmem:[#allocation8 + $0x38c] ss:$16 sps:$4 sm:$0xff]  }
 0x794   : > { %v4138_v41 = vpop.f32.mrf.mxu1 }
 0x796   : > { %v4140_v5 = vpop.f32.mrf.mxu1 }
 0x798   : > { %v4142_v42 = vpop.f32.mrf.mxu1 }
 0x799   : > { %v4179_v4 = vpop.f32.mrf.mxu0  ;;  %v7957_v42 = vld [vmem:[#allocation8 + $0x388] ss:$16 sps:$4 sm:$0xff]  }
 0x79a   : > { %v4180_v62 = vadd.f32 %v4179_v4, %v4138_v41  ;;  %v4143_v44 = vpop.f32.mrf.mxu1  ;;  %v7900_v41 = vld [vmem:[#allocation8 + $0x2a0] ss:$16 sps:$4 sm:$0xff]  }
 0x79b   : > { %v4181_v45 = vpop.f32.mrf.mxu0  ;;  %v7906_v4 = vld [vmem:[#allocation8 + $0x280] ss:$16 sps:$4 sm:$0xff]  }
 0x79c   : > { %v4182_v6 = vadd.f32 %v4181_v45, %v4140_v5  ;;  %v7908_v5 = vld [vmem:[#allocation8 + $0x284] ss:$16 sps:$4 sm:$0xff]   ;;  %v7912_v44 = vld [vmem:[#allocation8 + $0x260] ss:$16 sps:$4 sm:$0xff]  }
 0x79d   : > { %v4183_v46 = vpop.f32.mrf.mxu0  ;;  %v7920_v45 = vld [vmem:[#allocation8 + $0x244] ss:$16 sps:$4 sm:$0xff]  }
 0x79e   : > { %v7926_v46 = vld [vmem:[#allocation8 + $0x224] ss:$16 sps:$4 sm:$0xff]  }
 0x79f   : > { %v4184_v47 = vpop.f32.mrf.mxu0 }
 0x7a0   : > { %v7924_v47 = vld [vmem:[#allocation8 + $0x220] ss:$16 sps:$4 sm:$0xff]  }
 0x7b4   : > { %v4501_v48 = vpop.f32.mrf.mxu1 }
 0x7b6   : > { %v4503_v49 = vpop.f32.mrf.mxu1 }
 0x7b8   : > { %v4505_v50 = vpop.f32.mrf.mxu1 }
 0x7b9   : > { %v7938_v50 = vld [vmem:[#allocation8 + $0x3e4] ss:$16 sps:$4 sm:$0xff]  }
 0x7ba   : > { %v4506_v51 = vpop.f32.mrf.mxu1 }
 0x7bb   : > { %v7936_v51 = vld [vmem:[#allocation8 + $0x3e0] ss:$16 sps:$4 sm:$0xff]  }
 0x7bc   : > { %v4547_v52 = vpop.f32.mrf.mxu1 }
 0x7bd   : > { %v4594_v37 = vpack.c.bf16 %v4547_v52, %v4547_v52  ;;  %v7944_v52 = vld [vmem:[#allocation8 + $0x3c4] ss:$16 sps:$4 sm:$0xff]  }
 0x7be   : > { %v4549_v59 = vpop.f32.mrf.mxu1 }
 0x7bf   : > { %v4595_v53 = vpack.c.bf16 %v4549_v59, %v4549_v59  ;;  %v7942_v59 = vld [vmem:[#allocation8 + $0x3c0] ss:$16 sps:$4 sm:$0xff]  }
 0x7c0   : > { %v4551_v54 = vpop.f32.mrf.mxu1 }
 0x7c1   : > { %4918 = vmatprep.mubr.bf16.mxu1 %v4595_v53  ;;  %v7965_v53 = vld [vmem:[#allocation8 + $0x36c] ss:$16 sps:$4 sm:$0xff]   ;;  %v7948_v54 = vld [vmem:[#allocation8 + $0x3a0] ss:$16 sps:$4 sm:$0xff]  }
 0x7c2   : > { %4919 = vmatmul.mubr.bf16.vlgmr.msra.gmra.mxu1 %v4594_v37  ;;  %v4552_v56 = vpop.f32.mrf.mxu1  ;;  %v7963_v37 = vld [vmem:[#allocation8 + $0x368] ss:$16 sps:$4 sm:$0xff]  }
 0x7c3   : > { %5487 = vmatpush1.bf16.msra.mxu1 %v7891_v0  ;;  %v7950_v0 = vld [vmem:[#allocation8 + $0x3a4] ss:$16 sps:$4 sm:$0xff]   ;;  %v7954_v56 = vld [vmem:[#allocation8 + $0x380] ss:$16 sps:$4 sm:$0xff]  }
 0x7c4   : > { %5488 = vmatprep.subr.bf16.mxu1 %v7899_v55  ;;  %v7956_v55 = vld [vmem:[#allocation8 + $0x384] ss:$16 sps:$4 sm:$0xff]  }
 0x7c7   : > { %5489 = vmatpush1.bf16.msra.mxu1 %v7897_v57  ;;  %v7962_v57 = vld [vmem:[#allocation8 + $0x364] ss:$16 sps:$4 sm:$0xff]  }
 0x7c8   : > { %5490 = vmatprep.subr.bf16.mxu1 %v7905_v23  ;;  %v7960_v23 = vld [vmem:[#allocation8 + $0x360] ss:$16 sps:$4 sm:$0xff]  }
 0x7cb   : > { %5491 = vmatpush1.bf16.msra.mxu1 %v7903_v61  ;;  %v7968_v61 = vld [vmem:[#allocation8 + $0x344] ss:$16 sps:$4 sm:$0xff]  }
 0x7cc   : > { %5492 = vmatprep.subr.bf16.mxu1 %v7911_v17  ;;  %v7971_v17 = vld [vmem:[#allocation8 + $0x34c] ss:$16 sps:$4 sm:$0xff]  }
 0x7cf   : > { %5493 = vmatpush1.bf16.msra.mxu1 %v7909_v60  ;;  %v7966_v60 = vld [vmem:[#allocation8 + $0x340] ss:$16 sps:$4 sm:$0xff]  }
 0x7d0   : > { %5494 = vmatprep.subr.bf16.mxu1 %v7917_v10  ;;  %v7969_v10 = vld [vmem:[#allocation8 + $0x348] ss:$16 sps:$4 sm:$0xff]  }
 0x7d3   : > { %5495 = vmatpush1.bf16.msra.mxu1 %v7915_v1  ;;  %v7974_v1 = vld [vmem:[#allocation8 + $0x324] ss:$16 sps:$4 sm:$0xff]  }
 0x7d4   : > { %5496 = vmatprep.subr.bf16.mxu1 %v7923_v2  ;;  %v7977_v2 = vld [vmem:[#allocation8 + $0x32c] ss:$16 sps:$4 sm:$0xff]  }
 0x7d7   : > { %5497 = vmatpush1.bf16.msra.mxu1 %v7921_v7  ;;  %v7972_v7 = vld [vmem:[#allocation8 + $0x320] ss:$16 sps:$4 sm:$0xff]  }
 0x7d8   : > { %5498 = vmatprep.subr.bf16.mxu1 %v7929_v8  ;;  %v7975_v8 = vld [vmem:[#allocation8 + $0x328] ss:$16 sps:$4 sm:$0xff]  }
 0x7d9   : > { %v4460_v20 = vpop.f32.mrf.mxu0 }
 0x7da   : > { %v4461_v21 = vadd.f32 %v4460_v20, %v4180_v62  ;;  %v7914_v62 = vld [vmem:[#allocation8 + $0x264] ss:$16 sps:$4 sm:$0xff]   ;;  %v7978_v20 = vld [vmem:[#allocation8 + $0x300] ss:$16 sps:$4 sm:$0xff]  }
 0x7db   : > { %v4462_v22 = vpop.f32.mrf.mxu0  ;;  %5499 = vmatpush1.bf16.msra.mxu1 %v7927_v19  ;;  %v7980_v19 = vld [vmem:[#allocation8 + $0x304] ss:$16 sps:$4 sm:$0xff]  }
 0x7dc   : > { %v8801_v25 = vadd.f32 %v4501_v48, %v4461_v21  ;;  %v4463_v26 = vadd.f32 %v4462_v22, %v4182_v6  ;;  %5500 = vmatprep.subr.bf16.mxu1 %v7935_v12  ;;  %v7918_v6 = vld [vmem:[#allocation8 + $0x240] ss:$16 sps:$4 sm:$0xff]   ;;  %v7932_v48 = vld [vmem:[#allocation8 + $0x204] ss:$16 sps:$4 sm:$0xff]   ;;  %v7983_v12 = vld [vmem:[#allocation8 + $0x30c] ss:$16 sps:$4 sm:$0xff]  }
 0x7dd   : > { %v4464_v27 = vpop.f32.mrf.mxu0  ;;  %v7981_v21 = vld [vmem:[#allocation8 + $0x308] ss:$16 sps:$4 sm:$0xff]   ;;  %v7986_v22 = vld [vmem:[#allocation8 + $0xe4] ss:$16 sps:$4 sm:$0xff]  }
 0x7de   : > { %v8803_v15 = vadd.f32 %v4503_v49, %v4463_v26  ;;  %v7930_v49 = vld [vmem:[#allocation8 + $0x200] ss:$16 sps:$4 sm:$0xff]  }
 0x7df   : > { %v4465_v63 = vpop.f32.mrf.mxu0  ;;  %5501 = vmatpush1.bf16.msra.mxu1 %v7933_v24  ;;  %v7989_v24 = vld [vmem:[#allocation8 + $0xec] ss:$16 sps:$4 sm:$0xff]  }
 0x7e0   : > { %5502 = vmatprep.subr.bf16.mxu1 %v7941_v9 }
 0x7e1   : > { %v4588_v30 = vpop.f32.mrf.mxu0 }
 0x7e2   : > { %v4596_v32 = vpack.c.bf16 %v4588_v30, %v4588_v30 }
 0x7e3   : > { %v7215_v34 = vpop.f32.mrf.mxu0  ;;  %5503 = vmatpush2.bf16.msra.mxu1 %v7939_v28  ;;  %v4970_v28 = vld [vmem:[%s8871_s9] sm:$0x3] }
 0x7e4   : > { %4960 = vmatmul.mubr.bf16.vlgmr.msra.gmra.mxu0 %v4596_v32  ;;  %5504 = vmatprep.subr.bf16.mxu1 %v7947_v29 }
 0x7e5   : > { %v4591_v38 = vpop.f32.mrf.mxu0  ;;  %5446 = vmatpush1.bf16.msra.mxu0 %v7888_v31  ;;  %v4975_v31 = vrot.slane %v4970_v28, %v8595_v13 }
 0x7e6   : > { %5447 = vmatprep.subr.bf16.mxu0 %v7896_v33 }
 0x7e7   : > { %v7216_v40 = vpop.f32.mrf.mxu0  ;;  %5505 = vmatpush2.bf16.msra.mxu1 %v7945_v35  ;;  %v4979_v35 = vrot.slane %v4970_v28, %v8604_v16  ;;  %v8044_v28 = vld [vmem:[#allocation8 + $0x1a0] ss:$16 sps:$4 sm:$0xff]  }
 0x7e8   : > { %5506 = vmatprep.subr.bf16.mxu1 %v7953_v36 }
 0x7e9   : > { %5448 = vmatpush1.bf16.msra.mxu0 %v7894_v39 }
 0x7ea   : > { %5449 = vmatprep.subr.bf16.mxu0 %v7902_v43 }
 0x7eb   : > { %5507 = vmatpush2.bf16.msra.mxu1 %v7951_v58 }
 0x7ec   : > { %5508 = vmatprep.subr.bf16.mxu1 %v7959_v3 }
 0x7ed   : > { %5450 = vmatpush1.bf16.msra.mxu0 %v7900_v41 }
 0x7ee   : > { %5451 = vmatprep.subr.bf16.mxu0 %v7908_v5 }
 0x7ef   : > { %5509 = vmatpush2.bf16.msra.mxu1 %v7957_v42 }
 0x7f0   : > { %5510 = vmatprep.subr.bf16.mxu1 %v7965_v53  ;;  %v8013_v53 = vld [vmem:[#allocation8 + $0x6c] ss:$16 sps:$4 sm:$0xff]  }
 0x7f1   : > { %5452 = vmatpush1.bf16.msra.mxu0 %v7906_v4  ;;  %v7984_v4 = vld [vmem:[#allocation8 + $0xe0] ss:$16 sps:$4 sm:$0xff]  }
 0x7f2   : > { %5453 = vmatprep.subr.bf16.mxu0 %v7914_v62  ;;  %v7987_v62 = vld [vmem:[#allocation8 + $0xe8] ss:$16 sps:$4 sm:$0xff]  }
 0x7f3   : > { %5511 = vmatpush2.bf16.msra.mxu1 %v7963_v37  ;;  %v8005_v37 = vld [vmem:[#allocation8 + $0x88] ss:$16 sps:$4 sm:$0xff]  }
 0x7f4   : > { %5512 = vmatprep.subr.bf16.mxu1 %v7971_v17  ;;  %v8025_v17 = vld [vmem:[#allocation8 + $0x2c] ss:$16 sps:$4 sm:$0xff]  }
 0x7f5   : > { %5454 = vmatpush1.bf16.msra.mxu0 %v7912_v44 }
 0x7f6   : > { %5455 = vmatprep.subr.bf16.mxu0 %v7920_v45  ;;  %v7995_v45 = vld [vmem:[#allocation8 + $0xcc] ss:$16 sps:$4 sm:$0xff]  }
 0x7f7   : > { %5513 = vmatpush2.bf16.msra.mxu1 %v7969_v10  ;;  %v8023_v10 = vld [vmem:[#allocation8 + $0x28] ss:$16 sps:$4 sm:$0xff]  }
 0x7f8   : > { %5514 = vmatprep.subr.bf16.mxu1 %v7977_v2  ;;  %v8031_v2 = vld [vmem:[#allocation8 + $0xc] ss:$16 sps:$4 sm:$0xff]  }
 0x7f9   : > { %5456 = vmatpush1.bf16.msra.mxu0 %v7918_v6  ;;  %v7993_v6 = vld [vmem:[#allocation8 + $0xc8] ss:$16 sps:$4 sm:$0xff]  }
 0x7fa   : > { %5457 = vmatprep.subr.bf16.mxu0 %v7926_v46  ;;  %v7998_v46 = vld [vmem:[#allocation8 + $0xa4] ss:$16 sps:$4 sm:$0xff]  }
 0x7fb   : > { %5515 = vmatpush2.bf16.msra.mxu1 %v7975_v8  ;;  %v8029_v8 = vld [vmem:[#allocation8 + $0x8] ss:$16 sps:$4 sm:$0xff]  }
 0x7fc   : > { %5516 = vmatprep.subr.bf16.mxu1 %v7983_v12  ;;  %v8037_v12 = vld [vmem:[#allocation8 + $0x1ec] ss:$16 sps:$4 sm:$0xff]  }
 0x7fd   : > { %5458 = vmatpush1.bf16.msra.mxu0 %v7924_v47  ;;  %v8001_v47 = vld [vmem:[#allocation8 + $0xac] ss:$16 sps:$4 sm:$0xff]  }
 0x7fe   : > { %5459 = vmatprep.subr.bf16.mxu0 %v7932_v48  ;;  %v7996_v48 = vld [vmem:[#allocation8 + $0xa0] ss:$16 sps:$4 sm:$0xff]  }
 0x7ff   : > { %5517 = vmatpush2.bf16.msra.mxu1 %v7981_v21  ;;  %v8035_v21 = vld [vmem:[#allocation8 + $0x1e8] ss:$16 sps:$4 sm:$0xff]  }
 0x800   : > { %5888 = vmatprep.subr.bf16.mxu1 %v7989_v24  ;;  %v8043_v24 = vld [vmem:[#allocation8 + $0x1cc] ss:$16 sps:$4 sm:$0xff]  }
 0x801   : > { %5460 = vmatpush1.bf16.msra.mxu0 %v7930_v49  ;;  %v7999_v49 = vld [vmem:[#allocation8 + $0xa8] ss:$16 sps:$4 sm:$0xff]  }
 0x802   : > { %5461 = vmatprep.subr.bf16.mxu0 %v7938_v50  ;;  %v8004_v50 = vld [vmem:[#allocation8 + $0x84] ss:$16 sps:$4 sm:$0xff]  }
 0x805   : > { %5462 = vmatpush2.bf16.msra.mxu0 %v7936_v51  ;;  %v8007_v51 = vld [vmem:[#allocation8 + $0x8c] ss:$16 sps:$4 sm:$0xff]  }
 0x806   : > { %5463 = vmatprep.subr.bf16.mxu0 %v7944_v52  ;;  %v8002_v52 = vld [vmem:[#allocation8 + $0x80] ss:$16 sps:$4 sm:$0xff]  }
 0x809   : > { %5464 = vmatpush2.bf16.msra.mxu0 %v7942_v59  ;;  %v8010_v59 = vld [vmem:[#allocation8 + $0x64] ss:$16 sps:$4 sm:$0xff]  }
 0x80a   : > { %5465 = vmatprep.subr.bf16.mxu0 %v7950_v0  ;;  %v8008_v0 = vld [vmem:[#allocation8 + $0x60] ss:$16 sps:$4 sm:$0xff]  }
 0x80d   : > { %5466 = vmatpush2.bf16.msra.mxu0 %v7948_v54  ;;  %v8011_v54 = vld [vmem:[#allocation8 + $0x68] ss:$16 sps:$4 sm:$0xff]  }
 0x80e   : > { %5467 = vmatprep.subr.bf16.mxu0 %v7956_v55  ;;  %v8016_v55 = vld [vmem:[#allocation8 + $0x44] ss:$16 sps:$4 sm:$0xff]  }
 0x811   : > { %5468 = vmatpush2.bf16.msra.mxu0 %v7954_v56  ;;  %v8019_v56 = vld [vmem:[#allocation8 + $0x4c] ss:$16 sps:$4 sm:$0xff]  }
 0x812   : > { %5469 = vmatprep.subr.bf16.mxu0 %v7962_v57  ;;  %v8014_v57 = vld [vmem:[#allocation8 + $0x40] ss:$16 sps:$4 sm:$0xff]  }
 0x815   : > { %5470 = vmatpush2.bf16.msra.mxu0 %v7960_v23  ;;  %v8017_v23 = vld [vmem:[#allocation8 + $0x48] ss:$16 sps:$4 sm:$0xff]  }
 0x816   : > { %5471 = vmatprep.subr.bf16.mxu0 %v7968_v61  ;;  %v8022_v61 = vld [vmem:[#allocation8 + $0x24] ss:$16 sps:$4 sm:$0xff]  }
 0x819   : > { %5472 = vmatpush2.bf16.msra.mxu0 %v7966_v60  ;;  %v8020_v60 = vld [vmem:[#allocation8 + $0x20] ss:$16 sps:$4 sm:$0xff]  }
 0x81a   : > { %5473 = vmatprep.subr.bf16.mxu0 %v7974_v1  ;;  %v8028_v1 = vld [vmem:[#allocation8 + $0x4] ss:$16 sps:$4 sm:$0xff]  }
 0x81d   : > { %5474 = vmatpush2.bf16.msra.mxu0 %v7972_v7  ;;  %v8026_v7 = vld [vmem:[#allocation8] ss:$16 sps:$4 sm:$0xff]  }
 0x81e   : > { %5475 = vmatprep.subr.bf16.mxu0 %v7980_v19  ;;  %v8034_v19 = vld [vmem:[#allocation8 + $0x1e4] ss:$16 sps:$4 sm:$0xff]  }
 0x821   : > { %5476 = vmatpush2.bf16.msra.mxu0 %v7978_v20  ;;  %v8032_v20 = vld [vmem:[#allocation8 + $0x1e0] ss:$16 sps:$4 sm:$0xff]  }
 0x822   : > { %5847 = vmatprep.subr.bf16.mxu0 %v7986_v22  ;;  %v8040_v22 = vld [vmem:[#allocation8 + $0x1c4] ss:$16 sps:$4 sm:$0xff]  }
 0x882   : > { %v4920_v26 = vpop.f32.mrf.mxu1 }
 0x884   : > { %v4922_v9 = vpop.f32.mrf.mxu1 }
 0x886   : > { %v4924_v27 = vpop.f32.mrf.mxu1 }
 0x887   : > { %v8046_v27 = vld [vmem:[#allocation8 + $0x1a4] ss:$16 sps:$4 sm:$0xff]  }
 0x888   : > { %v4925_v63 = vpop.f32.mrf.mxu1 }
 0x889   : > { %v8049_v63 = vld [vmem:[#allocation8 + $0x1ac] ss:$16 sps:$4 sm:$0xff]  }
 0x8a4   : > { %v4961_v29 = vpop.f32.mrf.mxu0 }
 0x8a5   : > { %v4962_v30 = vadd.f32 %v4961_v29, %v4920_v26  ;;  %v8038_v26 = vld [vmem:[#allocation8 + $0x1c0] ss:$16 sps:$4 sm:$0xff]   ;;  %v8047_v29 = vld [vmem:[#allocation8 + $0x1a8] ss:$16 sps:$4 sm:$0xff]  }
 0x8a6   : > { %v4963_v32 = vpop.f32.mrf.mxu0 }
 0x8a7   : > { %v4968_v33 = vadd.f32 %v4962_v30, %v8801_v25  ;;  %v4964_v34 = vadd.f32 %v4963_v32, %v4922_v9  ;;  %v7992_v25 = vld [vmem:[#allocation8 + $0xc4] ss:$16 sps:$4 sm:$0xff]   ;;  %v8041_v9 = vld [vmem:[#allocation8 + $0x1c8] ss:$16 sps:$4 sm:$0xff]   ;;  %v8050_v32 = vld [vmem:[#allocation8 + $0x180] ss:$16 sps:$4 sm:$0xff]  }
 0x8a8   : > { %v4965_v36 = vpop.f32.mrf.mxu0  ;;  %v8052_v30 = vld [vmem:[#allocation8 + $0x184] ss:$16 sps:$4 sm:$0xff]  }
 0x8a9   : > { %v4982_v38 = vadd.f32 %v4975_v31, %v4968_v33  ;;  %v4969_v39 = vadd.f32 %v4964_v34, %v8803_v15  ;;  %v7990_v15 = vld [vmem:[#allocation8 + $0xc0] ss:$16 sps:$4 sm:$0xff]   ;;  %v8055_v31 = vld [vmem:[#allocation8 + $0x18c] ss:$16 sps:$4 sm:$0xff]   ;;  %v8053_v33 = vld [vmem:[#allocation8 + $0x188] ss:$16 sps:$4 sm:$0xff]  }
 0x8aa   : > { %v4966_v43 = vpop.f32.mrf.mxu0  ;;  %v8058_v34 = vld [vmem:[#allocation8 + $0x164] ss:$16 sps:$4 sm:$0xff]   ;;  %v8056_v36 = vld [vmem:[#allocation8 + $0x160] ss:$16 sps:$4 sm:$0xff]  }
 0x8ab   : > { %v4984_v40 = vmax.f32 %v4982_v38, 0.0  ;;  %v4983_v58 = vadd.f32 %v4979_v35, %v4969_v39  ;;  %v8061_v35 = vld [vmem:[#allocation8 + $0x16c] ss:$16 sps:$4 sm:$0xff]   ;;  %v8059_v38 = vld [vmem:[#allocation8 + $0x168] ss:$16 sps:$4 sm:$0xff]  }
 0x8ac   : > { %v8064_v39 = vld [vmem:[#allocation8 + $0x144] ss:$16 sps:$4 sm:$0xff]   ;;  %v8067_v43 = vld [vmem:[#allocation8 + $0x14c] ss:$16 sps:$4 sm:$0xff]  }
 0x8ad   : > { %v4985_v3 = vmax.f32 %v4983_v58, 0.0  ;;  %v8812_v41 = vpack.c.bf16 %v4984_v40, %v4984_v40  ;;  %v8062_v40 = vld [vmem:[#allocation8 + $0x140] ss:$16 sps:$4 sm:$0xff]   ;;  %v8065_v58 = vld [vmem:[#allocation8 + $0x148] ss:$16 sps:$4 sm:$0xff]  }
 0x8af   : > { %v4987_v5 = vpack.c.bf16 %v4985_v3, %v4985_v3  ;;  %v5118_v44 = vshrl.u32 %v8812_v41, 16  ;;  %v8070_v3 = vld [vmem:[#allocation8 + $0x124] ss:$16 sps:$4 sm:$0xff]  }
 0x8b1   : > { %v5121_v42 = vshrl.u32 %v4987_v5, 16 }
 0x8b3   : > { %5477 = vmatprep.mubr.bf16.mxu0 %v5121_v42  ;;  %5518 = vmatprep.mubr.bf16.mxu1 %v5121_v42  ;;  %v8068_v42 = vld [vmem:[#allocation8 + $0x120] ss:$16 sps:$4 sm:$0xff]  }
 0x8b4   : > { %5478 = vmatmul.mubr.bf16.vlgmr.msra.gmra.mxu0 %v5118_v44  ;;  %5519 = vmatmul.mubr.bf16.vlgmr.msra.gmra.mxu1 %v5118_v44  ;;  %v8079_v44 = vld [vmem:[#allocation8 + $0x10c] ss:$16 sps:$4 sm:$0xff]  }
 0x8b5   : > { %5848 = vmatpush1.bf16.msra.mxu0 %v7984_v4  ;;  %5889 = vmatpush1.bf16.msra.mxu1 %v7987_v62  ;;  %v8071_v4 = vld [vmem:[#allocation8 + $0x128] ss:$16 sps:$4 sm:$0xff]   ;;  %v8076_v62 = vld [vmem:[#allocation8 + $0x104] ss:$16 sps:$4 sm:$0xff]  }
 0x8b6   : > { %5879 = vmatprep.mubr.bf16.mxu0 %v4987_v5  ;;  %5920 = vmatprep.mubr.bf16.mxu1 %v4987_v5  ;;  %v8073_v5 = vld [vmem:[#allocation8 + $0x12c] ss:$16 sps:$4 sm:$0xff]  }
 0x8b7   : > { %5849 = vmatprep.subr.bf16.mxu0 %v7992_v25  ;;  %5890 = vmatprep.subr.bf16.mxu1 %v7995_v45  ;;  %v8074_v25 = vld [vmem:[#allocation8 + $0x100] ss:$16 sps:$4 sm:$0xff]   ;;  %v8077_v45 = vld [vmem:[#allocation8 + $0x108] ss:$16 sps:$4 sm:$0xff]  }
 0x8b9   : > { %5850 = vmatpush1.bf16.msra.mxu0 %v7990_v15  ;;  %5891 = vmatpush1.bf16.msra.mxu1 %v7993_v6  ;;  %v8080_v15 = vld [vmem:[#allocation10 + $0x78] sm:$0xff]  }
 0x8ba   : > { %5851 = vmatprep.subr.bf16.mxu0 %v7998_v46  ;;  %5892 = vmatprep.subr.bf16.mxu1 %v8001_v47  ;;  %v8081_v6 = vld [vmem:[#allocation10 + $0xf8] sm:$0xff]  }
 0x8bb   : > { %v8082_v46 = vld [vmem:[#allocation10 + $0x38] sm:$0xff]  }
 0x8bc   : > { %v8083_v47 = vld [vmem:[#allocation10 + $0xb8] sm:$0xff]  }
 0x8bd   : > { %5852 = vmatpush1.bf16.msra.mxu0 %v7996_v48  ;;  %5893 = vmatpush1.bf16.msra.mxu1 %v7999_v49  ;;  %v8084_v48 = vld [vmem:[#allocation10 + $0x70] sm:$0xff]  }
 0x8be   : > { %5853 = vmatprep.subr.bf16.mxu0 %v8004_v50  ;;  %5894 = vmatprep.subr.bf16.mxu1 %v8007_v51  ;;  %v8085_v49 = vld [vmem:[#allocation10 + $0xf0] sm:$0xff]  }
 0x8bf   : > { %v8086_v50 = vld [vmem:[#allocation10 + $0x30] sm:$0xff]  }
 0x8c0   : > { %v8087_v51 = vld [vmem:[#allocation10 + $0xb0] sm:$0xff]  }
 0x8c1   : > { %5854 = vmatpush1.bf16.msra.mxu0 %v8002_v52  ;;  %5895 = vmatpush1.bf16.msra.mxu1 %v8005_v37  ;;  %v8088_v52 = vld [vmem:[#allocation10 + $0x68] sm:$0xff]  }
 0x8c2   : > { %5855 = vmatprep.subr.bf16.mxu0 %v8010_v59  ;;  %5896 = vmatprep.subr.bf16.mxu1 %v8013_v53  ;;  %v8089_v37 = vld [vmem:[#allocation10 + $0xe8] sm:$0xff]   ;;  %v8092_v53 = vld [vmem:[#allocation10 + $0x60] sm:$0xff]  }
 0x8c3   : > { %v8090_v59 = vld [vmem:[#allocation10 + $0x28] sm:$0xff]  }
 0x8c5   : > { %5856 = vmatpush1.bf16.msra.mxu0 %v8008_v0  ;;  %5897 = vmatpush1.bf16.msra.mxu1 %v8011_v54  ;;  %v8093_v0 = vld [vmem:[#allocation10 + $0xe0] sm:$0xff]  }
 0x8c6   : > { %5857 = vmatprep.subr.bf16.mxu0 %v8016_v55  ;;  %5898 = vmatprep.subr.bf16.mxu1 %v8019_v56  ;;  %v8094_v54 = vld [vmem:[#allocation10 + $0x20] sm:$0xff]   ;;  %v8096_v56 = vld [vmem:[#allocation10 + $0x58] sm:$0xff]  }
 0x8c7   : > { %v8095_v55 = vld [vmem:[#allocation10 + $0xa0] sm:$0xff]  }
 0x8c9   : > { %5858 = vmatpush1.bf16.msra.mxu0 %v8014_v57  ;;  %5899 = vmatpush1.bf16.msra.mxu1 %v8017_v23  ;;  %v8097_v57 = vld [vmem:[#allocation10 + $0xd8] sm:$0xff]  }
 0x8ca   : > { %5859 = vmatprep.subr.bf16.mxu0 %v8022_v61  ;;  %5900 = vmatprep.subr.bf16.mxu1 %v8025_v17  ;;  %v8098_v23 = vld [vmem:[#allocation10 + $0x18] sm:$0xff]   ;;  %v8100_v17 = vld [vmem:[#allocation10 + $0x50] sm:$0xff]  }
 0x8cb   : > { %v8099_v61 = vld [vmem:[#allocation10 + $0x98] sm:$0xff]  }
 0x8cd   : > { %5860 = vmatpush1.bf16.msra.mxu0 %v8020_v60  ;;  %5901 = vmatpush1.bf16.msra.mxu1 %v8023_v10  ;;  %v8101_v60 = vld [vmem:[#allocation10 + $0xd0] sm:$0xff]  }
 0x8ce   : > { %5861 = vmatprep.subr.bf16.mxu0 %v8028_v1  ;;  %5902 = vmatprep.subr.bf16.mxu1 %v8031_v2  ;;  %v8102_v10 = vld [vmem:[#allocation10 + $0x10] sm:$0xff]   ;;  %v8104_v2 = vld [vmem:[#allocation10 + $0x48] sm:$0xff]  }
 0x8cf   : > { %v8103_v1 = vld [vmem:[#allocation10 + $0x90] sm:$0xff]  }
 0x8d1   : > { %5862 = vmatpush1.bf16.msra.mxu0 %v8026_v7  ;;  %5903 = vmatpush1.bf16.msra.mxu1 %v8029_v8  ;;  %v8105_v7 = vld [vmem:[#allocation10 + $0xc8] sm:$0xff]  }
 0x8d2   : > { %5863 = vmatprep.subr.bf16.mxu0 %v8034_v19  ;;  %5904 = vmatprep.subr.bf16.mxu1 %v8037_v12  ;;  %v8106_v8 = vld [vmem:[#allocation10 + $0x8] sm:$0xff]   ;;  %v8108_v12 = vld [vmem:[#allocation10 + $0x40] sm:$0xff]  }
 0x8d3   : > { %v8107_v19 = vld [vmem:[#allocation10 + $0x88] sm:$0xff]  }
 0x8d5   : > { %5864 = vmatpush2.bf16.msra.mxu0 %v8032_v20  ;;  %5905 = vmatpush2.bf16.msra.mxu1 %v8035_v21  ;;  %v8109_v20 = vld [vmem:[#allocation10 + $0xc0] sm:$0xff]  }
 0x8d6   : > { %5865 = vmatprep.subr.bf16.mxu0 %v8040_v22  ;;  %5906 = vmatprep.subr.bf16.mxu1 %v8043_v24  ;;  %v8110_v21 = vld [vmem:[#allocation10] sm:$0xff]  }
 0x8d7   : > { %v8111_v22 = vld [vmem:[#allocation10 + $0x80] sm:$0xff]  }
 0x8d9   : > { %5866 = vmatpush2.bf16.msra.mxu0 %v8038_v26  ;;  %5907 = vmatpush2.bf16.msra.mxu1 %v8041_v9 }
 0x8da   : > { %5867 = vmatprep.subr.bf16.mxu0 %v8046_v27  ;;  %5908 = vmatprep.subr.bf16.mxu1 %v8049_v63 }
 0x8dd   : > { %5868 = vmatpush2.bf16.msra.mxu0 %v8044_v28  ;;  %5909 = vmatpush2.bf16.msra.mxu1 %v8047_v29 }
 0x8de   : > { %5869 = vmatprep.subr.bf16.mxu0 %v8052_v30  ;;  %5910 = vmatprep.subr.bf16.mxu1 %v8055_v31  ;;  %v5929_v31 = vld [vmem:[%s8873_s11] sm:$0xf] }
 0x8e1   : > { %5870 = vmatpush2.bf16.msra.mxu0 %v8050_v32  ;;  %5911 = vmatpush2.bf16.msra.mxu1 %v8053_v33  ;;  %v5934_v32 = vrot.slane %v5929_v31, %v8595_v13  ;;  %v5942_v33 = vrot.slane %v5929_v31, %v8598_v14 }
 0x8e2   : > { %5871 = vmatprep.subr.bf16.mxu0 %v8058_v34  ;;  %5912 = vmatprep.subr.bf16.mxu1 %v8061_v35 }
 0x8e5   : > { %5872 = vmatpush2.bf16.msra.mxu0 %v8056_v36  ;;  %5913 = vmatpush2.bf16.msra.mxu1 %v8059_v38 }
 0x8e6   : > { %5873 = vmatprep.subr.bf16.mxu0 %v8064_v39  ;;  %5914 = vmatprep.subr.bf16.mxu1 %v8067_v43  ;;  %v5938_v39 = vrot.slane %v5929_v31, %v8604_v16  ;;  %v5946_v43 = vrot.slane %v5929_v31, %v1178_v18 }
 0x8e9   : > { %5874 = vmatpush2.bf16.msra.mxu0 %v8062_v40  ;;  %5915 = vmatpush2.bf16.msra.mxu1 %v8065_v58 }
 0x8ea   : > { %5875 = vmatprep.subr.bf16.mxu0 %v8070_v3  ;;  %5916 = vmatprep.subr.bf16.mxu1 %v8073_v5 }
 0x8ed   : > { %5876 = vmatpush2.bf16.msra.mxu0 %v8068_v42  ;;  %5917 = vmatpush2.bf16.msra.mxu1 %v8071_v4 }
 0x8ee   : > { %5877 = vmatprep.subr.bf16.mxu0 %v8076_v62  ;;  %5918 = vmatprep.subr.bf16.mxu1 %v8079_v44 }
 0x8f1   : > { %5878 = vmatpush2.bf16.msra.mxu0 %v8074_v25  ;;  %5919 = vmatpush2.bf16.msra.mxu1 %v8077_v45 }
 0x8f2   : > { %7131 = vmatprep.subr.bf16.mxu0 %v8080_v15  ;;  %7153 = vmatprep.subr.bf16.mxu1 %v8081_v6 }
 0x8f4   : > { %5880 = vmatmul.mubr.bf16.vlgmr.msra.gmra.mxu0 %v8812_v41  ;;  %5921 = vmatmul.mubr.bf16.vlgmr.msra.gmra.mxu1 %v8812_v41  ;;  %v8091_v41 = vld [vmem:[#allocation10 + $0xa8] sm:$0xff]  }
 0x8f5   : > { %7132 = vmatpush3.bf16.msra.mxu0 %v8082_v46  ;;  %7154 = vmatpush3.bf16.msra.mxu1 %v8083_v47 }
 0x8f6   : > { %7133 = vmatprep.subr.bf16.mxu0 %v8084_v48  ;;  %7155 = vmatprep.subr.bf16.mxu1 %v8085_v49 }
 0x8f9   : > { %7134 = vmatpush3.bf16.msra.mxu0 %v8086_v50  ;;  %7156 = vmatpush3.bf16.msra.mxu1 %v8087_v51  ;;  %v6027_v51 = vld [vmem:[%s8875_s13] sm:$0x1] }
 0x8fa   : > { %7135 = vmatprep.subr.bf16.mxu0 %v8088_v52  ;;  %7157 = vmatprep.subr.bf16.mxu1 %v8089_v37 }
 0x8fd   : > { %7136 = vmatpush3.bf16.msra.mxu0 %v8090_v59  ;;  %7158 = vmatpush3.bf16.msra.mxu1 %v8091_v41 }
 0x8fe   : > { %7137 = vmatprep.subr.bf16.mxu0 %v8092_v53  ;;  %7159 = vmatprep.subr.bf16.mxu1 %v8093_v0 }
 0x901   : > { %7138 = vmatpush3.bf16.msra.mxu0 %v8094_v54  ;;  %7160 = vmatpush3.bf16.msra.mxu1 %v8095_v55 }
 0x902   : > { %7139 = vmatprep.subr.bf16.mxu0 %v8096_v56  ;;  %7161 = vmatprep.subr.bf16.mxu1 %v8097_v57 }
 0x905   : > { %7140 = vmatpush3.bf16.msra.mxu0 %v8098_v23  ;;  %7162 = vmatpush3.bf16.msra.mxu1 %v8099_v61 }
 0x906   : > { %7141 = vmatprep.subr.bf16.mxu0 %v8100_v17  ;;  %7163 = vmatprep.subr.bf16.mxu1 %v8101_v60 }
 0x909   : > { %7142 = vmatpush3.bf16.msra.mxu0 %v8102_v10  ;;  %7164 = vmatpush3.bf16.msra.mxu1 %v8103_v1 }
 0x90a   : > { %7143 = vmatprep.subr.bf16.mxu0 %v8104_v2  ;;  %7165 = vmatprep.subr.bf16.mxu1 %v8105_v7 }
 0x90d   : > { %7144 = vmatpush3.bf16.msra.mxu0 %v8106_v8  ;;  %7166 = vmatpush3.bf16.msra.mxu1 %v8107_v19 }
 0x90e   : > { %7145 = vmatprep.subr.bf16.mxu0 %v8108_v12  ;;  %7167 = vmatprep.subr.bf16.mxu1 %v8109_v20 }
 0x911   : > { %7146 = vmatpush3.bf16.msra.mxu0 %v8110_v21  ;;  %7168 = vmatpush3.bf16.msra.mxu1 %v8111_v22 }
 0x974   : > { %v5479_v24 = vpop.f32.mrf.mxu0  ;;  %v5520_v26 = vpop.f32.mrf.mxu1 }
 0x976   : > { %v5481_v9 = vpop.f32.mrf.mxu0  ;;  %v5522_v27 = vpop.f32.mrf.mxu1 }
 0x978   : > { %v5483_v63 = vpop.f32.mrf.mxu0  ;;  %v5524_v28 = vpop.f32.mrf.mxu1 }
 0x97a   : > { %v5484_v29 = vpop.f32.mrf.mxu0  ;;  %v5525_v30 = vpop.f32.mrf.mxu1 }
 0x9b4   : > { %v5881_v34 = vpop.f32.mrf.mxu0  ;;  %v5922_v35 = vpop.f32.mrf.mxu1 }
 0x9b5   : > { %v5882_v36 = vadd.f32 %v5881_v34, %v5479_v24  ;;  %v5923_v38 = vadd.f32 %v5922_v35, %v5520_v26 }
 0x9b6   : > { %v5883_v40 = vpop.f32.mrf.mxu0  ;;  %v5924_v58 = vpop.f32.mrf.mxu1 }
 0x9b7   : > { %v5951_v3 = vadd.f32 %v5934_v32, %v5882_v36  ;;  %v5953_v5 = vadd.f32 %v5942_v33, %v5923_v38  ;;  %v5884_v42 = vadd.f32 %v5883_v40, %v5481_v9  ;;  %v5925_v4 = vadd.f32 %v5924_v58, %v5522_v27 }
 0x9b8   : > { %v5885_v62 = vpop.f32.mrf.mxu0  ;;  %v5926_v44 = vpop.f32.mrf.mxu1 }
 0x9b9   : > { %v5952_v13 = vadd.f32 %v5938_v39, %v5884_v42  ;;  %v5954_v14 = vadd.f32 %v5946_v43, %v5925_v4  ;;  %v5955_v25 = vmax.f32 %v5951_v3, 0.0  ;;  %v5957_v45 = vmax.f32 %v5953_v5, 0.0 }
 0x9ba   : > { %v5886_v15 = vpop.f32.mrf.mxu0  ;;  %v5927_v6 = vpop.f32.mrf.mxu1 }
 0x9bb   : > { %v5956_v46 = vmax.f32 %v5952_v13, 0.0  ;;  %v5958_v16 = vmax.f32 %v5954_v14, 0.0  ;;  %v5959_v18 = vpack.c.bf16 %v5955_v25, %v5955_v25  ;;  %v5961_v48 = vpack.c.bf16 %v5957_v45, %v5957_v45 }
 0x9bd   : > { %v5960_v47 = vpack.c.bf16 %v5956_v46, %v5956_v46  ;;  %v5962_v11 = vpack.c.bf16 %v5958_v16, %v5958_v16 }
 0x9bf   : > { %6252 = vmatprep.mubr.bf16.mxu0 %v5960_v47  ;;  %6292 = vmatprep.mubr.bf16.mxu1 %v5962_v11 }
 0x9c0   : > { %6253 = vmatmul.mubr.bf16.vlgmr.msra.gmra.mxu0 %v5959_v18  ;;  %6293 = vmatmul.mubr.bf16.vlgmr.msra.gmra.mxu1 %v5961_v48 }
 0xa80   : > { %v7147_v49 = vpop.f32.mrf.mxu0  ;;  %v7169_v50 = vpop.f32.mrf.mxu1 }
 0xa82   : > { %v7148_v52 = vpop.f32.mrf.mxu0  ;;  %v7170_v37 = vpop.f32.mrf.mxu1 }
 0xa83   : > { %v7149_v59 = vadd.f32 %v7148_v52, %v7147_v49  ;;  %v7171_v54 = vadd.f32 %v7170_v37, %v7169_v50 }
 0xa84   : > { %v7150_v41 = vpop.f32.mrf.mxu0  ;;  %v7172_v53 = vpop.f32.mrf.mxu1 }
 0xa85   : > { %v6255_v0 = vadd.f32 %v7149_v59, %v6027_v51 }
 0xa86   : > { %v7151_v55 = vpop.f32.mrf.mxu0  ;;  %v7173_v56 = vpop.f32.mrf.mxu1 }
 0xa87   : > { %v6295_v57 = vadd.f32 %v7171_v54, %v6255_v0 }
 0xa89   : > { %6300 = vst [vmem:[%s532_s29] sm:$0x1] %v6295_v57 }
 0xa8a   : > { %8256 = shalt.err (!%p8253_p11)
}
 0xa8b   : > { %s8257_s15 = scalar_lea.hbm %s6312_s18, 16  ;;  %s8261_s14 = scalar_lea.hbm %s8903_s26, 32 }
 0xa8c   : > { %p8258_p13 = scmp.ne.s32.totalorder %s6312_s18, %s8257_s15  ;;  %p8262_p0 = scmp.lt.s32.totalorder %s6312_s18, %s8903_s26 }
 0xa8d   : > { %p8263_p12 = scmp.lt.s32.totalorder %s8261_s14, %s8257_s15 }
 0xa8e   : > { %p8259_p6 = pnand %p8258_p13, %p8448_p5 }
 0xa8f   : > { %p8264_p10 = por %p8263_p12, %p8262_p0 }
 0xa90   : > { %p8260_p9 = pneg %p8259_p6 }
 0xa92   : > { %p8265_p3 = pnand %p8264_p10, %p8260_p9 }
 0xa94   : > { %8268 = shalt.err (!%p8265_p3)
}
 0xa95   : > { %7237 = dma.vmem_to_hbm [thread:$0]  (%p8448_p5), %s6315_s22, 16, %s6312_s18, %s6302_s24  }
 0xa96 PF: > { %s8904_s27 = sld [smem:[#allocation18_spill]] }
 0xa97   : > { %s8905_s25 = sld [smem:[#allocation16_spill]] }
 0xa98   : > { %s8906_s17 = sld [smem:[#allocation21_spill]] }
 0xa9c   : > { %p7269_p1 = scmp.ge.s32.totalorder %s8904_s27, 2 }
 0xa9d   : > { %s6326_s28 = sand.u32 1, %s8905_s25  }
 0xa9e   : > { %p8907_p2 = scmp.ne.s32.totalorder %s8906_s17, 0  ;;  %s6327_s21 = scalar_lea.sflag [#allocation4], %s6326_s28 }
 0xaa0   : > { %p7256_p4 = pnand %p7269_p1, %p8907_p2 }
 0xaa2   : > { %p7257_p7 = pneg %p7256_p4 }
 0xaa4   : > { %8298 = dma.done.wait (%p7257_p7), %s6327_s21, 16  }
 0xaa5   : > { %8300 = vsyncadd (%p7257_p7), %s6327_s21, 4294967280  ;;  %s8908_s16 = sld [smem:[#allocation19_spill]]  ;;  %s8911_s29 = smov %s8307_s30 }
 0xaa6   : > { %s8909_s15 = sld [smem:[#allocation17_spill]] }
 0xaa7   : > { %s8910_s20 = sld [smem:[#allocation20_spill]] }
 0xaab   : > { %p27_p8 = scmp.ge.s32.totalorder %s8908_s16, 4  }
 0xaac   : > { %s8912_s30 = smov %s8909_s15 }
 0xaad   : > { %s8913_s15 = smov %s8910_s20  ;;  %29 = sbr.rel (!%p27_p8) target bundleno = 8 (0x8), region = 145 }
 0xab2   :  { %6331 = vsyncpa [#allocation3], 1 }
 0xab3   :  { %6333 = vsyncpa [#allocation3 + $0x1], 1 }
 0xab4   :  { %6334 = vsyncpa [#allocation6], 1 }
 0xab5   :  { %6335 = vsyncpa [#allocation9], 1 }
 0xab6   :  { %6336 = vsyncpa [#allocation4], 1 }
 0xab7   :  { %6338 = vsyncpa [#allocation4 + $0x1], 1 }

</bundles_post_ra>
